<compile_context>
chip_gen: v7x
topology: tpu7x:2x2x1
jax: 0.10.0
libtpu: 0.0.40
codegen_flags: <defaults>
</compile_context>

<pallas_src>
import jax
import jax.numpy as jnp
import numpy as np
from jax.experimental import pallas as pl
from jax.experimental.pallas import tpu as pltpu


def _tap_planes(p, row_first, row_last, col_first, col_last, H, W):
    """Nine 3x3-tap views of an (H, W) plane with replicate ("edge") boundary.

    taps[dy*3+dx][i, j] == p[clamp(i+dy-1, 0, H-1), clamp(j+dx-1, 0, W-1)]

    Shifts use XLU rotates (pltpu.roll, always positive shift) and a VPU
    select on the border row/column -- no copies, concats or padded buffers.
    """
    up = jnp.where(row_first, p, pltpu.roll(p, 1, 0))        # p[i-1, j], clamp i=0
    down = jnp.where(row_last, p, pltpu.roll(p, H - 1, 0))   # p[i+1, j], clamp i=H-1
    taps = []
    for r in (up, p, down):                                  # dy = 0, 1, 2
        left = jnp.where(col_first, r, pltpu.roll(r, 1, 1))      # r[i, j-1]
        right = jnp.where(col_last, r, pltpu.roll(r, W - 1, 1))  # r[i, j+1]
        taps.extend((left, r, right))                        # dx = 0, 1, 2
    return taps


def handweight_kernel(rgbd_ref, pre_ref, w1_ref, b1_ref, w2_ref, b2_ref, o_ref):
    # rgbd_ref / pre_ref: (1, 4, H, W) VMEM blocks (NCHW, W on the lane axis).
    # w1_ref (144,), b1_ref (4,), w2_ref (36,), b2_ref (1,): flat f32 in SMEM.
    # o_ref: (1, 1, H, W) VMEM block -- lane-dense output store.
    H = o_ref.shape[2]
    W = o_ref.shape[3]

    row_ids = jax.lax.broadcasted_iota(jnp.int32, (H, W), 0)
    col_ids = jax.lax.broadcasted_iota(jnp.int32, (H, W), 1)
    row_first = row_ids == 0
    row_last = row_ids == H - 1
    col_first = col_ids == 0
    col_last = col_ids == W - 1

    # ---- conv1: 4 -> 4, 3x3, replicate padding, ReLU ------------------------
    acc1 = [jnp.full((H, W), b1_ref[co], dtype=jnp.float32) for co in range(4)]
    for ci in range(4):
        # |RGBD - PreRGBD| per channel plane (padding commutes with abs-diff).
        x = jnp.abs(rgbd_ref[0, ci] - pre_ref[0, ci])          # (H, W)
        taps = _tap_planes(x, row_first, row_last, col_first, col_last, H, W)
        for t in range(9):                                     # t = dy*3 + dx
            patch = taps[t]
            for co in range(4):
                w = w1_ref[(co * 4 + ci) * 9 + t]              # SMEM scalar (OIHW flat)
                acc1[co] = acc1[co] + w * patch                # VPU scalar FMA
    h = [jnp.maximum(a, 0.0) for a in acc1]

    # ---- conv2: 4 -> 1, 3x3, replicate padding, tanh -------------------------
    acc2 = jnp.full((H, W), b2_ref[0], dtype=jnp.float32)
    for ci in range(4):
        taps = _tap_planes(h[ci], row_first, row_last, col_first, col_last, H, W)
        for t in range(9):
            acc2 = acc2 + w2_ref[ci * 9 + t] * taps[t]
    o_ref[0, 0] = jnp.tanh(acc2)


def hand_weight_forward(rgbd, pre, w1, b1, w2, b2):
    """HandWeight forward.

    rgbd, pre: (N, 4, H, W) float32 (NCHW, kept end-to-end).
    w1: (4, 4, 3, 3) OIHW, b1: (4,), w2: (1, 4, 3, 3) OIHW, b2: (1,).
    """
    N, C, H, W = rgbd.shape
    assert C == 4

    w1f = jnp.asarray(w1, jnp.float32).reshape(-1)   # (144,)
    b1f = jnp.asarray(b1, jnp.float32).reshape(-1)   # (4,)
    w2f = jnp.asarray(w2, jnp.float32).reshape(-1)   # (36,)
    b2f = jnp.asarray(b2, jnp.float32).reshape(-1)   # (1,)

    smem = pl.BlockSpec(memory_space=pltpu.MemorySpace.SMEM)

    # TODO(synk): for production image sizes (e.g. 480x640+) tile over rows
    # (blocks (1, 4, TH, W) with a halo) and add the row axis as a second
    # parallel grid dim so the working set fits v7x's 64 MiB VMEM and both
    # v7x TensorCores are fed; whole-image blocks are fine at these toy sizes.
    return pl.pallas_call(
        handweight_kernel,
        out_shape=jax.ShapeDtypeStruct((N, 1, H, W), jnp.float32),
        grid=(N,),
        in_specs=[
            pl.BlockSpec((1, 4, H, W), lambda n: (n, 0, 0, 0)),
            pl.BlockSpec((1, 4, H, W), lambda n: (n, 0, 0, 0)),
            smem, smem, smem, smem,
        ],
        out_specs=pl.BlockSpec((1, 1, H, W), lambda n: (n, 0, 0, 0)),
        compiler_params=pltpu.CompilerParams(
            dimension_semantics=("parallel",)),
    )(rgbd, pre, w1f, b1f, w2f, b2f)


def reference_forward(rgbd, pre, w1, b1, w2, b2):
    """Pure-JAX reference matching the PyTorch module (NCHW / OIHW)."""
    x = jnp.abs(rgbd - pre)

    def conv(x_nchw, w_oihw, b):
        xp = jnp.pad(x_nchw, ((0, 0), (0, 0), (1, 1), (1, 1)), mode="edge")
        y = jax.lax.conv_general_dilated(
            xp, w_oihw, (1, 1), "VALID",
            dimension_numbers=("NCHW", "OIHW", "NCHW"))
        return y + b.reshape(1, -1, 1, 1)

    h = jax.nn.relu(conv(x, w1, b1))
    return jnp.tanh(conv(h, w2, b2))


if __name__ == "__main__":
    key = jax.random.PRNGKey(0)
    k_in1, k_in2, k_w1, k_b1, k_w2, k_b2 = jax.random.split(key, 6)

    N, C, H, W = 2, 4, 16, 16
    rgbd = jax.random.normal(k_in1, (N, C, H, W), jnp.float32)
    pre = jax.random.normal(k_in2, (N, C, H, W), jnp.float32)

    # PyTorch-style uniform +-1/sqrt(fan_in) init, stored OIHW like nn.Conv2d.
    bound = 1.0 / np.sqrt(4 * 3 * 3)
    w1 = jax.random.uniform(k_w1, (4, 4, 3, 3), jnp.float32, -bound, bound)
    b1 = jax.random.uniform(k_b1, (4,), jnp.float32, -bound, bound)
    w2 = jax.random.uniform(k_w2, (1, 4, 3, 3), jnp.float32, -bound, bound)
    b2 = jax.random.uniform(k_b2, (1,), jnp.float32, -bound, bound)

    out = jax.block_until_ready(hand_weight_forward(rgbd, pre, w1, b1, w2, b2))
    ref = jax.block_until_ready(reference_forward(rgbd, pre, w1, b1, w2, b2))

    assert out.shape == (N, 1, H, W)
    np.testing.assert_allclose(np.asarray(out), np.asarray(ref),
                               rtol=1e-5, atol=1e-5)
    print("KERNEL_OK")
</pallas_src>

<mosaic_0001>
module attributes {stable_mosaic.version = 11 : i64} {
  func.func @handweight_kernel(%arg0: i32, %arg1: memref<1x4x16x16xf32, #tpu.memory_space<vmem>>, %arg2: memref<1x4x16x16xf32, #tpu.memory_space<vmem>>, %arg3: memref<144xf32, #tpu.memory_space<smem>>, %arg4: memref<4xf32, #tpu.memory_space<smem>>, %arg5: memref<36xf32, #tpu.memory_space<smem>>, %arg6: memref<1xf32, #tpu.memory_space<smem>>, %arg7: memref<1x1x16x16xf32, #tpu.memory_space<vmem>>) attributes {dimension_semantics = [#tpu.dimension_semantics<parallel>], iteration_bounds = array<i64: 2>, scalar_prefetch = 0 : i64, scratch_operands = 0 : i64, tpu.core_type = #tpu.core_type<tc>, window_params = [{transform_indices = @transform_0, window_bounds = array<i64: 1, 4, 16, 16>}, {transform_indices = @transform_1, window_bounds = array<i64: 1, 4, 16, 16>}, {transform_indices = @transform_2, window_bounds = array<i64: 144>}, {transform_indices = @transform_3, window_bounds = array<i64: 4>}, {transform_indices = @transform_4, window_bounds = array<i64: 36>}, {transform_indices = @transform_5, window_bounds = array<i64: 1>}, {transform_indices = @transform_6, window_bounds = array<i64: 1, 1, 16, 16>}]} {
    %0 = tpu.iota {dimensions = array<i32: 0>} : vector<16x16xi32>
    %1 = tpu.iota {dimensions = array<i32: 1>} : vector<16x16xi32>
    %c0_i32 = arith.constant 0 : i32
    %2 = vector.broadcast %c0_i32 : i32 to vector<16x16xi32>
    %3 = arith.cmpi eq, %0, %2 : vector<16x16xi32>
    %c15_i32 = arith.constant 15 : i32
    %4 = vector.broadcast %c15_i32 : i32 to vector<16x16xi32>
    %5 = arith.cmpi eq, %0, %4 : vector<16x16xi32>
    %c0_i32_0 = arith.constant 0 : i32
    %6 = vector.broadcast %c0_i32_0 : i32 to vector<16x16xi32>
    %7 = arith.cmpi eq, %1, %6 : vector<16x16xi32>
    %c15_i32_1 = arith.constant 15 : i32
    %8 = vector.broadcast %c15_i32_1 : i32 to vector<16x16xi32>
    %9 = arith.cmpi eq, %1, %8 : vector<16x16xi32>
    %c0 = arith.constant 0 : index
    %10 = memref.load %arg4[%c0] : memref<4xf32, #tpu.memory_space<smem>>
    %11 = vector.broadcast %10 : f32 to vector<16x16xf32>
    %c1 = arith.constant 1 : index
    %12 = memref.load %arg4[%c1] : memref<4xf32, #tpu.memory_space<smem>>
    %13 = vector.broadcast %12 : f32 to vector<16x16xf32>
    %c2 = arith.constant 2 : index
    %14 = memref.load %arg4[%c2] : memref<4xf32, #tpu.memory_space<smem>>
    %15 = vector.broadcast %14 : f32 to vector<16x16xf32>
    %c3 = arith.constant 3 : index
    %16 = memref.load %arg4[%c3] : memref<4xf32, #tpu.memory_space<smem>>
    %17 = vector.broadcast %16 : f32 to vector<16x16xf32>
    %c0_2 = arith.constant 0 : index
    %c0_3 = arith.constant 0 : index
    %c0_4 = arith.constant 0 : index
    %c0_5 = arith.constant 0 : index
    %18 = vector.load %arg1[%c0_2, %c0_3, %c0_4, %c0_5] : memref<1x4x16x16xf32, #tpu.memory_space<vmem>>, vector<1x1x16x16xf32>
    %19 = vector.shape_cast %18 : vector<1x1x16x16xf32> to vector<16x16xf32>
    %c0_6 = arith.constant 0 : index
    %c0_7 = arith.constant 0 : index
    %c0_8 = arith.constant 0 : index
    %c0_9 = arith.constant 0 : index
    %20 = vector.load %arg2[%c0_6, %c0_7, %c0_8, %c0_9] : memref<1x4x16x16xf32, #tpu.memory_space<vmem>>, vector<1x1x16x16xf32>
    %21 = vector.shape_cast %20 : vector<1x1x16x16xf32> to vector<16x16xf32>
    %22 = arith.subf %19, %21 : vector<16x16xf32>
    %23 = math.absf %22 : vector<16x16xf32>
    %c1_i32 = arith.constant 1 : i32
    %24 = tpu.dynamic_rotate %23 by %c1_i32 dim 0 : vector<16x16xf32>, i32 -> vector<16x16xf32>
    %25 = arith.select %3, %23, %24 : vector<16x16xi1>, vector<16x16xf32>
    %c15_i32_10 = arith.constant 15 : i32
    %26 = tpu.dynamic_rotate %23 by %c15_i32_10 dim 0 : vector<16x16xf32>, i32 -> vector<16x16xf32>
    %27 = arith.select %5, %23, %26 : vector<16x16xi1>, vector<16x16xf32>
    %c1_i32_11 = arith.constant 1 : i32
    %28 = tpu.dynamic_rotate %25 by %c1_i32_11 dim 1 : vector<16x16xf32>, i32 -> vector<16x16xf32>
    %29 = arith.select %7, %25, %28 : vector<16x16xi1>, vector<16x16xf32>
    %c15_i32_12 = arith.constant 15 : i32
    %30 = tpu.dynamic_rotate %25 by %c15_i32_12 dim 1 : vector<16x16xf32>, i32 -> vector<16x16xf32>
    %31 = arith.select %9, %25, %30 : vector<16x16xi1>, vector<16x16xf32>
    %c1_i32_13 = arith.constant 1 : i32
    %32 = tpu.dynamic_rotate %23 by %c1_i32_13 dim 1 : vector<16x16xf32>, i32 -> vector<16x16xf32>
    %33 = arith.select %7, %23, %32 : vector<16x16xi1>, vector<16x16xf32>
    %c15_i32_14 = arith.constant 15 : i32
    %34 = tpu.dynamic_rotate %23 by %c15_i32_14 dim 1 : vector<16x16xf32>, i32 -> vector<16x16xf32>
    %35 = arith.select %9, %23, %34 : vector<16x16xi1>, vector<16x16xf32>
    %c1_i32_15 = arith.constant 1 : i32
    %36 = tpu.dynamic_rotate %27 by %c1_i32_15 dim 1 : vector<16x16xf32>, i32 -> vector<16x16xf32>
    %37 = arith.select %7, %27, %36 : vector<16x16xi1>, vector<16x16xf32>
    %c15_i32_16 = arith.constant 15 : i32
    %38 = tpu.dynamic_rotate %27 by %c15_i32_16 dim 1 : vector<16x16xf32>, i32 -> vector<16x16xf32>
    %39 = arith.select %9, %27, %38 : vector<16x16xi1>, vector<16x16xf32>
    %c0_17 = arith.constant 0 : index
    %40 = memref.load %arg3[%c0_17] : memref<144xf32, #tpu.memory_space<smem>>
    %41 = vector.broadcast %40 : f32 to vector<16x16xf32>
    %42 = arith.mulf %41, %29 : vector<16x16xf32>
    %43 = arith.addf %11, %42 : vector<16x16xf32>
    %c36 = arith.constant 36 : index
    %44 = memref.load %arg3[%c36] : memref<144xf32, #tpu.memory_space<smem>>
    %45 = vector.broadcast %44 : f32 to vector<16x16xf32>
    %46 = arith.mulf %45, %29 : vector<16x16xf32>
    %47 = arith.addf %13, %46 : vector<16x16xf32>
    %c72 = arith.constant 72 : index
    %48 = memref.load %arg3[%c72] : memref<144xf32, #tpu.memory_space<smem>>
    %49 = vector.broadcast %48 : f32 to vector<16x16xf32>
    %50 = arith.mulf %49, %29 : vector<16x16xf32>
    %51 = arith.addf %15, %50 : vector<16x16xf32>
    %c108 = arith.constant 108 : index
    %52 = memref.load %arg3[%c108] : memref<144xf32, #tpu.memory_space<smem>>
    %53 = vector.broadcast %52 : f32 to vector<16x16xf32>
    %54 = arith.mulf %53, %29 : vector<16x16xf32>
    %55 = arith.addf %17, %54 : vector<16x16xf32>
    %c1_18 = arith.constant 1 : index
    %56 = memref.load %arg3[%c1_18] : memref<144xf32, #tpu.memory_space<smem>>
    %57 = vector.broadcast %56 : f32 to vector<16x16xf32>
    %58 = arith.mulf %57, %25 : vector<16x16xf32>
    %59 = arith.addf %43, %58 : vector<16x16xf32>
    %c37 = arith.constant 37 : index
    %60 = memref.load %arg3[%c37] : memref<144xf32, #tpu.memory_space<smem>>
    %61 = vector.broadcast %60 : f32 to vector<16x16xf32>
    %62 = arith.mulf %61, %25 : vector<16x16xf32>
    %63 = arith.addf %47, %62 : vector<16x16xf32>
    %c73 = arith.constant 73 : index
    %64 = memref.load %arg3[%c73] : memref<144xf32, #tpu.memory_space<smem>>
    %65 = vector.broadcast %64 : f32 to vector<16x16xf32>
    %66 = arith.mulf %65, %25 : vector<16x16xf32>
    %67 = arith.addf %51, %66 : vector<16x16xf32>
    %c109 = arith.constant 109 : index
    %68 = memref.load %arg3[%c109] : memref<144xf32, #tpu.memory_space<smem>>
    %69 = vector.broadcast %68 : f32 to vector<16x16xf32>
    %70 = arith.mulf %69, %25 : vector<16x16xf32>
    %71 = arith.addf %55, %70 : vector<16x16xf32>
    %c2_19 = arith.constant 2 : index
    %72 = memref.load %arg3[%c2_19] : memref<144xf32, #tpu.memory_space<smem>>
    %73 = vector.broadcast %72 : f32 to vector<16x16xf32>
    %74 = arith.mulf %73, %31 : vector<16x16xf32>
    %75 = arith.addf %59, %74 : vector<16x16xf32>
    %c38 = arith.constant 38 : index
    %76 = memref.load %arg3[%c38] : memref<144xf32, #tpu.memory_space<smem>>
    %77 = vector.broadcast %76 : f32 to vector<16x16xf32>
    %78 = arith.mulf %77, %31 : vector<16x16xf32>
    %79 = arith.addf %63, %78 : vector<16x16xf32>
    %c74 = arith.constant 74 : index
    %80 = memref.load %arg3[%c74] : memref<144xf32, #tpu.memory_space<smem>>
    %81 = vector.broadcast %80 : f32 to vector<16x16xf32>
    %82 = arith.mulf %81, %31 : vector<16x16xf32>
    %83 = arith.addf %67, %82 : vector<16x16xf32>
    %c110 = arith.constant 110 : index
    %84 = memref.load %arg3[%c110] : memref<144xf32, #tpu.memory_space<smem>>
    %85 = vector.broadcast %84 : f32 to vector<16x16xf32>
    %86 = arith.mulf %85, %31 : vector<16x16xf32>
    %87 = arith.addf %71, %86 : vector<16x16xf32>
    %c3_20 = arith.constant 3 : index
    %88 = memref.load %arg3[%c3_20] : memref<144xf32, #tpu.memory_space<smem>>
    %89 = vector.broadcast %88 : f32 to vector<16x16xf32>
    %90 = arith.mulf %89, %33 : vector<16x16xf32>
    %91 = arith.addf %75, %90 : vector<16x16xf32>
    %c39 = arith.constant 39 : index
    %92 = memref.load %arg3[%c39] : memref<144xf32, #tpu.memory_space<smem>>
    %93 = vector.broadcast %92 : f32 to vector<16x16xf32>
    %94 = arith.mulf %93, %33 : vector<16x16xf32>
    %95 = arith.addf %79, %94 : vector<16x16xf32>
    %c75 = arith.constant 75 : index
    %96 = memref.load %arg3[%c75] : memref<144xf32, #tpu.memory_space<smem>>
    %97 = vector.broadcast %96 : f32 to vector<16x16xf32>
    %98 = arith.mulf %97, %33 : vector<16x16xf32>
    %99 = arith.addf %83, %98 : vector<16x16xf32>
    %c111 = arith.constant 111 : index
    %100 = memref.load %arg3[%c111] : memref<144xf32, #tpu.memory_space<smem>>
    %101 = vector.broadcast %100 : f32 to vector<16x16xf32>
    %102 = arith.mulf %101, %33 : vector<16x16xf32>
    %103 = arith.addf %87, %102 : vector<16x16xf32>
    %c4 = arith.constant 4 : index
    %104 = memref.load %arg3[%c4] : memref<144xf32, #tpu.memory_space<smem>>
    %105 = vector.broadcast %104 : f32 to vector<16x16xf32>
    %106 = arith.mulf %105, %23 : vector<16x16xf32>
    %107 = arith.addf %91, %106 : vector<16x16xf32>
    %c40 = arith.constant 40 : index
    %108 = memref.load %arg3[%c40] : memref<144xf32, #tpu.memory_space<smem>>
    %109 = vector.broadcast %108 : f32 to vector<16x16xf32>
    %110 = arith.mulf %109, %23 : vector<16x16xf32>
    %111 = arith.addf %95, %110 : vector<16x16xf32>
    %c76 = arith.constant 76 : index
    %112 = memref.load %arg3[%c76] : memref<144xf32, #tpu.memory_space<smem>>
    %113 = vector.broadcast %112 : f32 to vector<16x16xf32>
    %114 = arith.mulf %113, %23 : vector<16x16xf32>
    %115 = arith.addf %99, %114 : vector<16x16xf32>
    %c112 = arith.constant 112 : index
    %116 = memref.load %arg3[%c112] : memref<144xf32, #tpu.memory_space<smem>>
    %117 = vector.broadcast %116 : f32 to vector<16x16xf32>
    %118 = arith.mulf %117, %23 : vector<16x16xf32>
    %119 = arith.addf %103, %118 : vector<16x16xf32>
    %c5 = arith.constant 5 : index
    %120 = memref.load %arg3[%c5] : memref<144xf32, #tpu.memory_space<smem>>
    %121 = vector.broadcast %120 : f32 to vector<16x16xf32>
    %122 = arith.mulf %121, %35 : vector<16x16xf32>
    %123 = arith.addf %107, %122 : vector<16x16xf32>
    %c41 = arith.constant 41 : index
    %124 = memref.load %arg3[%c41] : memref<144xf32, #tpu.memory_space<smem>>
    %125 = vector.broadcast %124 : f32 to vector<16x16xf32>
    %126 = arith.mulf %125, %35 : vector<16x16xf32>
    %127 = arith.addf %111, %126 : vector<16x16xf32>
    %c77 = arith.constant 77 : index
    %128 = memref.load %arg3[%c77] : memref<144xf32, #tpu.memory_space<smem>>
    %129 = vector.broadcast %128 : f32 to vector<16x16xf32>
    %130 = arith.mulf %129, %35 : vector<16x16xf32>
    %131 = arith.addf %115, %130 : vector<16x16xf32>
    %c113 = arith.constant 113 : index
    %132 = memref.load %arg3[%c113] : memref<144xf32, #tpu.memory_space<smem>>
    %133 = vector.broadcast %132 : f32 to vector<16x16xf32>
    %134 = arith.mulf %133, %35 : vector<16x16xf32>
    %135 = arith.addf %119, %134 : vector<16x16xf32>
    %c6 = arith.constant 6 : index
    %136 = memref.load %arg3[%c6] : memref<144xf32, #tpu.memory_space<smem>>
    %137 = vector.broadcast %136 : f32 to vector<16x16xf32>
    %138 = arith.mulf %137, %37 : vector<16x16xf32>
    %139 = arith.addf %123, %138 : vector<16x16xf32>
    %c42 = arith.constant 42 : index
    %140 = memref.load %arg3[%c42] : memref<144xf32, #tpu.memory_space<smem>>
    %141 = vector.broadcast %140 : f32 to vector<16x16xf32>
    %142 = arith.mulf %141, %37 : vector<16x16xf32>
    %143 = arith.addf %127, %142 : vector<16x16xf32>
    %c78 = arith.constant 78 : index
    %144 = memref.load %arg3[%c78] : memref<144xf32, #tpu.memory_space<smem>>
    %145 = vector.broadcast %144 : f32 to vector<16x16xf32>
    %146 = arith.mulf %145, %37 : vector<16x16xf32>
    %147 = arith.addf %131, %146 : vector<16x16xf32>
    %c114 = arith.constant 114 : index
    %148 = memref.load %arg3[%c114] : memref<144xf32, #tpu.memory_space<smem>>
    %149 = vector.broadcast %148 : f32 to vector<16x16xf32>
    %150 = arith.mulf %149, %37 : vector<16x16xf32>
    %151 = arith.addf %135, %150 : vector<16x16xf32>
    %c7 = arith.constant 7 : index
    %152 = memref.load %arg3[%c7] : memref<144xf32, #tpu.memory_space<smem>>
    %153 = vector.broadcast %152 : f32 to vector<16x16xf32>
    %154 = arith.mulf %153, %27 : vector<16x16xf32>
    %155 = arith.addf %139, %154 : vector<16x16xf32>
    %c43 = arith.constant 43 : index
    %156 = memref.load %arg3[%c43] : memref<144xf32, #tpu.memory_space<smem>>
    %157 = vector.broadcast %156 : f32 to vector<16x16xf32>
    %158 = arith.mulf %157, %27 : vector<16x16xf32>
    %159 = arith.addf %143, %158 : vector<16x16xf32>
    %c79 = arith.constant 79 : index
    %160 = memref.load %arg3[%c79] : memref<144xf32, #tpu.memory_space<smem>>
    %161 = vector.broadcast %160 : f32 to vector<16x16xf32>
    %162 = arith.mulf %161, %27 : vector<16x16xf32>
    %163 = arith.addf %147, %162 : vector<16x16xf32>
    %c115 = arith.constant 115 : index
    %164 = memref.load %arg3[%c115] : memref<144xf32, #tpu.memory_space<smem>>
    %165 = vector.broadcast %164 : f32 to vector<16x16xf32>
    %166 = arith.mulf %165, %27 : vector<16x16xf32>
    %167 = arith.addf %151, %166 : vector<16x16xf32>
    %c8 = arith.constant 8 : index
    %168 = memref.load %arg3[%c8] : memref<144xf32, #tpu.memory_space<smem>>
    %169 = vector.broadcast %168 : f32 to vector<16x16xf32>
    %170 = arith.mulf %169, %39 : vector<16x16xf32>
    %171 = arith.addf %155, %170 : vector<16x16xf32>
    %c44 = arith.constant 44 : index
    %172 = memref.load %arg3[%c44] : memref<144xf32, #tpu.memory_space<smem>>
    %173 = vector.broadcast %172 : f32 to vector<16x16xf32>
    %174 = arith.mulf %173, %39 : vector<16x16xf32>
    %175 = arith.addf %159, %174 : vector<16x16xf32>
    %c80 = arith.constant 80 : index
    %176 = memref.load %arg3[%c80] : memref<144xf32, #tpu.memory_space<smem>>
    %177 = vector.broadcast %176 : f32 to vector<16x16xf32>
    %178 = arith.mulf %177, %39 : vector<16x16xf32>
    %179 = arith.addf %163, %178 : vector<16x16xf32>
    %c116 = arith.constant 116 : index
    %180 = memref.load %arg3[%c116] : memref<144xf32, #tpu.memory_space<smem>>
    %181 = vector.broadcast %180 : f32 to vector<16x16xf32>
    %182 = arith.mulf %181, %39 : vector<16x16xf32>
    %183 = arith.addf %167, %182 : vector<16x16xf32>
    %c0_21 = arith.constant 0 : index
    %c1_22 = arith.constant 1 : index
    %c0_23 = arith.constant 0 : index
    %c0_24 = arith.constant 0 : index
    %184 = vector.load %arg1[%c0_21, %c1_22, %c0_23, %c0_24] : memref<1x4x16x16xf32, #tpu.memory_space<vmem>>, vector<1x1x16x16xf32>
    %185 = vector.shape_cast %184 : vector<1x1x16x16xf32> to vector<16x16xf32>
    %c0_25 = arith.constant 0 : index
    %c1_26 = arith.constant 1 : index
    %c0_27 = arith.constant 0 : index
    %c0_28 = arith.constant 0 : index
    %186 = vector.load %arg2[%c0_25, %c1_26, %c0_27, %c0_28] : memref<1x4x16x16xf32, #tpu.memory_space<vmem>>, vector<1x1x16x16xf32>
    %187 = vector.shape_cast %186 : vector<1x1x16x16xf32> to vector<16x16xf32>
    %188 = arith.subf %185, %187 : vector<16x16xf32>
    %189 = math.absf %188 : vector<16x16xf32>
    %c1_i32_29 = arith.constant 1 : i32
    %190 = tpu.dynamic_rotate %189 by %c1_i32_29 dim 0 : vector<16x16xf32>, i32 -> vector<16x16xf32>
    %191 = arith.select %3, %189, %190 : vector<16x16xi1>, vector<16x16xf32>
    %c15_i32_30 = arith.constant 15 : i32
    %192 = tpu.dynamic_rotate %189 by %c15_i32_30 dim 0 : vector<16x16xf32>, i32 -> vector<16x16xf32>
    %193 = arith.select %5, %189, %192 : vector<16x16xi1>, vector<16x16xf32>
    %c1_i32_31 = arith.constant 1 : i32
    %194 = tpu.dynamic_rotate %191 by %c1_i32_31 dim 1 : vector<16x16xf32>, i32 -> vector<16x16xf32>
    %195 = arith.select %7, %191, %194 : vector<16x16xi1>, vector<16x16xf32>
    %c15_i32_32 = arith.constant 15 : i32
    %196 = tpu.dynamic_rotate %191 by %c15_i32_32 dim 1 : vector<16x16xf32>, i32 -> vector<16x16xf32>
    %197 = arith.select %9, %191, %196 : vector<16x16xi1>, vector<16x16xf32>
    %c1_i32_33 = arith.constant 1 : i32
    %198 = tpu.dynamic_rotate %189 by %c1_i32_33 dim 1 : vector<16x16xf32>, i32 -> vector<16x16xf32>
    %199 = arith.select %7, %189, %198 : vector<16x16xi1>, vector<16x16xf32>
    %c15_i32_34 = arith.constant 15 : i32
    %200 = tpu.dynamic_rotate %189 by %c15_i32_34 dim 1 : vector<16x16xf32>, i32 -> vector<16x16xf32>
    %201 = arith.select %9, %189, %200 : vector<16x16xi1>, vector<16x16xf32>
    %c1_i32_35 = arith.constant 1 : i32
    %202 = tpu.dynamic_rotate %193 by %c1_i32_35 dim 1 : vector<16x16xf32>, i32 -> vector<16x16xf32>
    %203 = arith.select %7, %193, %202 : vector<16x16xi1>, vector<16x16xf32>
    %c15_i32_36 = arith.constant 15 : i32
    %204 = tpu.dynamic_rotate %193 by %c15_i32_36 dim 1 : vector<16x16xf32>, i32 -> vector<16x16xf32>
    %205 = arith.select %9, %193, %204 : vector<16x16xi1>, vector<16x16xf32>
    %c9 = arith.constant 9 : index
    %206 = memref.load %arg3[%c9] : memref<144xf32, #tpu.memory_space<smem>>
    %207 = vector.broadcast %206 : f32 to vector<16x16xf32>
    %208 = arith.mulf %207, %195 : vector<16x16xf32>
    %209 = arith.addf %171, %208 : vector<16x16xf32>
    %c45 = arith.constant 45 : index
    %210 = memref.load %arg3[%c45] : memref<144xf32, #tpu.memory_space<smem>>
    %211 = vector.broadcast %210 : f32 to vector<16x16xf32>
    %212 = arith.mulf %211, %195 : vector<16x16xf32>
    %213 = arith.addf %175, %212 : vector<16x16xf32>
    %c81 = arith.constant 81 : index
    %214 = memref.load %arg3[%c81] : memref<144xf32, #tpu.memory_space<smem>>
    %215 = vector.broadcast %214 : f32 to vector<16x16xf32>
    %216 = arith.mulf %215, %195 : vector<16x16xf32>
    %217 = arith.addf %179, %216 : vector<16x16xf32>
    %c117 = arith.constant 117 : index
    %218 = memref.load %arg3[%c117] : memref<144xf32, #tpu.memory_space<smem>>
    %219 = vector.broadcast %218 : f32 to vector<16x16xf32>
    %220 = arith.mulf %219, %195 : vector<16x16xf32>
    %221 = arith.addf %183, %220 : vector<16x16xf32>
    %c10 = arith.constant 10 : index
    %222 = memref.load %arg3[%c10] : memref<144xf32, #tpu.memory_space<smem>>
    %223 = vector.broadcast %222 : f32 to vector<16x16xf32>
    %224 = arith.mulf %223, %191 : vector<16x16xf32>
    %225 = arith.addf %209, %224 : vector<16x16xf32>
    %c46 = arith.constant 46 : index
    %226 = memref.load %arg3[%c46] : memref<144xf32, #tpu.memory_space<smem>>
    %227 = vector.broadcast %226 : f32 to vector<16x16xf32>
    %228 = arith.mulf %227, %191 : vector<16x16xf32>
    %229 = arith.addf %213, %228 : vector<16x16xf32>
    %c82 = arith.constant 82 : index
    %230 = memref.load %arg3[%c82] : memref<144xf32, #tpu.memory_space<smem>>
    %231 = vector.broadcast %230 : f32 to vector<16x16xf32>
    %232 = arith.mulf %231, %191 : vector<16x16xf32>
    %233 = arith.addf %217, %232 : vector<16x16xf32>
    %c118 = arith.constant 118 : index
    %234 = memref.load %arg3[%c118] : memref<144xf32, #tpu.memory_space<smem>>
    %235 = vector.broadcast %234 : f32 to vector<16x16xf32>
    %236 = arith.mulf %235, %191 : vector<16x16xf32>
    %237 = arith.addf %221, %236 : vector<16x16xf32>
    %c11 = arith.constant 11 : index
    %238 = memref.load %arg3[%c11] : memref<144xf32, #tpu.memory_space<smem>>
    %239 = vector.broadcast %238 : f32 to vector<16x16xf32>
    %240 = arith.mulf %239, %197 : vector<16x16xf32>
    %241 = arith.addf %225, %240 : vector<16x16xf32>
    %c47 = arith.constant 47 : index
    %242 = memref.load %arg3[%c47] : memref<144xf32, #tpu.memory_space<smem>>
    %243 = vector.broadcast %242 : f32 to vector<16x16xf32>
    %244 = arith.mulf %243, %197 : vector<16x16xf32>
    %245 = arith.addf %229, %244 : vector<16x16xf32>
    %c83 = arith.constant 83 : index
    %246 = memref.load %arg3[%c83] : memref<144xf32, #tpu.memory_space<smem>>
    %247 = vector.broadcast %246 : f32 to vector<16x16xf32>
    %248 = arith.mulf %247, %197 : vector<16x16xf32>
    %249 = arith.addf %233, %248 : vector<16x16xf32>
    %c119 = arith.constant 119 : index
    %250 = memref.load %arg3[%c119] : memref<144xf32, #tpu.memory_space<smem>>
    %251 = vector.broadcast %250 : f32 to vector<16x16xf32>
    %252 = arith.mulf %251, %197 : vector<16x16xf32>
    %253 = arith.addf %237, %252 : vector<16x16xf32>
    %c12 = arith.constant 12 : index
    %254 = memref.load %arg3[%c12] : memref<144xf32, #tpu.memory_space<smem>>
    %255 = vector.broadcast %254 : f32 to vector<16x16xf32>
    %256 = arith.mulf %255, %199 : vector<16x16xf32>
    %257 = arith.addf %241, %256 : vector<16x16xf32>
    %c48 = arith.constant 48 : index
    %258 = memref.load %arg3[%c48] : memref<144xf32, #tpu.memory_space<smem>>
    %259 = vector.broadcast %258 : f32 to vector<16x16xf32>
    %260 = arith.mulf %259, %199 : vector<16x16xf32>
    %261 = arith.addf %245, %260 : vector<16x16xf32>
    %c84 = arith.constant 84 : index
    %262 = memref.load %arg3[%c84] : memref<144xf32, #tpu.memory_space<smem>>
    %263 = vector.broadcast %262 : f32 to vector<16x16xf32>
    %264 = arith.mulf %263, %199 : vector<16x16xf32>
    %265 = arith.addf %249, %264 : vector<16x16xf32>
    %c120 = arith.constant 120 : index
    %266 = memref.load %arg3[%c120] : memref<144xf32, #tpu.memory_space<smem>>
    %267 = vector.broadcast %266 : f32 to vector<16x16xf32>
    %268 = arith.mulf %267, %199 : vector<16x16xf32>
    %269 = arith.addf %253, %268 : vector<16x16xf32>
    %c13 = arith.constant 13 : index
    %270 = memref.load %arg3[%c13] : memref<144xf32, #tpu.memory_space<smem>>
    %271 = vector.broadcast %270 : f32 to vector<16x16xf32>
    %272 = arith.mulf %271, %189 : vector<16x16xf32>
    %273 = arith.addf %257, %272 : vector<16x16xf32>
    %c49 = arith.constant 49 : index
    %274 = memref.load %arg3[%c49] : memref<144xf32, #tpu.memory_space<smem>>
    %275 = vector.broadcast %274 : f32 to vector<16x16xf32>
    %276 = arith.mulf %275, %189 : vector<16x16xf32>
    %277 = arith.addf %261, %276 : vector<16x16xf32>
    %c85 = arith.constant 85 : index
    %278 = memref.load %arg3[%c85] : memref<144xf32, #tpu.memory_space<smem>>
    %279 = vector.broadcast %278 : f32 to vector<16x16xf32>
    %280 = arith.mulf %279, %189 : vector<16x16xf32>
    %281 = arith.addf %265, %280 : vector<16x16xf32>
    %c121 = arith.constant 121 : index
    %282 = memref.load %arg3[%c121] : memref<144xf32, #tpu.memory_space<smem>>
    %283 = vector.broadcast %282 : f32 to vector<16x16xf32>
    %284 = arith.mulf %283, %189 : vector<16x16xf32>
    %285 = arith.addf %269, %284 : vector<16x16xf32>
    %c14 = arith.constant 14 : index
    %286 = memref.load %arg3[%c14] : memref<144xf32, #tpu.memory_space<smem>>
    %287 = vector.broadcast %286 : f32 to vector<16x16xf32>
    %288 = arith.mulf %287, %201 : vector<16x16xf32>
    %289 = arith.addf %273, %288 : vector<16x16xf32>
    %c50 = arith.constant 50 : index
    %290 = memref.load %arg3[%c50] : memref<144xf32, #tpu.memory_space<smem>>
    %291 = vector.broadcast %290 : f32 to vector<16x16xf32>
    %292 = arith.mulf %291, %201 : vector<16x16xf32>
    %293 = arith.addf %277, %292 : vector<16x16xf32>
    %c86 = arith.constant 86 : index
    %294 = memref.load %arg3[%c86] : memref<144xf32, #tpu.memory_space<smem>>
    %295 = vector.broadcast %294 : f32 to vector<16x16xf32>
    %296 = arith.mulf %295, %201 : vector<16x16xf32>
    %297 = arith.addf %281, %296 : vector<16x16xf32>
    %c122 = arith.constant 122 : index
    %298 = memref.load %arg3[%c122] : memref<144xf32, #tpu.memory_space<smem>>
    %299 = vector.broadcast %298 : f32 to vector<16x16xf32>
    %300 = arith.mulf %299, %201 : vector<16x16xf32>
    %301 = arith.addf %285, %300 : vector<16x16xf32>
    %c15 = arith.constant 15 : index
    %302 = memref.load %arg3[%c15] : memref<144xf32, #tpu.memory_space<smem>>
    %303 = vector.broadcast %302 : f32 to vector<16x16xf32>
    %304 = arith.mulf %303, %203 : vector<16x16xf32>
    %305 = arith.addf %289, %304 : vector<16x16xf32>
    %c51 = arith.constant 51 : index
    %306 = memref.load %arg3[%c51] : memref<144xf32, #tpu.memory_space<smem>>
    %307 = vector.broadcast %306 : f32 to vector<16x16xf32>
    %308 = arith.mulf %307, %203 : vector<16x16xf32>
    %309 = arith.addf %293, %308 : vector<16x16xf32>
    %c87 = arith.constant 87 : index
    %310 = memref.load %arg3[%c87] : memref<144xf32, #tpu.memory_space<smem>>
    %311 = vector.broadcast %310 : f32 to vector<16x16xf32>
    %312 = arith.mulf %311, %203 : vector<16x16xf32>
    %313 = arith.addf %297, %312 : vector<16x16xf32>
    %c123 = arith.constant 123 : index
    %314 = memref.load %arg3[%c123] : memref<144xf32, #tpu.memory_space<smem>>
    %315 = vector.broadcast %314 : f32 to vector<16x16xf32>
    %316 = arith.mulf %315, %203 : vector<16x16xf32>
    %317 = arith.addf %301, %316 : vector<16x16xf32>
    %c16 = arith.constant 16 : index
    %318 = memref.load %arg3[%c16] : memref<144xf32, #tpu.memory_space<smem>>
    %319 = vector.broadcast %318 : f32 to vector<16x16xf32>
    %320 = arith.mulf %319, %193 : vector<16x16xf32>
    %321 = arith.addf %305, %320 : vector<16x16xf32>
    %c52 = arith.constant 52 : index
    %322 = memref.load %arg3[%c52] : memref<144xf32, #tpu.memory_space<smem>>
    %323 = vector.broadcast %322 : f32 to vector<16x16xf32>
    %324 = arith.mulf %323, %193 : vector<16x16xf32>
    %325 = arith.addf %309, %324 : vector<16x16xf32>
    %c88 = arith.constant 88 : index
    %326 = memref.load %arg3[%c88] : memref<144xf32, #tpu.memory_space<smem>>
    %327 = vector.broadcast %326 : f32 to vector<16x16xf32>
    %328 = arith.mulf %327, %193 : vector<16x16xf32>
    %329 = arith.addf %313, %328 : vector<16x16xf32>
    %c124 = arith.constant 124 : index
    %330 = memref.load %arg3[%c124] : memref<144xf32, #tpu.memory_space<smem>>
    %331 = vector.broadcast %330 : f32 to vector<16x16xf32>
    %332 = arith.mulf %331, %193 : vector<16x16xf32>
    %333 = arith.addf %317, %332 : vector<16x16xf32>
    %c17 = arith.constant 17 : index
    %334 = memref.load %arg3[%c17] : memref<144xf32, #tpu.memory_space<smem>>
    %335 = vector.broadcast %334 : f32 to vector<16x16xf32>
    %336 = arith.mulf %335, %205 : vector<16x16xf32>
    %337 = arith.addf %321, %336 : vector<16x16xf32>
    %c53 = arith.constant 53 : index
    %338 = memref.load %arg3[%c53] : memref<144xf32, #tpu.memory_space<smem>>
    %339 = vector.broadcast %338 : f32 to vector<16x16xf32>
    %340 = arith.mulf %339, %205 : vector<16x16xf32>
    %341 = arith.addf %325, %340 : vector<16x16xf32>
    %c89 = arith.constant 89 : index
    %342 = memref.load %arg3[%c89] : memref<144xf32, #tpu.memory_space<smem>>
    %343 = vector.broadcast %342 : f32 to vector<16x16xf32>
    %344 = arith.mulf %343, %205 : vector<16x16xf32>
    %345 = arith.addf %329, %344 : vector<16x16xf32>
    %c125 = arith.constant 125 : index
    %346 = memref.load %arg3[%c125] : memref<144xf32, #tpu.memory_space<smem>>
    %347 = vector.broadcast %346 : f32 to vector<16x16xf32>
    %348 = arith.mulf %347, %205 : vector<16x16xf32>
    %349 = arith.addf %333, %348 : vector<16x16xf32>
    %c0_37 = arith.constant 0 : index
    %c2_38 = arith.constant 2 : index
    %c0_39 = arith.constant 0 : index
    %c0_40 = arith.constant 0 : index
    %350 = vector.load %arg1[%c0_37, %c2_38, %c0_39, %c0_40] : memref<1x4x16x16xf32, #tpu.memory_space<vmem>>, vector<1x1x16x16xf32>
    %351 = vector.shape_cast %350 : vector<1x1x16x16xf32> to vector<16x16xf32>
    %c0_41 = arith.constant 0 : index
    %c2_42 = arith.constant 2 : index
    %c0_43 = arith.constant 0 : index
    %c0_44 = arith.constant 0 : index
    %352 = vector.load %arg2[%c0_41, %c2_42, %c0_43, %c0_44] : memref<1x4x16x16xf32, #tpu.memory_space<vmem>>, vector<1x1x16x16xf32>
    %353 = vector.shape_cast %352 : vector<1x1x16x16xf32> to vector<16x16xf32>
    %354 = arith.subf %351, %353 : vector<16x16xf32>
    %355 = math.absf %354 : vector<16x16xf32>
    %c1_i32_45 = arith.constant 1 : i32
    %356 = tpu.dynamic_rotate %355 by %c1_i32_45 dim 0 : vector<16x16xf32>, i32 -> vector<16x16xf32>
    %357 = arith.select %3, %355, %356 : vector<16x16xi1>, vector<16x16xf32>
    %c15_i32_46 = arith.constant 15 : i32
    %358 = tpu.dynamic_rotate %355 by %c15_i32_46 dim 0 : vector<16x16xf32>, i32 -> vector<16x16xf32>
    %359 = arith.select %5, %355, %358 : vector<16x16xi1>, vector<16x16xf32>
    %c1_i32_47 = arith.constant 1 : i32
    %360 = tpu.dynamic_rotate %357 by %c1_i32_47 dim 1 : vector<16x16xf32>, i32 -> vector<16x16xf32>
    %361 = arith.select %7, %357, %360 : vector<16x16xi1>, vector<16x16xf32>
    %c15_i32_48 = arith.constant 15 : i32
    %362 = tpu.dynamic_rotate %357 by %c15_i32_48 dim 1 : vector<16x16xf32>, i32 -> vector<16x16xf32>
    %363 = arith.select %9, %357, %362 : vector<16x16xi1>, vector<16x16xf32>
    %c1_i32_49 = arith.constant 1 : i32
    %364 = tpu.dynamic_rotate %355 by %c1_i32_49 dim 1 : vector<16x16xf32>, i32 -> vector<16x16xf32>
    %365 = arith.select %7, %355, %364 : vector<16x16xi1>, vector<16x16xf32>
    %c15_i32_50 = arith.constant 15 : i32
    %366 = tpu.dynamic_rotate %355 by %c15_i32_50 dim 1 : vector<16x16xf32>, i32 -> vector<16x16xf32>
    %367 = arith.select %9, %355, %366 : vector<16x16xi1>, vector<16x16xf32>
    %c1_i32_51 = arith.constant 1 : i32
    %368 = tpu.dynamic_rotate %359 by %c1_i32_51 dim 1 : vector<16x16xf32>, i32 -> vector<16x16xf32>
    %369 = arith.select %7, %359, %368 : vector<16x16xi1>, vector<16x16xf32>
    %c15_i32_52 = arith.constant 15 : i32
    %370 = tpu.dynamic_rotate %359 by %c15_i32_52 dim 1 : vector<16x16xf32>, i32 -> vector<16x16xf32>
    %371 = arith.select %9, %359, %370 : vector<16x16xi1>, vector<16x16xf32>
    %c18 = arith.constant 18 : index
    %372 = memref.load %arg3[%c18] : memref<144xf32, #tpu.memory_space<smem>>
    %373 = vector.broadcast %372 : f32 to vector<16x16xf32>
    %374 = arith.mulf %373, %361 : vector<16x16xf32>
    %375 = arith.addf %337, %374 : vector<16x16xf32>
    %c54 = arith.constant 54 : index
    %376 = memref.load %arg3[%c54] : memref<144xf32, #tpu.memory_space<smem>>
    %377 = vector.broadcast %376 : f32 to vector<16x16xf32>
    %378 = arith.mulf %377, %361 : vector<16x16xf32>
    %379 = arith.addf %341, %378 : vector<16x16xf32>
    %c90 = arith.constant 90 : index
    %380 = memref.load %arg3[%c90] : memref<144xf32, #tpu.memory_space<smem>>
    %381 = vector.broadcast %380 : f32 to vector<16x16xf32>
    %382 = arith.mulf %381, %361 : vector<16x16xf32>
    %383 = arith.addf %345, %382 : vector<16x16xf32>
    %c126 = arith.constant 126 : index
    %384 = memref.load %arg3[%c126] : memref<144xf32, #tpu.memory_space<smem>>
    %385 = vector.broadcast %384 : f32 to vector<16x16xf32>
    %386 = arith.mulf %385, %361 : vector<16x16xf32>
    %387 = arith.addf %349, %386 : vector<16x16xf32>
    %c19 = arith.constant 19 : index
    %388 = memref.load %arg3[%c19] : memref<144xf32, #tpu.memory_space<smem>>
    %389 = vector.broadcast %388 : f32 to vector<16x16xf32>
    %390 = arith.mulf %389, %357 : vector<16x16xf32>
    %391 = arith.addf %375, %390 : vector<16x16xf32>
    %c55 = arith.constant 55 : index
    %392 = memref.load %arg3[%c55] : memref<144xf32, #tpu.memory_space<smem>>
    %393 = vector.broadcast %392 : f32 to vector<16x16xf32>
    %394 = arith.mulf %393, %357 : vector<16x16xf32>
    %395 = arith.addf %379, %394 : vector<16x16xf32>
    %c91 = arith.constant 91 : index
    %396 = memref.load %arg3[%c91] : memref<144xf32, #tpu.memory_space<smem>>
    %397 = vector.broadcast %396 : f32 to vector<16x16xf32>
    %398 = arith.mulf %397, %357 : vector<16x16xf32>
    %399 = arith.addf %383, %398 : vector<16x16xf32>
    %c127 = arith.constant 127 : index
    %400 = memref.load %arg3[%c127] : memref<144xf32, #tpu.memory_space<smem>>
    %401 = vector.broadcast %400 : f32 to vector<16x16xf32>
    %402 = arith.mulf %401, %357 : vector<16x16xf32>
    %403 = arith.addf %387, %402 : vector<16x16xf32>
    %c20 = arith.constant 20 : index
    %404 = memref.load %arg3[%c20] : memref<144xf32, #tpu.memory_space<smem>>
    %405 = vector.broadcast %404 : f32 to vector<16x16xf32>
    %406 = arith.mulf %405, %363 : vector<16x16xf32>
    %407 = arith.addf %391, %406 : vector<16x16xf32>
    %c56 = arith.constant 56 : index
    %408 = memref.load %arg3[%c56] : memref<144xf32, #tpu.memory_space<smem>>
    %409 = vector.broadcast %408 : f32 to vector<16x16xf32>
    %410 = arith.mulf %409, %363 : vector<16x16xf32>
    %411 = arith.addf %395, %410 : vector<16x16xf32>
    %c92 = arith.constant 92 : index
    %412 = memref.load %arg3[%c92] : memref<144xf32, #tpu.memory_space<smem>>
    %413 = vector.broadcast %412 : f32 to vector<16x16xf32>
    %414 = arith.mulf %413, %363 : vector<16x16xf32>
    %415 = arith.addf %399, %414 : vector<16x16xf32>
    %c128 = arith.constant 128 : index
    %416 = memref.load %arg3[%c128] : memref<144xf32, #tpu.memory_space<smem>>
    %417 = vector.broadcast %416 : f32 to vector<16x16xf32>
    %418 = arith.mulf %417, %363 : vector<16x16xf32>
    %419 = arith.addf %403, %418 : vector<16x16xf32>
    %c21 = arith.constant 21 : index
    %420 = memref.load %arg3[%c21] : memref<144xf32, #tpu.memory_space<smem>>
    %421 = vector.broadcast %420 : f32 to vector<16x16xf32>
    %422 = arith.mulf %421, %365 : vector<16x16xf32>
    %423 = arith.addf %407, %422 : vector<16x16xf32>
    %c57 = arith.constant 57 : index
    %424 = memref.load %arg3[%c57] : memref<144xf32, #tpu.memory_space<smem>>
    %425 = vector.broadcast %424 : f32 to vector<16x16xf32>
    %426 = arith.mulf %425, %365 : vector<16x16xf32>
    %427 = arith.addf %411, %426 : vector<16x16xf32>
    %c93 = arith.constant 93 : index
    %428 = memref.load %arg3[%c93] : memref<144xf32, #tpu.memory_space<smem>>
    %429 = vector.broadcast %428 : f32 to vector<16x16xf32>
    %430 = arith.mulf %429, %365 : vector<16x16xf32>
    %431 = arith.addf %415, %430 : vector<16x16xf32>
    %c129 = arith.constant 129 : index
    %432 = memref.load %arg3[%c129] : memref<144xf32, #tpu.memory_space<smem>>
    %433 = vector.broadcast %432 : f32 to vector<16x16xf32>
    %434 = arith.mulf %433, %365 : vector<16x16xf32>
    %435 = arith.addf %419, %434 : vector<16x16xf32>
    %c22 = arith.constant 22 : index
    %436 = memref.load %arg3[%c22] : memref<144xf32, #tpu.memory_space<smem>>
    %437 = vector.broadcast %436 : f32 to vector<16x16xf32>
    %438 = arith.mulf %437, %355 : vector<16x16xf32>
    %439 = arith.addf %423, %438 : vector<16x16xf32>
    %c58 = arith.constant 58 : index
    %440 = memref.load %arg3[%c58] : memref<144xf32, #tpu.memory_space<smem>>
    %441 = vector.broadcast %440 : f32 to vector<16x16xf32>
    %442 = arith.mulf %441, %355 : vector<16x16xf32>
    %443 = arith.addf %427, %442 : vector<16x16xf32>
    %c94 = arith.constant 94 : index
    %444 = memref.load %arg3[%c94] : memref<144xf32, #tpu.memory_space<smem>>
    %445 = vector.broadcast %444 : f32 to vector<16x16xf32>
    %446 = arith.mulf %445, %355 : vector<16x16xf32>
    %447 = arith.addf %431, %446 : vector<16x16xf32>
    %c130 = arith.constant 130 : index
    %448 = memref.load %arg3[%c130] : memref<144xf32, #tpu.memory_space<smem>>
    %449 = vector.broadcast %448 : f32 to vector<16x16xf32>
    %450 = arith.mulf %449, %355 : vector<16x16xf32>
    %451 = arith.addf %435, %450 : vector<16x16xf32>
    %c23 = arith.constant 23 : index
    %452 = memref.load %arg3[%c23] : memref<144xf32, #tpu.memory_space<smem>>
    %453 = vector.broadcast %452 : f32 to vector<16x16xf32>
    %454 = arith.mulf %453, %367 : vector<16x16xf32>
    %455 = arith.addf %439, %454 : vector<16x16xf32>
    %c59 = arith.constant 59 : index
    %456 = memref.load %arg3[%c59] : memref<144xf32, #tpu.memory_space<smem>>
    %457 = vector.broadcast %456 : f32 to vector<16x16xf32>
    %458 = arith.mulf %457, %367 : vector<16x16xf32>
    %459 = arith.addf %443, %458 : vector<16x16xf32>
    %c95 = arith.constant 95 : index
    %460 = memref.load %arg3[%c95] : memref<144xf32, #tpu.memory_space<smem>>
    %461 = vector.broadcast %460 : f32 to vector<16x16xf32>
    %462 = arith.mulf %461, %367 : vector<16x16xf32>
    %463 = arith.addf %447, %462 : vector<16x16xf32>
    %c131 = arith.constant 131 : index
    %464 = memref.load %arg3[%c131] : memref<144xf32, #tpu.memory_space<smem>>
    %465 = vector.broadcast %464 : f32 to vector<16x16xf32>
    %466 = arith.mulf %465, %367 : vector<16x16xf32>
    %467 = arith.addf %451, %466 : vector<16x16xf32>
    %c24 = arith.constant 24 : index
    %468 = memref.load %arg3[%c24] : memref<144xf32, #tpu.memory_space<smem>>
    %469 = vector.broadcast %468 : f32 to vector<16x16xf32>
    %470 = arith.mulf %469, %369 : vector<16x16xf32>
    %471 = arith.addf %455, %470 : vector<16x16xf32>
    %c60 = arith.constant 60 : index
    %472 = memref.load %arg3[%c60] : memref<144xf32, #tpu.memory_space<smem>>
    %473 = vector.broadcast %472 : f32 to vector<16x16xf32>
    %474 = arith.mulf %473, %369 : vector<16x16xf32>
    %475 = arith.addf %459, %474 : vector<16x16xf32>
    %c96 = arith.constant 96 : index
    %476 = memref.load %arg3[%c96] : memref<144xf32, #tpu.memory_space<smem>>
    %477 = vector.broadcast %476 : f32 to vector<16x16xf32>
    %478 = arith.mulf %477, %369 : vector<16x16xf32>
    %479 = arith.addf %463, %478 : vector<16x16xf32>
    %c132 = arith.constant 132 : index
    %480 = memref.load %arg3[%c132] : memref<144xf32, #tpu.memory_space<smem>>
    %481 = vector.broadcast %480 : f32 to vector<16x16xf32>
    %482 = arith.mulf %481, %369 : vector<16x16xf32>
    %483 = arith.addf %467, %482 : vector<16x16xf32>
    %c25 = arith.constant 25 : index
    %484 = memref.load %arg3[%c25] : memref<144xf32, #tpu.memory_space<smem>>
    %485 = vector.broadcast %484 : f32 to vector<16x16xf32>
    %486 = arith.mulf %485, %359 : vector<16x16xf32>
    %487 = arith.addf %471, %486 : vector<16x16xf32>
    %c61 = arith.constant 61 : index
    %488 = memref.load %arg3[%c61] : memref<144xf32, #tpu.memory_space<smem>>
    %489 = vector.broadcast %488 : f32 to vector<16x16xf32>
    %490 = arith.mulf %489, %359 : vector<16x16xf32>
    %491 = arith.addf %475, %490 : vector<16x16xf32>
    %c97 = arith.constant 97 : index
    %492 = memref.load %arg3[%c97] : memref<144xf32, #tpu.memory_space<smem>>
    %493 = vector.broadcast %492 : f32 to vector<16x16xf32>
    %494 = arith.mulf %493, %359 : vector<16x16xf32>
    %495 = arith.addf %479, %494 : vector<16x16xf32>
    %c133 = arith.constant 133 : index
    %496 = memref.load %arg3[%c133] : memref<144xf32, #tpu.memory_space<smem>>
    %497 = vector.broadcast %496 : f32 to vector<16x16xf32>
    %498 = arith.mulf %497, %359 : vector<16x16xf32>
    %499 = arith.addf %483, %498 : vector<16x16xf32>
    %c26 = arith.constant 26 : index
    %500 = memref.load %arg3[%c26] : memref<144xf32, #tpu.memory_space<smem>>
    %501 = vector.broadcast %500 : f32 to vector<16x16xf32>
    %502 = arith.mulf %501, %371 : vector<16x16xf32>
    %503 = arith.addf %487, %502 : vector<16x16xf32>
    %c62 = arith.constant 62 : index
    %504 = memref.load %arg3[%c62] : memref<144xf32, #tpu.memory_space<smem>>
    %505 = vector.broadcast %504 : f32 to vector<16x16xf32>
    %506 = arith.mulf %505, %371 : vector<16x16xf32>
    %507 = arith.addf %491, %506 : vector<16x16xf32>
    %c98 = arith.constant 98 : index
    %508 = memref.load %arg3[%c98] : memref<144xf32, #tpu.memory_space<smem>>
    %509 = vector.broadcast %508 : f32 to vector<16x16xf32>
    %510 = arith.mulf %509, %371 : vector<16x16xf32>
    %511 = arith.addf %495, %510 : vector<16x16xf32>
    %c134 = arith.constant 134 : index
    %512 = memref.load %arg3[%c134] : memref<144xf32, #tpu.memory_space<smem>>
    %513 = vector.broadcast %512 : f32 to vector<16x16xf32>
    %514 = arith.mulf %513, %371 : vector<16x16xf32>
    %515 = arith.addf %499, %514 : vector<16x16xf32>
    %c0_53 = arith.constant 0 : index
    %c3_54 = arith.constant 3 : index
    %c0_55 = arith.constant 0 : index
    %c0_56 = arith.constant 0 : index
    %516 = vector.load %arg1[%c0_53, %c3_54, %c0_55, %c0_56] : memref<1x4x16x16xf32, #tpu.memory_space<vmem>>, vector<1x1x16x16xf32>
    %517 = vector.shape_cast %516 : vector<1x1x16x16xf32> to vector<16x16xf32>
    %c0_57 = arith.constant 0 : index
    %c3_58 = arith.constant 3 : index
    %c0_59 = arith.constant 0 : index
    %c0_60 = arith.constant 0 : index
    %518 = vector.load %arg2[%c0_57, %c3_58, %c0_59, %c0_60] : memref<1x4x16x16xf32, #tpu.memory_space<vmem>>, vector<1x1x16x16xf32>
    %519 = vector.shape_cast %518 : vector<1x1x16x16xf32> to vector<16x16xf32>
    %520 = arith.subf %517, %519 : vector<16x16xf32>
    %521 = math.absf %520 : vector<16x16xf32>
    %c1_i32_61 = arith.constant 1 : i32
    %522 = tpu.dynamic_rotate %521 by %c1_i32_61 dim 0 : vector<16x16xf32>, i32 -> vector<16x16xf32>
    %523 = arith.select %3, %521, %522 : vector<16x16xi1>, vector<16x16xf32>
    %c15_i32_62 = arith.constant 15 : i32
    %524 = tpu.dynamic_rotate %521 by %c15_i32_62 dim 0 : vector<16x16xf32>, i32 -> vector<16x16xf32>
    %525 = arith.select %5, %521, %524 : vector<16x16xi1>, vector<16x16xf32>
    %c1_i32_63 = arith.constant 1 : i32
    %526 = tpu.dynamic_rotate %523 by %c1_i32_63 dim 1 : vector<16x16xf32>, i32 -> vector<16x16xf32>
    %527 = arith.select %7, %523, %526 : vector<16x16xi1>, vector<16x16xf32>
    %c15_i32_64 = arith.constant 15 : i32
    %528 = tpu.dynamic_rotate %523 by %c15_i32_64 dim 1 : vector<16x16xf32>, i32 -> vector<16x16xf32>
    %529 = arith.select %9, %523, %528 : vector<16x16xi1>, vector<16x16xf32>
    %c1_i32_65 = arith.constant 1 : i32
    %530 = tpu.dynamic_rotate %521 by %c1_i32_65 dim 1 : vector<16x16xf32>, i32 -> vector<16x16xf32>
    %531 = arith.select %7, %521, %530 : vector<16x16xi1>, vector<16x16xf32>
    %c15_i32_66 = arith.constant 15 : i32
    %532 = tpu.dynamic_rotate %521 by %c15_i32_66 dim 1 : vector<16x16xf32>, i32 -> vector<16x16xf32>
    %533 = arith.select %9, %521, %532 : vector<16x16xi1>, vector<16x16xf32>
    %c1_i32_67 = arith.constant 1 : i32
    %534 = tpu.dynamic_rotate %525 by %c1_i32_67 dim 1 : vector<16x16xf32>, i32 -> vector<16x16xf32>
    %535 = arith.select %7, %525, %534 : vector<16x16xi1>, vector<16x16xf32>
    %c15_i32_68 = arith.constant 15 : i32
    %536 = tpu.dynamic_rotate %525 by %c15_i32_68 dim 1 : vector<16x16xf32>, i32 -> vector<16x16xf32>
    %537 = arith.select %9, %525, %536 : vector<16x16xi1>, vector<16x16xf32>
    %c27 = arith.constant 27 : index
    %538 = memref.load %arg3[%c27] : memref<144xf32, #tpu.memory_space<smem>>
    %539 = vector.broadcast %538 : f32 to vector<16x16xf32>
    %540 = arith.mulf %539, %527 : vector<16x16xf32>
    %541 = arith.addf %503, %540 : vector<16x16xf32>
    %c63 = arith.constant 63 : index
    %542 = memref.load %arg3[%c63] : memref<144xf32, #tpu.memory_space<smem>>
    %543 = vector.broadcast %542 : f32 to vector<16x16xf32>
    %544 = arith.mulf %543, %527 : vector<16x16xf32>
    %545 = arith.addf %507, %544 : vector<16x16xf32>
    %c99 = arith.constant 99 : index
    %546 = memref.load %arg3[%c99] : memref<144xf32, #tpu.memory_space<smem>>
    %547 = vector.broadcast %546 : f32 to vector<16x16xf32>
    %548 = arith.mulf %547, %527 : vector<16x16xf32>
    %549 = arith.addf %511, %548 : vector<16x16xf32>
    %c135 = arith.constant 135 : index
    %550 = memref.load %arg3[%c135] : memref<144xf32, #tpu.memory_space<smem>>
    %551 = vector.broadcast %550 : f32 to vector<16x16xf32>
    %552 = arith.mulf %551, %527 : vector<16x16xf32>
    %553 = arith.addf %515, %552 : vector<16x16xf32>
    %c28 = arith.constant 28 : index
    %554 = memref.load %arg3[%c28] : memref<144xf32, #tpu.memory_space<smem>>
    %555 = vector.broadcast %554 : f32 to vector<16x16xf32>
    %556 = arith.mulf %555, %523 : vector<16x16xf32>
    %557 = arith.addf %541, %556 : vector<16x16xf32>
    %c64 = arith.constant 64 : index
    %558 = memref.load %arg3[%c64] : memref<144xf32, #tpu.memory_space<smem>>
    %559 = vector.broadcast %558 : f32 to vector<16x16xf32>
    %560 = arith.mulf %559, %523 : vector<16x16xf32>
    %561 = arith.addf %545, %560 : vector<16x16xf32>
    %c100 = arith.constant 100 : index
    %562 = memref.load %arg3[%c100] : memref<144xf32, #tpu.memory_space<smem>>
    %563 = vector.broadcast %562 : f32 to vector<16x16xf32>
    %564 = arith.mulf %563, %523 : vector<16x16xf32>
    %565 = arith.addf %549, %564 : vector<16x16xf32>
    %c136 = arith.constant 136 : index
    %566 = memref.load %arg3[%c136] : memref<144xf32, #tpu.memory_space<smem>>
    %567 = vector.broadcast %566 : f32 to vector<16x16xf32>
    %568 = arith.mulf %567, %523 : vector<16x16xf32>
    %569 = arith.addf %553, %568 : vector<16x16xf32>
    %c29 = arith.constant 29 : index
    %570 = memref.load %arg3[%c29] : memref<144xf32, #tpu.memory_space<smem>>
    %571 = vector.broadcast %570 : f32 to vector<16x16xf32>
    %572 = arith.mulf %571, %529 : vector<16x16xf32>
    %573 = arith.addf %557, %572 : vector<16x16xf32>
    %c65 = arith.constant 65 : index
    %574 = memref.load %arg3[%c65] : memref<144xf32, #tpu.memory_space<smem>>
    %575 = vector.broadcast %574 : f32 to vector<16x16xf32>
    %576 = arith.mulf %575, %529 : vector<16x16xf32>
    %577 = arith.addf %561, %576 : vector<16x16xf32>
    %c101 = arith.constant 101 : index
    %578 = memref.load %arg3[%c101] : memref<144xf32, #tpu.memory_space<smem>>
    %579 = vector.broadcast %578 : f32 to vector<16x16xf32>
    %580 = arith.mulf %579, %529 : vector<16x16xf32>
    %581 = arith.addf %565, %580 : vector<16x16xf32>
    %c137 = arith.constant 137 : index
    %582 = memref.load %arg3[%c137] : memref<144xf32, #tpu.memory_space<smem>>
    %583 = vector.broadcast %582 : f32 to vector<16x16xf32>
    %584 = arith.mulf %583, %529 : vector<16x16xf32>
    %585 = arith.addf %569, %584 : vector<16x16xf32>
    %c30 = arith.constant 30 : index
    %586 = memref.load %arg3[%c30] : memref<144xf32, #tpu.memory_space<smem>>
    %587 = vector.broadcast %586 : f32 to vector<16x16xf32>
    %588 = arith.mulf %587, %531 : vector<16x16xf32>
    %589 = arith.addf %573, %588 : vector<16x16xf32>
    %c66 = arith.constant 66 : index
    %590 = memref.load %arg3[%c66] : memref<144xf32, #tpu.memory_space<smem>>
    %591 = vector.broadcast %590 : f32 to vector<16x16xf32>
    %592 = arith.mulf %591, %531 : vector<16x16xf32>
    %593 = arith.addf %577, %592 : vector<16x16xf32>
    %c102 = arith.constant 102 : index
    %594 = memref.load %arg3[%c102] : memref<144xf32, #tpu.memory_space<smem>>
    %595 = vector.broadcast %594 : f32 to vector<16x16xf32>
    %596 = arith.mulf %595, %531 : vector<16x16xf32>
    %597 = arith.addf %581, %596 : vector<16x16xf32>
    %c138 = arith.constant 138 : index
    %598 = memref.load %arg3[%c138] : memref<144xf32, #tpu.memory_space<smem>>
    %599 = vector.broadcast %598 : f32 to vector<16x16xf32>
    %600 = arith.mulf %599, %531 : vector<16x16xf32>
    %601 = arith.addf %585, %600 : vector<16x16xf32>
    %c31 = arith.constant 31 : index
    %602 = memref.load %arg3[%c31] : memref<144xf32, #tpu.memory_space<smem>>
    %603 = vector.broadcast %602 : f32 to vector<16x16xf32>
    %604 = arith.mulf %603, %521 : vector<16x16xf32>
    %605 = arith.addf %589, %604 : vector<16x16xf32>
    %c67 = arith.constant 67 : index
    %606 = memref.load %arg3[%c67] : memref<144xf32, #tpu.memory_space<smem>>
    %607 = vector.broadcast %606 : f32 to vector<16x16xf32>
    %608 = arith.mulf %607, %521 : vector<16x16xf32>
    %609 = arith.addf %593, %608 : vector<16x16xf32>
    %c103 = arith.constant 103 : index
    %610 = memref.load %arg3[%c103] : memref<144xf32, #tpu.memory_space<smem>>
    %611 = vector.broadcast %610 : f32 to vector<16x16xf32>
    %612 = arith.mulf %611, %521 : vector<16x16xf32>
    %613 = arith.addf %597, %612 : vector<16x16xf32>
    %c139 = arith.constant 139 : index
    %614 = memref.load %arg3[%c139] : memref<144xf32, #tpu.memory_space<smem>>
    %615 = vector.broadcast %614 : f32 to vector<16x16xf32>
    %616 = arith.mulf %615, %521 : vector<16x16xf32>
    %617 = arith.addf %601, %616 : vector<16x16xf32>
    %c32 = arith.constant 32 : index
    %618 = memref.load %arg3[%c32] : memref<144xf32, #tpu.memory_space<smem>>
    %619 = vector.broadcast %618 : f32 to vector<16x16xf32>
    %620 = arith.mulf %619, %533 : vector<16x16xf32>
    %621 = arith.addf %605, %620 : vector<16x16xf32>
    %c68 = arith.constant 68 : index
    %622 = memref.load %arg3[%c68] : memref<144xf32, #tpu.memory_space<smem>>
    %623 = vector.broadcast %622 : f32 to vector<16x16xf32>
    %624 = arith.mulf %623, %533 : vector<16x16xf32>
    %625 = arith.addf %609, %624 : vector<16x16xf32>
    %c104 = arith.constant 104 : index
    %626 = memref.load %arg3[%c104] : memref<144xf32, #tpu.memory_space<smem>>
    %627 = vector.broadcast %626 : f32 to vector<16x16xf32>
    %628 = arith.mulf %627, %533 : vector<16x16xf32>
    %629 = arith.addf %613, %628 : vector<16x16xf32>
    %c140 = arith.constant 140 : index
    %630 = memref.load %arg3[%c140] : memref<144xf32, #tpu.memory_space<smem>>
    %631 = vector.broadcast %630 : f32 to vector<16x16xf32>
    %632 = arith.mulf %631, %533 : vector<16x16xf32>
    %633 = arith.addf %617, %632 : vector<16x16xf32>
    %c33 = arith.constant 33 : index
    %634 = memref.load %arg3[%c33] : memref<144xf32, #tpu.memory_space<smem>>
    %635 = vector.broadcast %634 : f32 to vector<16x16xf32>
    %636 = arith.mulf %635, %535 : vector<16x16xf32>
    %637 = arith.addf %621, %636 : vector<16x16xf32>
    %c69 = arith.constant 69 : index
    %638 = memref.load %arg3[%c69] : memref<144xf32, #tpu.memory_space<smem>>
    %639 = vector.broadcast %638 : f32 to vector<16x16xf32>
    %640 = arith.mulf %639, %535 : vector<16x16xf32>
    %641 = arith.addf %625, %640 : vector<16x16xf32>
    %c105 = arith.constant 105 : index
    %642 = memref.load %arg3[%c105] : memref<144xf32, #tpu.memory_space<smem>>
    %643 = vector.broadcast %642 : f32 to vector<16x16xf32>
    %644 = arith.mulf %643, %535 : vector<16x16xf32>
    %645 = arith.addf %629, %644 : vector<16x16xf32>
    %c141 = arith.constant 141 : index
    %646 = memref.load %arg3[%c141] : memref<144xf32, #tpu.memory_space<smem>>
    %647 = vector.broadcast %646 : f32 to vector<16x16xf32>
    %648 = arith.mulf %647, %535 : vector<16x16xf32>
    %649 = arith.addf %633, %648 : vector<16x16xf32>
    %c34 = arith.constant 34 : index
    %650 = memref.load %arg3[%c34] : memref<144xf32, #tpu.memory_space<smem>>
    %651 = vector.broadcast %650 : f32 to vector<16x16xf32>
    %652 = arith.mulf %651, %525 : vector<16x16xf32>
    %653 = arith.addf %637, %652 : vector<16x16xf32>
    %c70 = arith.constant 70 : index
    %654 = memref.load %arg3[%c70] : memref<144xf32, #tpu.memory_space<smem>>
    %655 = vector.broadcast %654 : f32 to vector<16x16xf32>
    %656 = arith.mulf %655, %525 : vector<16x16xf32>
    %657 = arith.addf %641, %656 : vector<16x16xf32>
    %c106 = arith.constant 106 : index
    %658 = memref.load %arg3[%c106] : memref<144xf32, #tpu.memory_space<smem>>
    %659 = vector.broadcast %658 : f32 to vector<16x16xf32>
    %660 = arith.mulf %659, %525 : vector<16x16xf32>
    %661 = arith.addf %645, %660 : vector<16x16xf32>
    %c142 = arith.constant 142 : index
    %662 = memref.load %arg3[%c142] : memref<144xf32, #tpu.memory_space<smem>>
    %663 = vector.broadcast %662 : f32 to vector<16x16xf32>
    %664 = arith.mulf %663, %525 : vector<16x16xf32>
    %665 = arith.addf %649, %664 : vector<16x16xf32>
    %c35 = arith.constant 35 : index
    %666 = memref.load %arg3[%c35] : memref<144xf32, #tpu.memory_space<smem>>
    %667 = vector.broadcast %666 : f32 to vector<16x16xf32>
    %668 = arith.mulf %667, %537 : vector<16x16xf32>
    %669 = arith.addf %653, %668 : vector<16x16xf32>
    %c71 = arith.constant 71 : index
    %670 = memref.load %arg3[%c71] : memref<144xf32, #tpu.memory_space<smem>>
    %671 = vector.broadcast %670 : f32 to vector<16x16xf32>
    %672 = arith.mulf %671, %537 : vector<16x16xf32>
    %673 = arith.addf %657, %672 : vector<16x16xf32>
    %c107 = arith.constant 107 : index
    %674 = memref.load %arg3[%c107] : memref<144xf32, #tpu.memory_space<smem>>
    %675 = vector.broadcast %674 : f32 to vector<16x16xf32>
    %676 = arith.mulf %675, %537 : vector<16x16xf32>
    %677 = arith.addf %661, %676 : vector<16x16xf32>
    %c143 = arith.constant 143 : index
    %678 = memref.load %arg3[%c143] : memref<144xf32, #tpu.memory_space<smem>>
    %679 = vector.broadcast %678 : f32 to vector<16x16xf32>
    %680 = arith.mulf %679, %537 : vector<16x16xf32>
    %681 = arith.addf %665, %680 : vector<16x16xf32>
    %cst = arith.constant 0.000000e+00 : f32
    %682 = vector.broadcast %cst : f32 to vector<16x16xf32>
    %683 = arith.maximumf %669, %682 : vector<16x16xf32>
    %cst_69 = arith.constant 0.000000e+00 : f32
    %684 = vector.broadcast %cst_69 : f32 to vector<16x16xf32>
    %685 = arith.maximumf %673, %684 : vector<16x16xf32>
    %cst_70 = arith.constant 0.000000e+00 : f32
    %686 = vector.broadcast %cst_70 : f32 to vector<16x16xf32>
    %687 = arith.maximumf %677, %686 : vector<16x16xf32>
    %cst_71 = arith.constant 0.000000e+00 : f32
    %688 = vector.broadcast %cst_71 : f32 to vector<16x16xf32>
    %689 = arith.maximumf %681, %688 : vector<16x16xf32>
    %c0_72 = arith.constant 0 : index
    %690 = memref.load %arg6[%c0_72] : memref<1xf32, #tpu.memory_space<smem>>
    %691 = vector.broadcast %690 : f32 to vector<16x16xf32>
    %c1_i32_73 = arith.constant 1 : i32
    %692 = tpu.dynamic_rotate %683 by %c1_i32_73 dim 0 : vector<16x16xf32>, i32 -> vector<16x16xf32>
    %693 = arith.select %3, %683, %692 : vector<16x16xi1>, vector<16x16xf32>
    %c15_i32_74 = arith.constant 15 : i32
    %694 = tpu.dynamic_rotate %683 by %c15_i32_74 dim 0 : vector<16x16xf32>, i32 -> vector<16x16xf32>
    %695 = arith.select %5, %683, %694 : vector<16x16xi1>, vector<16x16xf32>
    %c1_i32_75 = arith.constant 1 : i32
    %696 = tpu.dynamic_rotate %693 by %c1_i32_75 dim 1 : vector<16x16xf32>, i32 -> vector<16x16xf32>
    %697 = arith.select %7, %693, %696 : vector<16x16xi1>, vector<16x16xf32>
    %c15_i32_76 = arith.constant 15 : i32
    %698 = tpu.dynamic_rotate %693 by %c15_i32_76 dim 1 : vector<16x16xf32>, i32 -> vector<16x16xf32>
    %699 = arith.select %9, %693, %698 : vector<16x16xi1>, vector<16x16xf32>
    %c1_i32_77 = arith.constant 1 : i32
    %700 = tpu.dynamic_rotate %683 by %c1_i32_77 dim 1 : vector<16x16xf32>, i32 -> vector<16x16xf32>
    %701 = arith.select %7, %683, %700 : vector<16x16xi1>, vector<16x16xf32>
    %c15_i32_78 = arith.constant 15 : i32
    %702 = tpu.dynamic_rotate %683 by %c15_i32_78 dim 1 : vector<16x16xf32>, i32 -> vector<16x16xf32>
    %703 = arith.select %9, %683, %702 : vector<16x16xi1>, vector<16x16xf32>
    %c1_i32_79 = arith.constant 1 : i32
    %704 = tpu.dynamic_rotate %695 by %c1_i32_79 dim 1 : vector<16x16xf32>, i32 -> vector<16x16xf32>
    %705 = arith.select %7, %695, %704 : vector<16x16xi1>, vector<16x16xf32>
    %c15_i32_80 = arith.constant 15 : i32
    %706 = tpu.dynamic_rotate %695 by %c15_i32_80 dim 1 : vector<16x16xf32>, i32 -> vector<16x16xf32>
    %707 = arith.select %9, %695, %706 : vector<16x16xi1>, vector<16x16xf32>
    %c0_81 = arith.constant 0 : index
    %708 = memref.load %arg5[%c0_81] : memref<36xf32, #tpu.memory_space<smem>>
    %709 = vector.broadcast %708 : f32 to vector<16x16xf32>
    %710 = arith.mulf %709, %697 : vector<16x16xf32>
    %711 = arith.addf %691, %710 : vector<16x16xf32>
    %c1_82 = arith.constant 1 : index
    %712 = memref.load %arg5[%c1_82] : memref<36xf32, #tpu.memory_space<smem>>
    %713 = vector.broadcast %712 : f32 to vector<16x16xf32>
    %714 = arith.mulf %713, %693 : vector<16x16xf32>
    %715 = arith.addf %711, %714 : vector<16x16xf32>
    %c2_83 = arith.constant 2 : index
    %716 = memref.load %arg5[%c2_83] : memref<36xf32, #tpu.memory_space<smem>>
    %717 = vector.broadcast %716 : f32 to vector<16x16xf32>
    %718 = arith.mulf %717, %699 : vector<16x16xf32>
    %719 = arith.addf %715, %718 : vector<16x16xf32>
    %c3_84 = arith.constant 3 : index
    %720 = memref.load %arg5[%c3_84] : memref<36xf32, #tpu.memory_space<smem>>
    %721 = vector.broadcast %720 : f32 to vector<16x16xf32>
    %722 = arith.mulf %721, %701 : vector<16x16xf32>
    %723 = arith.addf %719, %722 : vector<16x16xf32>
    %c4_85 = arith.constant 4 : index
    %724 = memref.load %arg5[%c4_85] : memref<36xf32, #tpu.memory_space<smem>>
    %725 = vector.broadcast %724 : f32 to vector<16x16xf32>
    %726 = arith.mulf %725, %683 : vector<16x16xf32>
    %727 = arith.addf %723, %726 : vector<16x16xf32>
    %c5_86 = arith.constant 5 : index
    %728 = memref.load %arg5[%c5_86] : memref<36xf32, #tpu.memory_space<smem>>
    %729 = vector.broadcast %728 : f32 to vector<16x16xf32>
    %730 = arith.mulf %729, %703 : vector<16x16xf32>
    %731 = arith.addf %727, %730 : vector<16x16xf32>
    %c6_87 = arith.constant 6 : index
    %732 = memref.load %arg5[%c6_87] : memref<36xf32, #tpu.memory_space<smem>>
    %733 = vector.broadcast %732 : f32 to vector<16x16xf32>
    %734 = arith.mulf %733, %705 : vector<16x16xf32>
    %735 = arith.addf %731, %734 : vector<16x16xf32>
    %c7_88 = arith.constant 7 : index
    %736 = memref.load %arg5[%c7_88] : memref<36xf32, #tpu.memory_space<smem>>
    %737 = vector.broadcast %736 : f32 to vector<16x16xf32>
    %738 = arith.mulf %737, %695 : vector<16x16xf32>
    %739 = arith.addf %735, %738 : vector<16x16xf32>
    %c8_89 = arith.constant 8 : index
    %740 = memref.load %arg5[%c8_89] : memref<36xf32, #tpu.memory_space<smem>>
    %741 = vector.broadcast %740 : f32 to vector<16x16xf32>
    %742 = arith.mulf %741, %707 : vector<16x16xf32>
    %743 = arith.addf %739, %742 : vector<16x16xf32>
    %c1_i32_90 = arith.constant 1 : i32
    %744 = tpu.dynamic_rotate %685 by %c1_i32_90 dim 0 : vector<16x16xf32>, i32 -> vector<16x16xf32>
    %745 = arith.select %3, %685, %744 : vector<16x16xi1>, vector<16x16xf32>
    %c15_i32_91 = arith.constant 15 : i32
    %746 = tpu.dynamic_rotate %685 by %c15_i32_91 dim 0 : vector<16x16xf32>, i32 -> vector<16x16xf32>
    %747 = arith.select %5, %685, %746 : vector<16x16xi1>, vector<16x16xf32>
    %c1_i32_92 = arith.constant 1 : i32
    %748 = tpu.dynamic_rotate %745 by %c1_i32_92 dim 1 : vector<16x16xf32>, i32 -> vector<16x16xf32>
    %749 = arith.select %7, %745, %748 : vector<16x16xi1>, vector<16x16xf32>
    %c15_i32_93 = arith.constant 15 : i32
    %750 = tpu.dynamic_rotate %745 by %c15_i32_93 dim 1 : vector<16x16xf32>, i32 -> vector<16x16xf32>
    %751 = arith.select %9, %745, %750 : vector<16x16xi1>, vector<16x16xf32>
    %c1_i32_94 = arith.constant 1 : i32
    %752 = tpu.dynamic_rotate %685 by %c1_i32_94 dim 1 : vector<16x16xf32>, i32 -> vector<16x16xf32>
    %753 = arith.select %7, %685, %752 : vector<16x16xi1>, vector<16x16xf32>
    %c15_i32_95 = arith.constant 15 : i32
    %754 = tpu.dynamic_rotate %685 by %c15_i32_95 dim 1 : vector<16x16xf32>, i32 -> vector<16x16xf32>
    %755 = arith.select %9, %685, %754 : vector<16x16xi1>, vector<16x16xf32>
    %c1_i32_96 = arith.constant 1 : i32
    %756 = tpu.dynamic_rotate %747 by %c1_i32_96 dim 1 : vector<16x16xf32>, i32 -> vector<16x16xf32>
    %757 = arith.select %7, %747, %756 : vector<16x16xi1>, vector<16x16xf32>
    %c15_i32_97 = arith.constant 15 : i32
    %758 = tpu.dynamic_rotate %747 by %c15_i32_97 dim 1 : vector<16x16xf32>, i32 -> vector<16x16xf32>
    %759 = arith.select %9, %747, %758 : vector<16x16xi1>, vector<16x16xf32>
    %c9_98 = arith.constant 9 : index
    %760 = memref.load %arg5[%c9_98] : memref<36xf32, #tpu.memory_space<smem>>
    %761 = vector.broadcast %760 : f32 to vector<16x16xf32>
    %762 = arith.mulf %761, %749 : vector<16x16xf32>
    %763 = arith.addf %743, %762 : vector<16x16xf32>
    %c10_99 = arith.constant 10 : index
    %764 = memref.load %arg5[%c10_99] : memref<36xf32, #tpu.memory_space<smem>>
    %765 = vector.broadcast %764 : f32 to vector<16x16xf32>
    %766 = arith.mulf %765, %745 : vector<16x16xf32>
    %767 = arith.addf %763, %766 : vector<16x16xf32>
    %c11_100 = arith.constant 11 : index
    %768 = memref.load %arg5[%c11_100] : memref<36xf32, #tpu.memory_space<smem>>
    %769 = vector.broadcast %768 : f32 to vector<16x16xf32>
    %770 = arith.mulf %769, %751 : vector<16x16xf32>
    %771 = arith.addf %767, %770 : vector<16x16xf32>
    %c12_101 = arith.constant 12 : index
    %772 = memref.load %arg5[%c12_101] : memref<36xf32, #tpu.memory_space<smem>>
    %773 = vector.broadcast %772 : f32 to vector<16x16xf32>
    %774 = arith.mulf %773, %753 : vector<16x16xf32>
    %775 = arith.addf %771, %774 : vector<16x16xf32>
    %c13_102 = arith.constant 13 : index
    %776 = memref.load %arg5[%c13_102] : memref<36xf32, #tpu.memory_space<smem>>
    %777 = vector.broadcast %776 : f32 to vector<16x16xf32>
    %778 = arith.mulf %777, %685 : vector<16x16xf32>
    %779 = arith.addf %775, %778 : vector<16x16xf32>
    %c14_103 = arith.constant 14 : index
    %780 = memref.load %arg5[%c14_103] : memref<36xf32, #tpu.memory_space<smem>>
    %781 = vector.broadcast %780 : f32 to vector<16x16xf32>
    %782 = arith.mulf %781, %755 : vector<16x16xf32>
    %783 = arith.addf %779, %782 : vector<16x16xf32>
    %c15_104 = arith.constant 15 : index
    %784 = memref.load %arg5[%c15_104] : memref<36xf32, #tpu.memory_space<smem>>
    %785 = vector.broadcast %784 : f32 to vector<16x16xf32>
    %786 = arith.mulf %785, %757 : vector<16x16xf32>
    %787 = arith.addf %783, %786 : vector<16x16xf32>
    %c16_105 = arith.constant 16 : index
    %788 = memref.load %arg5[%c16_105] : memref<36xf32, #tpu.memory_space<smem>>
    %789 = vector.broadcast %788 : f32 to vector<16x16xf32>
    %790 = arith.mulf %789, %747 : vector<16x16xf32>
    %791 = arith.addf %787, %790 : vector<16x16xf32>
    %c17_106 = arith.constant 17 : index
    %792 = memref.load %arg5[%c17_106] : memref<36xf32, #tpu.memory_space<smem>>
    %793 = vector.broadcast %792 : f32 to vector<16x16xf32>
    %794 = arith.mulf %793, %759 : vector<16x16xf32>
    %795 = arith.addf %791, %794 : vector<16x16xf32>
    %c1_i32_107 = arith.constant 1 : i32
    %796 = tpu.dynamic_rotate %687 by %c1_i32_107 dim 0 : vector<16x16xf32>, i32 -> vector<16x16xf32>
    %797 = arith.select %3, %687, %796 : vector<16x16xi1>, vector<16x16xf32>
    %c15_i32_108 = arith.constant 15 : i32
    %798 = tpu.dynamic_rotate %687 by %c15_i32_108 dim 0 : vector<16x16xf32>, i32 -> vector<16x16xf32>
    %799 = arith.select %5, %687, %798 : vector<16x16xi1>, vector<16x16xf32>
    %c1_i32_109 = arith.constant 1 : i32
    %800 = tpu.dynamic_rotate %797 by %c1_i32_109 dim 1 : vector<16x16xf32>, i32 -> vector<16x16xf32>
    %801 = arith.select %7, %797, %800 : vector<16x16xi1>, vector<16x16xf32>
    %c15_i32_110 = arith.constant 15 : i32
    %802 = tpu.dynamic_rotate %797 by %c15_i32_110 dim 1 : vector<16x16xf32>, i32 -> vector<16x16xf32>
    %803 = arith.select %9, %797, %802 : vector<16x16xi1>, vector<16x16xf32>
    %c1_i32_111 = arith.constant 1 : i32
    %804 = tpu.dynamic_rotate %687 by %c1_i32_111 dim 1 : vector<16x16xf32>, i32 -> vector<16x16xf32>
    %805 = arith.select %7, %687, %804 : vector<16x16xi1>, vector<16x16xf32>
    %c15_i32_112 = arith.constant 15 : i32
    %806 = tpu.dynamic_rotate %687 by %c15_i32_112 dim 1 : vector<16x16xf32>, i32 -> vector<16x16xf32>
    %807 = arith.select %9, %687, %806 : vector<16x16xi1>, vector<16x16xf32>
    %c1_i32_113 = arith.constant 1 : i32
    %808 = tpu.dynamic_rotate %799 by %c1_i32_113 dim 1 : vector<16x16xf32>, i32 -> vector<16x16xf32>
    %809 = arith.select %7, %799, %808 : vector<16x16xi1>, vector<16x16xf32>
    %c15_i32_114 = arith.constant 15 : i32
    %810 = tpu.dynamic_rotate %799 by %c15_i32_114 dim 1 : vector<16x16xf32>, i32 -> vector<16x16xf32>
    %811 = arith.select %9, %799, %810 : vector<16x16xi1>, vector<16x16xf32>
    %c18_115 = arith.constant 18 : index
    %812 = memref.load %arg5[%c18_115] : memref<36xf32, #tpu.memory_space<smem>>
    %813 = vector.broadcast %812 : f32 to vector<16x16xf32>
    %814 = arith.mulf %813, %801 : vector<16x16xf32>
    %815 = arith.addf %795, %814 : vector<16x16xf32>
    %c19_116 = arith.constant 19 : index
    %816 = memref.load %arg5[%c19_116] : memref<36xf32, #tpu.memory_space<smem>>
    %817 = vector.broadcast %816 : f32 to vector<16x16xf32>
    %818 = arith.mulf %817, %797 : vector<16x16xf32>
    %819 = arith.addf %815, %818 : vector<16x16xf32>
    %c20_117 = arith.constant 20 : index
    %820 = memref.load %arg5[%c20_117] : memref<36xf32, #tpu.memory_space<smem>>
    %821 = vector.broadcast %820 : f32 to vector<16x16xf32>
    %822 = arith.mulf %821, %803 : vector<16x16xf32>
    %823 = arith.addf %819, %822 : vector<16x16xf32>
    %c21_118 = arith.constant 21 : index
    %824 = memref.load %arg5[%c21_118] : memref<36xf32, #tpu.memory_space<smem>>
    %825 = vector.broadcast %824 : f32 to vector<16x16xf32>
    %826 = arith.mulf %825, %805 : vector<16x16xf32>
    %827 = arith.addf %823, %826 : vector<16x16xf32>
    %c22_119 = arith.constant 22 : index
    %828 = memref.load %arg5[%c22_119] : memref<36xf32, #tpu.memory_space<smem>>
    %829 = vector.broadcast %828 : f32 to vector<16x16xf32>
    %830 = arith.mulf %829, %687 : vector<16x16xf32>
    %831 = arith.addf %827, %830 : vector<16x16xf32>
    %c23_120 = arith.constant 23 : index
    %832 = memref.load %arg5[%c23_120] : memref<36xf32, #tpu.memory_space<smem>>
    %833 = vector.broadcast %832 : f32 to vector<16x16xf32>
    %834 = arith.mulf %833, %807 : vector<16x16xf32>
    %835 = arith.addf %831, %834 : vector<16x16xf32>
    %c24_121 = arith.constant 24 : index
    %836 = memref.load %arg5[%c24_121] : memref<36xf32, #tpu.memory_space<smem>>
    %837 = vector.broadcast %836 : f32 to vector<16x16xf32>
    %838 = arith.mulf %837, %809 : vector<16x16xf32>
    %839 = arith.addf %835, %838 : vector<16x16xf32>
    %c25_122 = arith.constant 25 : index
    %840 = memref.load %arg5[%c25_122] : memref<36xf32, #tpu.memory_space<smem>>
    %841 = vector.broadcast %840 : f32 to vector<16x16xf32>
    %842 = arith.mulf %841, %799 : vector<16x16xf32>
    %843 = arith.addf %839, %842 : vector<16x16xf32>
    %c26_123 = arith.constant 26 : index
    %844 = memref.load %arg5[%c26_123] : memref<36xf32, #tpu.memory_space<smem>>
    %845 = vector.broadcast %844 : f32 to vector<16x16xf32>
    %846 = arith.mulf %845, %811 : vector<16x16xf32>
    %847 = arith.addf %843, %846 : vector<16x16xf32>
    %c1_i32_124 = arith.constant 1 : i32
    %848 = tpu.dynamic_rotate %689 by %c1_i32_124 dim 0 : vector<16x16xf32>, i32 -> vector<16x16xf32>
    %849 = arith.select %3, %689, %848 : vector<16x16xi1>, vector<16x16xf32>
    %c15_i32_125 = arith.constant 15 : i32
    %850 = tpu.dynamic_rotate %689 by %c15_i32_125 dim 0 : vector<16x16xf32>, i32 -> vector<16x16xf32>
    %851 = arith.select %5, %689, %850 : vector<16x16xi1>, vector<16x16xf32>
    %c1_i32_126 = arith.constant 1 : i32
    %852 = tpu.dynamic_rotate %849 by %c1_i32_126 dim 1 : vector<16x16xf32>, i32 -> vector<16x16xf32>
    %853 = arith.select %7, %849, %852 : vector<16x16xi1>, vector<16x16xf32>
    %c15_i32_127 = arith.constant 15 : i32
    %854 = tpu.dynamic_rotate %849 by %c15_i32_127 dim 1 : vector<16x16xf32>, i32 -> vector<16x16xf32>
    %855 = arith.select %9, %849, %854 : vector<16x16xi1>, vector<16x16xf32>
    %c1_i32_128 = arith.constant 1 : i32
    %856 = tpu.dynamic_rotate %689 by %c1_i32_128 dim 1 : vector<16x16xf32>, i32 -> vector<16x16xf32>
    %857 = arith.select %7, %689, %856 : vector<16x16xi1>, vector<16x16xf32>
    %c15_i32_129 = arith.constant 15 : i32
    %858 = tpu.dynamic_rotate %689 by %c15_i32_129 dim 1 : vector<16x16xf32>, i32 -> vector<16x16xf32>
    %859 = arith.select %9, %689, %858 : vector<16x16xi1>, vector<16x16xf32>
    %c1_i32_130 = arith.constant 1 : i32
    %860 = tpu.dynamic_rotate %851 by %c1_i32_130 dim 1 : vector<16x16xf32>, i32 -> vector<16x16xf32>
    %861 = arith.select %7, %851, %860 : vector<16x16xi1>, vector<16x16xf32>
    %c15_i32_131 = arith.constant 15 : i32
    %862 = tpu.dynamic_rotate %851 by %c15_i32_131 dim 1 : vector<16x16xf32>, i32 -> vector<16x16xf32>
    %863 = arith.select %9, %851, %862 : vector<16x16xi1>, vector<16x16xf32>
    %c27_132 = arith.constant 27 : index
    %864 = memref.load %arg5[%c27_132] : memref<36xf32, #tpu.memory_space<smem>>
    %865 = vector.broadcast %864 : f32 to vector<16x16xf32>
    %866 = arith.mulf %865, %853 : vector<16x16xf32>
    %867 = arith.addf %847, %866 : vector<16x16xf32>
    %c28_133 = arith.constant 28 : index
    %868 = memref.load %arg5[%c28_133] : memref<36xf32, #tpu.memory_space<smem>>
    %869 = vector.broadcast %868 : f32 to vector<16x16xf32>
    %870 = arith.mulf %869, %849 : vector<16x16xf32>
    %871 = arith.addf %867, %870 : vector<16x16xf32>
    %c29_134 = arith.constant 29 : index
    %872 = memref.load %arg5[%c29_134] : memref<36xf32, #tpu.memory_space<smem>>
    %873 = vector.broadcast %872 : f32 to vector<16x16xf32>
    %874 = arith.mulf %873, %855 : vector<16x16xf32>
    %875 = arith.addf %871, %874 : vector<16x16xf32>
    %c30_135 = arith.constant 30 : index
    %876 = memref.load %arg5[%c30_135] : memref<36xf32, #tpu.memory_space<smem>>
    %877 = vector.broadcast %876 : f32 to vector<16x16xf32>
    %878 = arith.mulf %877, %857 : vector<16x16xf32>
    %879 = arith.addf %875, %878 : vector<16x16xf32>
    %c31_136 = arith.constant 31 : index
    %880 = memref.load %arg5[%c31_136] : memref<36xf32, #tpu.memory_space<smem>>
    %881 = vector.broadcast %880 : f32 to vector<16x16xf32>
    %882 = arith.mulf %881, %689 : vector<16x16xf32>
    %883 = arith.addf %879, %882 : vector<16x16xf32>
    %c32_137 = arith.constant 32 : index
    %884 = memref.load %arg5[%c32_137] : memref<36xf32, #tpu.memory_space<smem>>
    %885 = vector.broadcast %884 : f32 to vector<16x16xf32>
    %886 = arith.mulf %885, %859 : vector<16x16xf32>
    %887 = arith.addf %883, %886 : vector<16x16xf32>
    %c33_138 = arith.constant 33 : index
    %888 = memref.load %arg5[%c33_138] : memref<36xf32, #tpu.memory_space<smem>>
    %889 = vector.broadcast %888 : f32 to vector<16x16xf32>
    %890 = arith.mulf %889, %861 : vector<16x16xf32>
    %891 = arith.addf %887, %890 : vector<16x16xf32>
    %c34_139 = arith.constant 34 : index
    %892 = memref.load %arg5[%c34_139] : memref<36xf32, #tpu.memory_space<smem>>
    %893 = vector.broadcast %892 : f32 to vector<16x16xf32>
    %894 = arith.mulf %893, %851 : vector<16x16xf32>
    %895 = arith.addf %891, %894 : vector<16x16xf32>
    %c35_140 = arith.constant 35 : index
    %896 = memref.load %arg5[%c35_140] : memref<36xf32, #tpu.memory_space<smem>>
    %897 = vector.broadcast %896 : f32 to vector<16x16xf32>
    %898 = arith.mulf %897, %863 : vector<16x16xf32>
    %899 = arith.addf %895, %898 : vector<16x16xf32>
    %900 = math.tanh %899 : vector<16x16xf32>
    %c0_141 = arith.constant 0 : index
    %c0_142 = arith.constant 0 : index
    %c0_143 = arith.constant 0 : index
    %c0_144 = arith.constant 0 : index
    %901 = vector.load %arg7[%c0_141, %c0_142, %c0_143, %c0_144] : memref<1x1x16x16xf32, #tpu.memory_space<vmem>>, vector<1x1x16x16xf32>
    %902 = vector.shape_cast %901 : vector<1x1x16x16xf32> to vector<16x16xf32>
    %903 = vector.shape_cast %900 : vector<16x16xf32> to vector<1x1x16x16xf32>
    tpu.vector_store %arg7[%c0_141, %c0_142, %c0_143, %c0_144], %903 {strides = array<i32>} : memref<1x1x16x16xf32, #tpu.memory_space<vmem>>, vector<1x1x16x16xf32>,
    return
  }
  func.func @transform_0(%arg0: i32) -> (i32, i32, i32, i32) {
    %c0_i32 = arith.constant 0 : i32
    %c0_i32_0 = arith.constant 0 : i32
    %c0_i32_1 = arith.constant 0 : i32
    %c0_i32_2 = arith.constant 0 : i32
    return %arg0, %c0_i32, %c0_i32_0, %c0_i32_1 : i32, i32, i32, i32
  }
  func.func @transform_1(%arg0: i32) -> (i32, i32, i32, i32) {
    %c0_i32 = arith.constant 0 : i32
    %c0_i32_0 = arith.constant 0 : i32
    %c0_i32_1 = arith.constant 0 : i32
    %c0_i32_2 = arith.constant 0 : i32
    return %arg0, %c0_i32, %c0_i32_0, %c0_i32_1 : i32, i32, i32, i32
  }
  func.func @transform_2(%arg0: i32) -> i32 {
    %c0_i32 = arith.constant 0 : i32
    %c0_i32_0 = arith.constant 0 : i32
    return %c0_i32 : i32
  }
  func.func @transform_3(%arg0: i32) -> i32 {
    %c0_i32 = arith.constant 0 : i32
    %c0_i32_0 = arith.constant 0 : i32
    return %c0_i32 : i32
  }
  func.func @transform_4(%arg0: i32) -> i32 {
    %c0_i32 = arith.constant 0 : i32
    %c0_i32_0 = arith.constant 0 : i32
    return %c0_i32 : i32
  }
  func.func @transform_5(%arg0: i32) -> i32 {
    %c0_i32 = arith.constant 0 : i32
    %c0_i32_0 = arith.constant 0 : i32
    return %c0_i32 : i32
  }
  func.func @transform_6(%arg0: i32) -> (i32, i32, i32, i32) {
    %c0_i32 = arith.constant 0 : i32
    %c0_i32_0 = arith.constant 0 : i32
    %c0_i32_1 = arith.constant 0 : i32
    %c0_i32_2 = arith.constant 0 : i32
    return %arg0, %c0_i32, %c0_i32_0, %c0_i32_1 : i32, i32, i32, i32
  }
}

</mosaic_0001>

<bundles_post_ra>
// kernel: tpu_custom_call.1
= control target key start
LH: loop header
LB: loop body
LE: loop exit
PB: predicated region body
PF: predicated region fallthrough
CT: control target
= control target key end

     0   :  { %s5930_s0 = inlined_call_operand.hbm [shape: f32[2,4,16,16], index: 0, kind: input, shape index: {}]   ;;  %s5931_s1 = inlined_call_operand.hbm [shape: f32[2,4,16,16], index: 1, kind: input, shape index: {}]   ;;  %s5932_s2 = inlined_call_operand.vmem [shape: f32[144], index: 2, kind: input, shape index: {}]   ;;  %s5933_s3 = inlined_call_operand.vmem [shape: f32[4], index: 3, kind: input, shape index: {}]   ;;  %s5934_s4 = inlined_call_operand.vmem [shape: f32[36], index: 4, kind: input, shape index: {}]   ;;  %s5935_s5 = inlined_call_operand.<no memory space> [shape: f32[1], index: 5, kind: input, shape index: {}]   ;;  %s5936_s6 = inlined_call_operand.hbm [shape: f32[2,1,16,16], index: 6, kind: output, shape index: {}]  }
   0x1   :  { %6144 = sst [smem:[#allocation198_spill]] %s5930_s0 }
   0x2   :  { %6145 = sst [smem:[#allocation199_spill]] %s5931_s1 }
   0x3   :  { %6146 = sst [smem:[#allocation200_spill]] %s5932_s2 }
   0x4   :  { %6147 = sst [smem:[#allocation201_spill]] %s5933_s3 }
   0x5   :  { %6148 = sst [smem:[#allocation202_spill]] %s5934_s4 }
   0x6   :  { %6149 = sst [smem:[#allocation203_spill]] %s5936_s6 }
   0x7   :  { %11 = sst [smem:[#allocation2]] %s5935_s5 }
   0x8   :  { %12 = vsyncpa [#allocation4], 0 }
   0x9   :  { %14 = vsyncpa [#allocation4 + $0x1], 0 }
   0xa   :  { %15 = vsyncpa [#allocation8], 0 }
   0xb   :  { %17 = vsyncpa [#allocation8 + $0x1], 0 }
   0xc   :  { %18 = vsyncpa [#allocation6], 0 }
   0xd   :  { %19 = vsyncpa [#allocation11], 0 }
   0xe   :  { %20 = vsyncpa [#allocation5], 0 }
   0xf   :  { %22 = vsyncpa [#allocation5 + $0x1], 0  ;;  %s3011_s23 = smov 0   ;;  %s3013_s24 = smov 0  }
  0x10   :  { %s3015_s25 = smov 0   ;;  %s3017_s26 = smov 0  }
  0x11 LB: > { %6150 = sst [smem:[#allocation19_spill]] %s2946_s23  ;;  %s3032_s5 = sadd.s32 4294967295, %s2958_s26   ;;  %s2958_s26 = sphi %s3017_s26, %s6739_s26   ;;  %s2954_s25 = sphi %s3015_s25, %s6742_s25   ;;  %s2950_s24 = sphi %s3013_s24, %s6741_s24   ;;  %s2946_s23 = sphi %s3011_s23, %s6740_s23  }
  0x12   : > { %6151 = sst [smem:[#allocation20_spill]] %s2950_s24  ;;  %s2462_s27 = sadd.s32 4294967294, %s2958_s26  }
  0x13   : > { %6152 = sst [smem:[#allocation21_spill]] %s2954_s25  ;;  %p48_p0 = scmp.ne.s32.totalorder %s2950_s24, %s2946_s23 }
  0x14   : > { %6153 = sst [smem:[#allocation22_spill]] %s2958_s26  ;;  %p5937_p1 = scmp.eq.s32.totalorder %s3032_s5, 0 }
  0x15   : > { %6154 = sst [smem:[#allocation23_spill]] %s3032_s5  ;;  %p188_p3 = scmp.eq.s32.totalorder %s2462_s27, 1 }
  0x16   : > { %p3041_p4 = por %p5937_p1, %p48_p0  ;;  %p2463_p5 = scmp.ge.s32.totalorder %s2958_s26, 1 }
  0x17   : > { %p3046_p6 = por %p188_p3, %p48_p0  ;;  %p195_p7 = scmp.lt.s32.totalorder %s2958_s26, 3 }
  0x18   : > { %s6155_s28 = scalar_select %p3041_p4, 1, 0 }
  0x19   : > { %s6156_s29 = scalar_select %p3046_p6, 1, 0 }
  0x1a   : > { %s6158_s3 = sld [smem:[#allocation201_spill]]  ;;  %p3054_p8 = pnand %p2463_p5, %p195_p7 }
  0x1b   : > { %6157 = sst [smem:[#allocation24_spill]] %s6156_s29  ;;  %s6160_s2 = sld [smem:[#allocation200_spill]] }
  0x1c   : > { %s6159_s9 = scalar_select %p3054_p8, 1, 0 }
  0x1d   : > { %p2700_p10 = pneg %p3054_p8  ;;  %s6162_s4 = sld [smem:[#allocation202_spill]] }
  0x1f   : > { %p3066_p11 = pnand %p2700_p10, %p5937_p1 }
  0x20   : > { %s219_s8 = sshll.u32 %s6158_s3, 4  ;;  %s220_s8 = int_to_ptr.vmem [resolvable:$true] %s219_s8 }
  0x21   : > { %s208_s12 = sshll.u32 %s6160_s2, 4  ;;  %s2775_s17 = scalar_lea.vmem %s220_s8, 16  ;;  %s209_s12 = int_to_ptr.vmem [resolvable:$true] %s208_s12 }
  0x22   : > { %p2776_p12 = scmp.ne.s32.totalorder %s220_s8, %s2775_s17  ;;  %p2777_p13 = pneg %p3066_p11 }
  0x23   : > { %s230_s16 = sshll.u32 %s6162_s4, 4  ;;  %p2783_p5 = scmp.lt.s32.totalorder %s220_s8, %s220_s8  ;;  %s3073_s16 = int_to_ptr.vmem [resolvable:$true] %s230_s16 }
  0x24   : > { %p2778_p0 = pnand %p2777_p13, %p2776_p12  ;;  %p2784_p7 = scmp.lt.s32.totalorder %s2775_s17, %s2775_s17 }
  0x26   : > { %p2779_p3 = pneg %p2778_p0  ;;  %p2785_p10 = por %p2784_p7, %p2783_p5 }
  0x28   : > { %p2786_p9 = pnand %p2785_p10, %p2779_p3 }
  0x2a   : > { %2789 = shalt.err (!%p2786_p9)
}
  0x2b   : > { %s2960_s18 = smov [#allocation10]   ;;  %s2790_s19 = scalar_lea.vmem %s209_s12, 32 }
  0x2c   : > { %2706 = dma.vmem_to_smem (!%p3066_p11), %s220_s8, 16, %s2960_s18, [#allocation11]  }
  0x2d   : > { %p2791_p1 = scmp.ne.s32.totalorder %s209_s12, %s2790_s19  ;;  %p2798_p4 = scmp.lt.s32.totalorder %s209_s12, %s209_s12 }
  0x2e   : > { %p2799_p8 = scmp.lt.s32.totalorder %s2790_s19, %s2790_s19 }
  0x2f   : > { %p2793_p2 = pnand %p2791_p1, %p2777_p13 }
  0x30   : > { %p2800_p12 = por %p2799_p8, %p2798_p4 }
  0x31   : > { %p2794_p6 = pneg %p2793_p2 }
  0x33   : > { %p2801_p0 = pnand %p2800_p12, %p2794_p6 }
  0x35   : > { %2804 = shalt.err (!%p2801_p0)
}
  0x36   : > { %s2961_s20 = smov [#allocation9]   ;;  %s2805_s21 = scalar_lea.vmem %s3073_s16, 16 }
  0x37   : > { %2703 = dma.vmem_to_smem (!%p3066_p11), %s209_s12, 32, %s2961_s20, [#allocation6]  }
  0x38   : > { %p2806_p9 = scmp.ne.s32.totalorder %s3073_s16, %s2805_s21  ;;  %p2813_p2 = scmp.lt.s32.totalorder %s3073_s16, %s3073_s16 }
  0x39   : > { %p2814_p5 = scmp.lt.s32.totalorder %s2805_s21, %s2805_s21 }
  0x3a   : > { %p2808_p3 = pnand %p2806_p9, %p2777_p13 }
  0x3b   : > { %p2815_p4 = por %p2814_p5, %p2813_p2 }
  0x3c   : > { %p2809_p1 = pneg %p2808_p3 }
  0x3e   : > { %p2816_p6 = pnand %p2815_p4, %p2809_p1 }
  0x40   : > { %2819 = shalt.err (!%p2816_p6)
}
  0x41   : > { %s2962_s22 = smov [#allocation12]   ;;  %s3098_s27 = sadd.s32 1, %s2958_s26  }
  0x42   : > { %2709 = dma.vmem_to_smem (!%p3066_p11), %s3073_s16, 16, %s2962_s22, [#allocation11]  }
  0x43   : > { %6163 = sst [smem:[#allocation25_spill]] %s3098_s27  ;;  %s32_s30 = ssub.s32 %s2958_s26, %s3098_s27 }
  0x44   : > { %s35_s7 = sadd.s32 1, %s2954_s25  ;;  %p33_p8 = scmp.eq.s32.totalorder %s32_s30, 0 }
  0x45   : > { %p42_p13 = scmp.ne.s32.totalorder %s2954_s25, %s2950_s24  ;;  %p43_p7 = scmp.eq.s32.totalorder %s2958_s26, 0 }
  0x46   : > { %p2724_p10 = scmp.lt.s32.totalorder %s2958_s26, 2  ;;  %p6165_p0 = scmp.eq.s32.totalorder %s3032_s5, 1 }
  0x47   : > { %s3108_s8 = scalar_select %p33_p8, %s2954_s25, %s35_s7  }
  0x48   : > { %p44_p12 = por %p43_p7, %p42_p13  ;;  %p3112_p9 = por %p6165_p0, %p42_p13 }
  0x49   : > { %6164 = sst [smem:[#allocation26_spill]] %s3108_s8  ;;  %s3117_s11 = sand.u32 1, %s2954_s25  }
  0x4a   : > { %s6166_s10 = scalar_select %p3112_p9, 1, 0 }
  0x4b   : > { %s2679_s12 = sshll.u32 %s2958_s26, 10  ;;  %s2468_s13 = sshll.u32 %s3117_s11, 6 }
  0x4c   : > { %6167 = sst [smem:[#allocation27_spill]] %s6166_s10  ;;  %s6168_s0 = sld [smem:[#allocation198_spill]] }
  0x4d   : > { %s248_s17 = scalar_lea.vmem [#allocation3], %s2468_s13  ;;  %p3130_p11 = pnand %p2724_p10, %p44_p12 }
  0x4e   : > { %s255_s18 = sshll.u32 %s248_s17, 4  ;;  %s245_s20 = scalar_lea.sflag [#allocation4], %s3117_s11  ;;  %s3134_s18 = int_to_ptr.vmem [resolvable:$true] %s255_s18 }
  0x4f   : > { %p2822_p1 = pneg %p3130_p11 }
  0x52   : > { %s3126_s16 = scalar_lea.hbm %s6168_s0, %s2679_s12  ;;  %s2825_s7 = scalar_lea.hbm %s6168_s0, 2048 }
  0x53   : > { %s2820_s21 = scalar_lea.hbm %s3126_s16, 1024  ;;  %p2826_p4 = scmp.lt.u32.totalorder %s3126_s16, %s6168_s0 }
  0x54   : > { %p2821_p3 = scmp.ne.s32.totalorder %s3126_s16, %s2820_s21  ;;  %p2827_p6 = scmp.lt.u32.totalorder %s2825_s7, %s2820_s21 }
  0x55   : > { %p2829_p13 = scmp.lt.u32.totalorder %s2820_s21, %s3126_s16 }
  0x56   : > { %p2823_p2 = pnand %p2822_p1, %p2821_p3  ;;  %p2828_p8 = por %p2827_p6, %p2826_p4 }
  0x58   : > { %p2824_p5 = pneg %p2823_p2  ;;  %p2830_p7 = por %p2829_p13, %p2828_p8 }
  0x5a   : > { %p2831_p10 = pnand %p2830_p7, %p2824_p5 }
  0x5c   : > { %2834 = shalt.err (!%p2831_p10)
}
  0x5d   : > { %s2835_s17 = scalar_lea.vmem %s3134_s18, 1024  ;;  %s2963_s22 = smov [#allocation3]  }
  0x5e   : > { %p2836_p12 = scmp.ne.s32.totalorder %s3134_s18, %s2835_s17  ;;  %s2840_s30 = sshll.u32 %s2963_s22, 4  ;;  %s2841_s30 = int_to_ptr.vmem [resolvable:$false] %s2840_s30 }
  0x5f   : > { %s2842_s14 = scalar_lea.vmem %s2841_s30, 2048  ;;  %p2843_p2 = scmp.lt.s32.totalorder %s3134_s18, %s2841_s30 }
  0x60   : > { %p2838_p0 = pnand %p2836_p12, %p2822_p1  ;;  %p2844_p4 = scmp.lt.s32.totalorder %s2842_s14, %s2835_s17 }
  0x62   : > { %p2839_p3 = pneg %p2838_p0  ;;  %p2845_p6 = por %p2844_p4, %p2843_p2 }
  0x64   : > { %p2846_p8 = pnand %p2845_p6, %p2839_p3 }
  0x66   : > { %2849 = shalt.err (!%p2846_p8)
}
  0x67   : > { %s2964_s21 = smov 128   ;;  %s2965_s7 = smov 8  }
  0x68   : > { %2713 = dma.hbm_to_vmem [thread:$0]  (!%p3130_p11), %s3126_s16, 1024, %s3134_s18, %s245_s20, %s2964_s21, %s2964_s21, %s2965_s7  }
  0x69   : > { %s6170_s1 = sld [smem:[#allocation199_spill]]  ;;  %s269_s30 = scalar_lea.vmem [#allocation7], %s2468_s13 }
  0x6a   : > { %s276_s14 = sshll.u32 %s269_s30, 4  ;;  %s266_s0 = scalar_lea.sflag [#allocation8], %s3117_s11  ;;  %s3176_s14 = int_to_ptr.vmem [resolvable:$true] %s276_s14 }
  0x6f   : > { %s3172_s22 = scalar_lea.hbm %s6170_s1, %s2679_s12  ;;  %s2855_s12 = scalar_lea.hbm %s6170_s1, 2048 }
  0x70   : > { %s2850_s2 = scalar_lea.hbm %s3172_s22, 1024  ;;  %p2856_p10 = scmp.lt.u32.totalorder %s3172_s22, %s6170_s1 }
  0x71   : > { %p2851_p5 = scmp.ne.s32.totalorder %s3172_s22, %s2850_s2  ;;  %p2857_p12 = scmp.lt.u32.totalorder %s2855_s12, %s2850_s2 }
  0x72   : > { %p2859_p3 = scmp.lt.u32.totalorder %s2850_s2, %s3172_s22 }
  0x73   : > { %p2853_p13 = pnand %p2851_p5, %p2822_p1  ;;  %p2858_p0 = por %p2857_p12, %p2856_p10 }
  0x75   : > { %p2854_p7 = pneg %p2853_p13  ;;  %p2860_p2 = por %p2859_p3, %p2858_p0 }
  0x77   : > { %p2861_p4 = pnand %p2860_p2, %p2854_p7 }
  0x79   : > { %2864 = shalt.err (!%p2861_p4)
}
  0x7a   : > { %s2865_s13 = scalar_lea.vmem %s3176_s14, 1024  ;;  %s2966_s17 = smov [#allocation7]  }
  0x7b   : > { %p2866_p6 = scmp.ne.s32.totalorder %s3176_s14, %s2865_s13  ;;  %s2870_s30 = sshll.u32 %s2966_s17, 4  ;;  %s2871_s30 = int_to_ptr.vmem [resolvable:$false] %s2870_s30 }
  0x7c   : > { %s2872_s16 = scalar_lea.vmem %s2871_s30, 2048  ;;  %p2873_p13 = scmp.lt.s32.totalorder %s3176_s14, %s2871_s30 }
  0x7d   : > { %p2868_p8 = pnand %p2866_p6, %p2822_p1  ;;  %p2874_p10 = scmp.lt.s32.totalorder %s2872_s16, %s2865_s13 }
  0x7f   : > { %p2869_p5 = pneg %p2868_p8  ;;  %p2875_p12 = por %p2874_p10, %p2873_p13 }
  0x81   : > { %p2876_p0 = pnand %p2875_p12, %p2869_p5 }
  0x83   : > { %2879 = shalt.err (!%p2876_p0)
}
  0x84   : > { %2716 = dma.hbm_to_vmem [thread:$0]  (!%p3130_p11), %s3172_s22, 1024, %s3176_s14, %s266_s0, %s2964_s21, %s2964_s21, %s2965_s7  }
  0x85   : > { %p6171_p1 = scmp.ne.s32.totalorder %s6159_s9, 0 }
  0x87   : > { %288 = sbr.rel (%p6171_p1) target bundleno = 1185 (0x4a1), region = 44 }
  0x8e   : > { %s3210_s2 = sand.u32 1, %s2950_s24   ;;  %p6173_p7 = scmp.ne.s32.totalorder %s6155_s28, 0 }
  0x8f   : > { %6172 = sst [smem:[#allocation28_spill]] %s3210_s2  ;;  %s2475_s18 = sshll.u32 %s3210_s2, 6 }
  0x90   : > { %s291_s12 = scalar_lea.sflag [#allocation4], %s3210_s2  ;;  %s3214_s19 = scalar_lea.vmem [#allocation3], %s2475_s18 }
  0x91   : > { %2925 = dma.done.wait (%p6173_p7), %s291_s12, 1024  }
  0x92   : > { %2927 = vsyncadd (%p6173_p7), %s291_s12, 4294966272  ;;  %s300_s0 = scalar_lea.sflag [#allocation8], %s3210_s2  ;;  %s3221_s9 = scalar_lea.vmem [#allocation7], %s2475_s18 }
  0x93   : > { %2929 = dma.done.wait (%p6173_p7), %s300_s0, 1024  }
  0x94   : > { %2931 = vsyncadd (%p6173_p7), %s300_s0, 4294966272  ;;  %p6174_p11 = scmp.eq.s32.totalorder %s3032_s5, 0 }
  0x96   : > { %2933 = dma.done.wait (%p6174_p11), [#allocation6], 32   ;;  %p6175_p3 = pmov %p6174_p11 }
  0x98   : > { %2935 = vsyncadd (%p6175_p3), [#allocation6], 4294967264  ;;  %p6176_p2 = pmov %p6175_p3 }
  0x9a   : > { %2937 = dma.done.wait (%p6176_p2), [#allocation11], 32   ;;  %p6177_p4 = pmov %p6176_p2 }
  0x9c   : > { %2939 = vsyncadd (%p6177_p4), [#allocation11], 4294967264 }
  0x9d   : > { %320 = sfence }
  0x9e   : > { %v369_v0 = vld [vmem:[%s3214_s19] sm:$0xff]  ;;  %v370_v2 = vld [vmem:[%s3214_s19 + $0x8] sm:$0xff]  ;;  %v350_v3 = vlaneseq  ;;  %v2519_v6 = vld [vmem:[%s3214_s19 + $0x10] sm:$0xff]  ;;  %s5940_s28 = smov 16   ;;  %vm391_vm4 = vcmask 1047680   ;;  %s5942_s11 = smov 113  }
  0x9f   : > { %v371_v1 = vld [vmem:[%s3221_s9] sm:$0xff]  ;;  %v372_v5 = vld [vmem:[%s3221_s9 + $0x8] sm:$0xff]  ;;  %v2520_v7 = vld [vmem:[%s3214_s19 + $0x18] sm:$0xff]  ;;  %s5952_s21 = smov 127   ;;  %s3564_s7 = sld [smem:[#allocation9 + $0x3]]  ;;  %vm2318_vm7 = vcmask 130048  }
  0xa0   : > { %v373_v4 = vsub.f32 %v369_v0, %v371_v1  ;;  %v374_v8 = vsub.f32 %v370_v2, %v372_v5  ;;  %v3242_v9 = vshrl.u32 %v350_v3, 7  ;;  %v2521_v10 = vld [vmem:[%s3221_s9 + $0x10] sm:$0xff]  ;;  %v2522_v11 = vld [vmem:[%s3221_s9 + $0x18] sm:$0xff]  ;;  %v2559_v29 = vld [vmem:[%s3214_s19 + $0x20] sm:$0xff]  ;;  %s3566_s22 = sld [smem:[#allocation9 + $0x27]]  ;;  %s3568_s14 = sld [smem:[#allocation9 + $0x4b]] }
  0xa1   : > { %v704_v13 = vsub.f32 %v2519_v6, %v2521_v10  ;;  %v705_v14 = vsub.f32 %v2520_v7, %v2522_v11  ;;  %v2560_v31 = vld [vmem:[%s3214_s19 + $0x28] sm:$0xff]  ;;  %v2561_v32 = vld [vmem:[%s3221_s9 + $0x20] sm:$0xff]  ;;  %v2599_v48 = vld [vmem:[%s3214_s19 + $0x30] sm:$0xff]  ;;  %s3570_s20 = sld [smem:[#allocation9 + $0x6f]]  ;;  %s3574_s15 = sld [smem:[#allocation9 + $0x5]] }
  0xa2   : > { %6178 = vst [vmem:[#allocation29_spill] sm:$0xff] %v3242_v9  ;;  %v3246_v12 = vand.u32 2147483647, %v373_v4  ;;  %v3248_v15 = vand.u32 2147483647, %v374_v8  ;;  %vm355_vm0 = vcmp.eq.s32.totalorder %v3242_v9, 0  ;;  %v1032_v35 = vsub.f32 %v2559_v29, %v2561_v32 }
  0xa3   : > { %vm379_vm1 = vcmp.lt.s32.totalorder %v3242_v9, 1  ;;  %vm386_vm2 = vcmp.lt.s32.totalorder %v3242_v9, 7  ;;  %v3257_v17 = vadd.s32 8, %v3242_v9  ;;  %v3262_v21 = vand.u32 2147483647, %v704_v13  ;;  %v2562_v33 = vld [vmem:[%s3221_s9 + $0x28] sm:$0xff] }
  0xa4   : > { %422 = vrot.lane.b32.xlu1 %v3246_v12, %s5940_s28  ;;  %v377_v16 = vrot.slane %v3246_v12, 7  ;;  %v378_v18 = vrot.slane %v3248_v15, 7  ;;  %v384_v19 = vrot.slane %v3246_v12, 1  ;;  %v385_v20 = vrot.slane %v3248_v15, 1  ;;  %v2600_v49 = vld [vmem:[%s3214_s19 + $0x38] sm:$0xff]  ;;  %v2601_v50 = vld [vmem:[%s3221_s9 + $0x30] sm:$0xff] }
  0xa5   : > { %6179 = vst [vmem:[#allocation30_spill] sm:$0xff] %v3257_v17  ;;  %6180 = vst [vmem:[#allocation31_spill] sm:$0xff] %v3262_v21  ;;  %vm358_vm3 = vcmp.eq.s32.totalorder %v3257_v17, 15  ;;  %v3265_v22 = vand.u32 2147483647, %v705_v14  ;;  %v708_v27 = vrot.slane %v3262_v21, 7  ;;  %v1033_v36 = vsub.f32 %v2560_v31, %v2562_v33 }
  0xa6   : > { %v381_v23 = vsel %vm379_vm1, %v378_v18, %v377_v16  ;;  %v388_v24 = vsel %vm386_vm2, %v385_v20, %v384_v19  ;;  %v3290_v30 = vsel %vm379_vm1, %v377_v16, %v378_v18  ;;  %v3305_v37 = vsel %vm386_vm2, %v384_v19, %v385_v20  ;;  %v2602_v51 = vld [vmem:[%s3221_s9 + $0x38] sm:$0xff]  ;;  %6197 = sst [smem:[#allocation48_spill]] %s3564_s7  ;;  %s3576_s13 = sld [smem:[#allocation9 + $0x29]] }
  0xa7   : > { %6181 = vst [vmem:[#allocation32_spill] sm:$0xff] %v3265_v22  ;;  %v3276_v25 = vsel %vm355_vm0, %v3246_v12, %v381_v23  ;;  %v3283_v26 = vsel %vm358_vm3, %v3248_v15, %v388_v24  ;;  %v709_v28 = vrot.slane %v3265_v22, 7  ;;  %v714_v38 = vrot.slane %v3262_v21, 1  ;;  %6198 = sst [smem:[#allocation49_spill]] %s3566_s22  ;;  %s3578_s17 = sld [smem:[#allocation9 + $0x4d]] }
  0xa8   : > { %425 = vrot.lane.b32.xlu1 %v3248_v15, %s5940_s28  ;;  %392 = vrot.lane.b32.xlu0 %v3276_v25, %s5940_s28  ;;  %v715_v39 = vrot.slane %v3265_v22, 1  ;;  %v3315_v41 = vand.u32 2147483647, %v1032_v35  ;;  %v3317_v42 = vand.u32 2147483647, %v1033_v36  ;;  %v1360_v53 = vsub.f32 %v2599_v48, %v2601_v50  ;;  %6199 = sst [smem:[#allocation50_spill]] %s3568_s14 }
  0xa9   : > { %v3301_v34 = vsel %vm379_vm1, %v708_v27, %v709_v28  ;;  %v711_v40 = vsel %vm379_vm1, %v709_v28, %v708_v27  ;;  %v1361_v54 = vsub.f32 %v2600_v49, %v2602_v51  ;;  %6200 = sst [smem:[#allocation51_spill]] %s3570_s20  ;;  %s3580_s30 = sld [smem:[#allocation9 + $0x71]] }
  0xaa   : > { %6182 = vst [vmem:[#allocation33_spill] sm:$0xff] %v3315_v41  ;;  %6183 = vst [vmem:[#allocation34_spill] sm:$0xff] %v3317_v42  ;;  %v3322_v43 = vsel %vm355_vm0, %v3262_v21, %v711_v40  ;;  %v717_v44 = vsel %vm386_vm2, %v715_v39, %v714_v38  ;;  %v1036_v46 = vrot.slane %v3315_v41, 7  ;;  %v1037_v47 = vrot.slane %v3317_v42, 7  ;;  %6201 = sst [smem:[#allocation52_spill]] %s3574_s15  ;;  %s3582_s16 = sld [smem:[#allocation9 + $0xc]] }
  0xab   : > { %6184 = vst [vmem:[#allocation35_spill] sm:$0xff] %v3322_v43  ;;  %v3333_v45 = vsel %vm358_vm3, %v3265_v22, %v717_v44  ;;  %v3351_v55 = vsel %vm386_vm2, %v714_v38, %v715_v39  ;;  %v1042_v56 = vrot.slane %v3315_v41, 1  ;;  %v1043_v57 = vrot.slane %v3317_v42, 1  ;;  %s3584_s18 = sld [smem:[#allocation9 + $0x30]]  ;;  %s3588_s12 = sld [smem:[#allocation9 + $0x54]] }
  0xac   : > { %455 = vrot.lane.b32.xlu1 %v3283_v26, %s5940_s28  ;;  %395 = vrot.lane.b32.xlu0 %v3290_v30, %s5940_s28  ;;  %6185 = vst [vmem:[#allocation36_spill] sm:$0xff] %v3333_v45  ;;  %v3347_v52 = vsel %vm379_vm1, %v1036_v46, %v1037_v47  ;;  %6187 = vst [vmem:[#allocation38_spill] sm:$0xff] %v3351_v55  ;;  %v1039_v58 = vsel %vm379_vm1, %v1037_v47, %v1036_v46  ;;  %v3361_v59 = vand.u32 2147483647, %v1360_v53  ;;  %6202 = sst [smem:[#allocation53_spill]] %s3576_s13  ;;  %s3590_s19 = sld [smem:[#allocation9 + $0x78]] }
  0xad   : > { %6186 = vst [vmem:[#allocation37_spill] sm:$0xff] %v3347_v52  ;;  %v3363_v60 = vand.u32 2147483647, %v1361_v54  ;;  %v3368_v61 = vsel %vm355_vm0, %v3315_v41, %v1039_v58  ;;  %v1045_v62 = vsel %vm386_vm2, %v1043_v57, %v1042_v56  ;;  %v3393_v4 = vsel %vm386_vm2, %v1042_v56, %v1043_v57  ;;  %6203 = sst [smem:[#allocation54_spill]] %s3578_s17  ;;  %s3596_s9 = sld [smem:[#allocation9 + $0x24]] }
  0xae   : > { %6188 = vst [vmem:[#allocation39_spill] sm:$0xff] %v3361_v59  ;;  %6190 = vst [vmem:[#allocation41_spill] sm:$0xff] %v3368_v61  ;;  %v3379_v63 = vsel %vm358_vm3, %v3317_v42, %v1045_v62  ;;  %v1364_v0 = vrot.slane %v3361_v59, 7  ;;  %v1370_v6 = vrot.slane %v3361_v59, 1  ;;  %s3594_s0 = sld [smem:[#allocation9]]  ;;  %s3600_s1 = sld [smem:[#allocation9 + $0x6c]] }
  0xaf   : > { %6189 = vst [vmem:[#allocation40_spill] sm:$0xff] %v3363_v60  ;;  %6191 = vst [vmem:[#allocation42_spill] sm:$0xff] %v3379_v63  ;;  %v1365_v1 = vrot.slane %v3363_v60, 7  ;;  %v1371_v7 = vrot.slane %v3363_v60, 1  ;;  %6204 = sst [smem:[#allocation55_spill]] %s3580_s30  ;;  %s3602_s3 = sld [smem:[#allocation10]] }
  0xb0   : > { %723 = vrot.lane.b32.xlu1 %v3301_v34, %s5940_s28  ;;  %452 = vrot.lane.b32.xlu0 %v3305_v37, %s5940_s28  ;;  %6193 = vst [vmem:[#allocation44_spill] sm:$0xff] %v3393_v4  ;;  %6205 = sst [smem:[#allocation56_spill]] %s3582_s16  ;;  %s3604_s4 = sld [smem:[#allocation10 + $0x1]] }
  0xb1   : > { %v3389_v2 = vsel %vm379_vm1, %v1364_v0, %v1365_v1  ;;  %v1367_v5 = vsel %vm379_vm1, %v1365_v1, %v1364_v0  ;;  %v1373_v10 = vsel %vm386_vm2, %v1371_v7, %v1370_v6  ;;  %v3425_v13 = vsel %vm386_vm2, %v1370_v6, %v1371_v7  ;;  %6206 = sst [smem:[#allocation57_spill]] %s3584_s18  ;;  %s3608_s8 = sld [smem:[#allocation10 + $0x2]] }
  0xb2   : > { %6192 = vst [vmem:[#allocation43_spill] sm:$0xff] %v3389_v2  ;;  %v3406_v8 = vsel %vm355_vm0, %v3361_v59, %v1367_v5  ;;  %v3417_v11 = vsel %vm358_vm3, %v3363_v60, %v1373_v10  ;;  %6196 = vst [vmem:[#allocation47_spill] sm:$0xff] %v3425_v13  ;;  %6207 = sst [smem:[#allocation58_spill]] %s3588_s12  ;;  %s6217_s25 = smov 113  }
  0xb3   : > { %6194 = vst [vmem:[#allocation45_spill] sm:$0xff] %v3406_v8  ;;  %6195 = vst [vmem:[#allocation46_spill] sm:$0xff] %v3417_v11  ;;  %6208 = sst [smem:[#allocation59_spill]] %s3590_s19  ;;  %s3614_s24 = sld [smem:[#allocation9 + $0x1]] }
  0xb4   : > { %753 = vrot.lane.b32.xlu1 %v3265_v22, %s5940_s28  ;;  %720 = vrot.lane.b32.xlu0 %v3322_v43, %s5940_s28  ;;  %6209 = sst [smem:[#allocation60_spill]] %s3594_s0  ;;  %s3616_s27 = sld [smem:[#allocation9 + $0x25]] }
  0xb5   : > { %6210 = sst [smem:[#allocation61_spill]] %s3596_s9  ;;  %s3618_s26 = sld [smem:[#allocation9 + $0x6]] }
  0xb6   : > { %6212 = sst [smem:[#allocation63_spill]] %s3600_s1  ;;  %s3620_s29 = sld [smem:[#allocation9 + $0x2a]] }
  0xb7   : > { %6213 = sst [smem:[#allocation64_spill]] %s3602_s3  ;;  %s3622_s23 = sld [smem:[#allocation9 + $0x4e]] }
  0xb8   : > { %783 = vrot.lane.b32.xlu1 %v3333_v45, %s5940_s28  ;;  %750 = vrot.lane.b32.xlu0 %v3262_v21, %s5940_s28  ;;  %6214 = sst [smem:[#allocation65_spill]] %s3604_s4  ;;  %s3624_s6 = sld [smem:[#allocation9 + $0x72]] }
  0xb9   : > { %6215 = sst [smem:[#allocation66_spill]] %s3608_s8  ;;  %s3632_s10 = sld [smem:[#allocation9 + $0x6d]] }
  0xba   : > { %s3636_s5 = sld [smem:[#allocation9 + $0x2]]  ;;  %s3638_s2 = sld [smem:[#allocation9 + $0x26]] }
  0xbb   : > { %6218 = sst [smem:[#allocation68_spill]] %s3618_s26  ;;  %s3650_s26 = sld [smem:[#allocation9 + $0x74]] }
  0xbc   : > { %1051 = vrot.lane.b32.xlu1 %v3347_v52, %s5940_s28  ;;  %780 = vrot.lane.b32.xlu0 %v3351_v55, %s5940_s28  ;;  %6219 = sst [smem:[#allocation69_spill]] %s3620_s29  ;;  %s3648_s29 = sld [smem:[#allocation9 + $0x50]] }
  0xbd   : > { %6220 = sst [smem:[#allocation70_spill]] %s3622_s23  ;;  %s3642_s23 = sld [smem:[#allocation9 + $0x6e]] }
  0xbe   : > { %6221 = sst [smem:[#allocation71_spill]] %s3624_s6  ;;  %s3640_s6 = sld [smem:[#allocation9 + $0x4a]] }
  0xbf   : > { %6223 = sst [smem:[#allocation73_spill]] %s3632_s10  ;;  %s3646_s10 = sld [smem:[#allocation9 + $0x2c]] }
  0xc0   : > { %1081 = vrot.lane.b32.xlu1 %v3317_v42, %s5940_s28  ;;  %1048 = vrot.lane.b32.xlu0 %v3368_v61, %s5940_s28  ;;  %6224 = sst [smem:[#allocation74_spill]] %s3638_s2  ;;  %s3681_s15 = sld [smem:[#allocation9 + $0xb]] }
  0xc1   : > { %6230 = sst [smem:[#allocation80_spill]] %s3650_s26  ;;  %s3669_s26 = sld [smem:[#allocation9 + $0x4]] }
  0xc2   : > { %6229 = sst [smem:[#allocation79_spill]] %s3648_s29  ;;  %s3683_s17 = sld [smem:[#allocation9 + $0x2f]] }
  0xc3   : > { %6226 = sst [smem:[#allocation76_spill]] %s3642_s23  ;;  %s3656_s23 = sld [smem:[#allocation9 + $0x2d]] }
  0xc4   : > { %1111 = vrot.lane.b32.xlu1 %v3379_v63, %s5940_s28  ;;  %1078 = vrot.lane.b32.xlu0 %v3315_v41, %s5940_s28  ;;  %6225 = sst [smem:[#allocation75_spill]] %s3640_s6  ;;  %s3654_s6 = sld [smem:[#allocation9 + $0x9]] }
  0xc5   : > { %6228 = sst [smem:[#allocation78_spill]] %s3646_s10  ;;  %s3663_s10 = sld [smem:[#allocation9 + $0x75]] }
  0xc6   : > { %6236 = sst [smem:[#allocation85_spill]] %s3681_s15  ;;  %s3690_s13 = sld [smem:[#allocation9 + $0x53]] }
  0xc7   : > { %s3692_s18 = sld [smem:[#allocation9 + $0x77]]  ;;  %s3698_s30 = sld [smem:[#allocation9 + $0x4c]] }
  0xc8   : > { %1379 = vrot.lane.b32.xlu1 %v3389_v2, %s5940_s28  ;;  %1108 = vrot.lane.b32.xlu0 %v3393_v4, %s5940_s28  ;;  %6237 = sst [smem:[#allocation86_spill]] %s3683_s17  ;;  %s3706_s19 = sld [smem:[#allocation9 + $0xe]] }
  0xc9   : > { %6233 = sst [smem:[#allocation82_spill]] %s3656_s23  ;;  %s3700_s20 = sld [smem:[#allocation9 + $0x70]] }
  0xca   : > { %6232 = sst [smem:[#allocation81_spill]] %s3654_s6  ;;  %s3671_s6 = sld [smem:[#allocation9 + $0x28]] }
  0xcb   : > { %6235 = sst [smem:[#allocation84_spill]] %s3663_s10  ;;  %s3708_s12 = sld [smem:[#allocation9 + $0x32]] }
  0xcc   : > { %1409 = vrot.lane.b32.xlu1 %v3363_v60, %s5940_s28  ;;  %1376 = vrot.lane.b32.xlu0 %v3406_v8, %s5940_s28  ;;  %6238 = sst [smem:[#allocation87_spill]] %s3690_s13  ;;  %s6246_s1 = sld [smem:[#allocation73_spill]] }
  0xcd   : > { %6239 = sst [smem:[#allocation88_spill]] %s3692_s18  ;;  %s3717_s4 = sld [smem:[#allocation9 + $0x56]] }
  0xce   : > { %6243 = sst [smem:[#allocation89_spill]] %s3706_s19  ;;  %s3719_s9 = sld [smem:[#allocation9 + $0x7a]] }
  0xcf   : > { %s3728_s8 = sld [smem:[#allocation9 + $0x7]]  ;;  %s3746_s22 = sld [smem:[#allocation9 + $0x33]] }
  0xd0   : > { %1439 = vrot.lane.b32.xlu1 %v3417_v11, %s5940_s28  ;;  %1406 = vrot.lane.b32.xlu0 %v3361_v59, %s5940_s28  ;;  %s3744_s14 = sld [smem:[#allocation9 + $0xf]]  ;;  %s3783_s0 = sld [smem:[#allocation9 + $0x52]] }
  0xd1   : > { %6244 = sst [smem:[#allocation90_spill]] %s3708_s12  ;;  %s3774_s12 = sld [smem:[#allocation9 + $0xa]] }
  0xd2   : > { %s3785_s3 = sld [smem:[#allocation9 + $0x76]]  ;;  %s3793_s29 = sld [smem:[#allocation9 + $0x35]] }
  0xd3   : > { %s3801_s23 = sld [smem:[#allocation9 + $0x59]]  ;;  %s6263_s15 = sld [smem:[#allocation89_spill]] }
  0xd4   : > { %1436 = vrot.lane.b32.xlu0 %v3425_v13, %s5940_s28  ;;  %6249 = sst [smem:[#allocation73_spill]] %s3719_s9  ;;  %s3776_s9 = sld [smem:[#allocation9 + $0x2e]] }
  0xd5   : > { %6252 = sst [smem:[#allocation91_spill]] %s3728_s8  ;;  %s3754_s8 = sld [smem:[#allocation9 + $0x7b]] }
  0xd6   : > { %s3816_s13 = sld [smem:[#allocation9 + $0x12]]  ;;  %s3818_s10 = sld [smem:[#allocation9 + $0x36]] }
  0xd7   : > { %s6271_s19 = sld [smem:[#allocation91_spill]]  ;;  %s3852_s7 = sld [smem:[#allocation9 + $0x38]] }
  0xd8   : > { %6260 = sst [smem:[#allocation94_spill]] %s3793_s29  ;;  %s3876_s17 = sld [smem:[#allocation9 + $0x31]] }
  0xd9   : > { %s3862_s2 = sld [smem:[#allocation9 + $0x80]]  ;;  %s3884_s18 = sld [smem:[#allocation9 + $0x79]] }
  0xda   : > { %s3951_s29 = sld [smem:[#allocation9 + $0x5f]] }
  0xdb   : > { %6257 = sst [smem:[#allocation93_spill]] %s3754_s8  ;;  %s3941_s8 = sld [smem:[#allocation9 + $0x3b]] }
  0xdc   : > { %6265 = sst [smem:[#allocation89_spill]] %s3816_s13  ;;  %s3975_s13 = sld [smem:[#allocation9 + $0x7f]] }
  0xdd   : > { %6267 = sst [smem:[#allocation96_spill]] %s3818_s10  ;;  %s3973_s10 = sld [smem:[#allocation9 + $0x5b]] }
  0xdf   : > { %6276 = sst [smem:[#allocation100_spill]] %s3862_s2  ;;  %s3989_s2 = sld [smem:[#allocation9 + $0x3a]] }
  0xe0   : > { %6290 = sst [smem:[#allocation114_spill]] %s3951_s29  ;;  %s4148_s29 = sld [smem:[#allocation9 + $0x42]] }
  0xe1   : > { %6287 = sst [smem:[#allocation111_spill]] %s3941_s8  ;;  %s4071_s8 = sld [smem:[#allocation9 + $0x61]] }
  0xe6   : > { %6337 = sst [smem:[#allocation161_spill]] %s4148_s29  ;;  %s6378_s29 = sld [smem:[#allocation66_spill]] }
 0x116   : > { %v423_v14 = vpop.permute.xlu1 %422 }
 0x117   : > { %v424_v16 = vsel %vm391_vm4, %v423_v14, %v3246_v12 }
 0x118   : > { %428 = vrot.lane.b32.xlu0 %v424_v16, %s5940_s28 }
 0x11a   : > { %v426_v18 = vpop.permute.xlu1 %425  ;;  %v393_v19 = vpop.permute.xlu0 %392 }
 0x11b   : > { %v427_v20 = vsel %vm391_vm4, %v426_v18, %v3248_v15  ;;  %v394_v38 = vsel %vm391_vm4, %v393_v19, %v3276_v25 }
 0x11c   : > { %430 = vrot.lane.b32.xlu1 %v427_v20, %s5940_s28 }
 0x11e   : > { %v456_v23 = vpop.permute.xlu1 %455  ;;  %v396_v24 = vpop.permute.xlu0 %395 }
 0x11f   : > { %v397_v27 = vsel %vm391_vm4, %v396_v24, %v3290_v30  ;;  %v457_v53 = vsel %vm391_vm4, %v456_v23, %v3283_v26 }
 0x120   : > { %400 = vrot.lane.b32.xlu1 %v397_v27, %s5940_s28 }
 0x122   : > { %v724_v28 = vpop.permute.xlu1 %723  ;;  %v453_v29 = vpop.permute.xlu0 %452 }
 0x123   : > { %v725_v31 = vsel %vm391_vm4, %v724_v28, %v3301_v34  ;;  %v454_v32 = vsel %vm391_vm4, %v453_v29, %v3305_v37 }
 0x124   : > { %458 = vrot.lane.b32.xlu0 %v454_v32, %s5940_s28  ;;  %728 = vrot.lane.b32.xlu1 %v725_v31, %s5940_s28 }
 0x126   : > { %v754_v33 = vpop.permute.xlu1 %753  ;;  %v721_v35 = vpop.permute.xlu0 %720 }
 0x127   : > { %v755_v36 = vsel %vm391_vm4, %v754_v33, %v3265_v22  ;;  %v722_v14 = vsel %vm391_vm4, %v721_v35, %v3322_v43 }
 0x128   : > { %398 = vrot.lane.b32.xlu0 %v394_v38, %s5940_s28  ;;  %758 = vrot.lane.b32.xlu1 %v755_v36, %s5940_s28 }
 0x12a   : > { %v784_v39 = vpop.permute.xlu1 %783  ;;  %v751_v40 = vpop.permute.xlu0 %750 }
 0x12b   : > { %v752_v44 = vsel %vm391_vm4, %v751_v40, %v3262_v21  ;;  %v785_v18 = vsel %vm391_vm4, %v784_v39, %v3333_v45 }
 0x12c   : > { %756 = vrot.lane.b32.xlu0 %v752_v44, %s5940_s28 }
 0x12e   : > { %v1052_v46 = vpop.permute.xlu1 %1051  ;;  %v781_v47 = vpop.permute.xlu0 %780 }
 0x12f   : > { %v1053_v48 = vsel %vm391_vm4, %v1052_v46, %v3347_v52  ;;  %v782_v49 = vsel %vm391_vm4, %v781_v47, %v3351_v55 }
 0x130   : > { %1056 = vrot.lane.b32.xlu1 %v1053_v48, %s5940_s28  ;;  %786 = vrot.lane.b32.xlu0 %v782_v49, %s5940_s28 }
 0x132   : > { %v1082_v50 = vpop.permute.xlu1 %1081  ;;  %v1049_v51 = vpop.permute.xlu0 %1048 }
 0x133   : > { %v1083_v54 = vsel %vm391_vm4, %v1082_v50, %v3317_v42  ;;  %v1050_v29 = vsel %vm391_vm4, %v1049_v51, %v3368_v61 }
 0x134   : > { %460 = vrot.lane.b32.xlu1 %v457_v53, %s5940_s28 }
 0x136   : > { %v1112_v56 = vpop.permute.xlu1 %1111  ;;  %v1079_v57 = vpop.permute.xlu0 %1078 }
 0x137   : > { %v1080_v58 = vsel %vm391_vm4, %v1079_v57, %v3315_v41  ;;  %v1113_v20 = vsel %vm391_vm4, %v1112_v56, %v3379_v63 }
 0x138   : > { %1086 = vrot.lane.b32.xlu1 %v1083_v54, %s5940_s28  ;;  %1084 = vrot.lane.b32.xlu0 %v1080_v58, %s5940_s28 }
 0x13a   : > { %v1380_v62 = vpop.permute.xlu1 %1379  ;;  %v1109_v0 = vpop.permute.xlu0 %1108 }
 0x13b   : > { %v1381_v1 = vsel %vm391_vm4, %v1380_v62, %v3389_v2  ;;  %v1110_v5 = vsel %vm391_vm4, %v1109_v0, %v3393_v4 }
 0x13c   : > { %1384 = vrot.lane.b32.xlu1 %v1381_v1, %s5940_s28  ;;  %1114 = vrot.lane.b32.xlu0 %v1110_v5, %s5940_s28 }
 0x13e   : > { %v1410_v6 = vpop.permute.xlu1 %1409  ;;  %v1377_v7 = vpop.permute.xlu0 %1376 }
 0x13f   : > { %v1411_v10 = vsel %vm391_vm4, %v1410_v6, %v3363_v60  ;;  %v1378_v31 = vsel %vm391_vm4, %v1377_v7, %v3406_v8 }
 0x140   : > { %1414 = vrot.lane.b32.xlu1 %v1411_v10, %s5940_s28  ;;  %726 = vrot.lane.b32.xlu0 %v722_v14, %s5940_s28 }
 0x142   : > { %v1407_v16 = vpop.permute.xlu0 %1406  ;;  %v1440_v23 = vpop.permute.xlu1 %1439 }
 0x143   : > { %v1408_v19 = vsel %vm391_vm4, %v1407_v16, %v3361_v59  ;;  %v1441_v28 = vsel %vm391_vm4, %v1440_v23, %v3417_v11 }
 0x144   : > { %788 = vrot.lane.b32.xlu1 %v785_v18, %s5940_s28  ;;  %1412 = vrot.lane.b32.xlu0 %v1408_v19, %s5940_s28 }
 0x146   : > { %v1437_v24 = vpop.permute.xlu0 %1436 }
 0x147   : > { %v1438_v27 = vsel %vm391_vm4, %v1437_v24, %v3425_v13 }
 0x148   : > { %1116 = vrot.lane.b32.xlu1 %v1113_v20, %s5940_s28  ;;  %1442 = vrot.lane.b32.xlu0 %v1438_v27, %s5940_s28 }
 0x14c   : > { %1444 = vrot.lane.b32.xlu1 %v1441_v28, %s5940_s28  ;;  %1054 = vrot.lane.b32.xlu0 %v1050_v29, %s5940_s28 }
 0x150   : > { %1382 = vrot.lane.b32.xlu0 %v1378_v31, %s5940_s28  ;;  %s3598_s28 = sld [smem:[#allocation9 + $0x48]] }
 0x156   : > { %6211 = sst [smem:[#allocation62_spill]] %s3598_s28 }
 0x18a   : > { %v429_v32 = vpop.permute.xlu0 %428 }
 0x18b   : > { %v432_v33 = vsel %vm391_vm4, %v429_v32, %v3246_v12 }
 0x18c   : > { %436 = vrot.lane.b32.xlu0 %v432_v33, %s5942_s11 }
 0x18e   : > { %v431_v35 = vpop.permute.xlu1 %430 }
 0x18f   : > { %v433_v36 = vsel %vm391_vm4, %v431_v35, %v3248_v15 }
 0x190   : > { %444 = vrot.lane.b32.xlu0 %v432_v33, %s5952_s21  ;;  %438 = vrot.lane.b32.xlu1 %v433_v36, %s5942_s11 }
 0x192   : > { %v401_v38 = vpop.permute.xlu1 %400 }
 0x193   : > { %v403_v50 = vsel %vm391_vm4, %v401_v38, %v3290_v30  ;;  %v925_v38 = vstv %s3884_s18  ;;  %s4027_s18 = sld [smem:[#allocation9 + $0x63]] }
 0x194   : > { %446 = vrot.lane.b32.xlu1 %v433_v36, %s5952_s21 }
 0x196   : > { %v459_v39 = vpop.permute.xlu0 %458  ;;  %v729_v40 = vpop.permute.xlu1 %728 }
 0x197   : > { %v462_v51 = vsel %vm391_vm4, %v459_v39, %v3305_v37  ;;  %v731_v54 = vsel %vm391_vm4, %v729_v40, %v3301_v34 }
 0x199   : > { %6306 = sst [smem:[#allocation130_spill]] %s4027_s18 }
 0x19a   : > { %v399_v44 = vpop.permute.xlu0 %398  ;;  %v759_v46 = vpop.permute.xlu1 %758  ;;  %s4172_s18 = sld [smem:[#allocation9 + $0x41]] }
 0x19b   : > { %v761_v47 = vsel %vm391_vm4, %v759_v46, %v3265_v22  ;;  %v402_v57 = vsel %vm391_vm4, %v399_v44, %v3276_v25  ;;  %v847_v46 = vstv %s3783_s0  ;;  %s3904_s0 = sld [smem:[#allocation9 + $0x81]] }
 0x19c   : > { %766 = vrot.lane.b32.xlu1 %v761_v47, %s5942_s11 }
 0x19e   : > { %v757_v48 = vpop.permute.xlu0 %756 }
 0x19f   : > { %v760_v49 = vsel %vm391_vm4, %v757_v48, %v3262_v21 }
 0x1a0   : > { %764 = vrot.lane.b32.xlu0 %v760_v49, %s5942_s11  ;;  %408 = vrot.lane.b32.xlu1 %v403_v50, %s5942_s11  ;;  %6345 = sst [smem:[#allocation169_spill]] %s4172_s18 }
 0x1a1   : > { %6280 = sst [smem:[#allocation104_spill]] %s3904_s0  ;;  %s4057_s0 = sld [smem:[#allocation9 + $0x84]] }
 0x1a2   : > { %v1057_v53 = vpop.permute.xlu1 %1056  ;;  %v787_v56 = vpop.permute.xlu0 %786  ;;  %s6383_s18 = sld [smem:[#allocation52_spill]] }
 0x1a3   : > { %v790_v6 = vsel %vm391_vm4, %v787_v56, %v3351_v55  ;;  %v1059_v14 = vsel %vm391_vm4, %v1057_v53, %v3347_v52  ;;  %v579_v56 = vstv %s3669_s26  ;;  %s3791_s26 = sld [smem:[#allocation9 + $0x11]] }
 0x1a4   : > { %466 = vrot.lane.b32.xlu0 %v462_v51, %s5942_s11  ;;  %416 = vrot.lane.b32.xlu1 %v403_v50, %s5952_s21 }
 0x1a6   : > { %v461_v58 = vpop.permute.xlu1 %460 }
 0x1a7   : > { %v463_v1 = vsel %vm391_vm4, %v461_v58, %v3283_v26  ;;  %6315 = sst [smem:[#allocation139_spill]] %s4057_s0  ;;  %s4205_s0 = sld [smem:[#allocation9 + $0x67]] }
 0x1a8   : > { %474 = vrot.lane.b32.xlu0 %v462_v51, %s5952_s21  ;;  %736 = vrot.lane.b32.xlu1 %v731_v54, %s5942_s11  ;;  %v3799_v51 = vmul.f32 %v579_v56, %v3248_v15 }
 0x1aa   : > { %v1085_v62 = vpop.permute.xlu0 %1084  ;;  %v1087_v0 = vpop.permute.xlu1 %1086 }
 0x1ab   : > { %v1089_v20 = vsel %vm391_vm4, %v1087_v0, %v3317_v42  ;;  %v1088_v27 = vsel %vm391_vm4, %v1085_v62, %v3315_v41 }
 0x1ac   : > { %406 = vrot.lane.b32.xlu0 %v402_v57, %s5942_s11  ;;  %744 = vrot.lane.b32.xlu1 %v731_v54, %s5952_s21 }
 0x1ad   : > { %6352 = sst [smem:[#allocation176_spill]] %s4205_s0 }
 0x1ae   : > { %v1115_v5 = vpop.permute.xlu0 %1114  ;;  %v1385_v7 = vpop.permute.xlu1 %1384 }
 0x1af   : > { %v1387_v32 = vsel %vm391_vm4, %v1385_v7, %v3389_v2  ;;  %v1118_v35 = vsel %vm391_vm4, %v1115_v5, %v3393_v4  ;;  %v507_v7 = vstv %s3614_s24  ;;  %s3850_s24 = sld [smem:[#allocation9 + $0x14]] }
 0x1b0   : > { %414 = vrot.lane.b32.xlu0 %v402_v57, %s5952_s21  ;;  %774 = vrot.lane.b32.xlu1 %v761_v47, %s5952_s21  ;;  %v841_v47 = vstv %s3776_s9  ;;  %s3921_s9 = sld [smem:[#allocation9 + $0x34]] }
 0x1b1   : > { %v3911_v5 = vmul.f32 %v841_v47, %v3301_v34 }
 0x1b2   : > { %v727_v10 = vpop.permute.xlu0 %726  ;;  %v3544_v16 = vpop.permute.xlu1 %1414 }
 0x1b3   : > { %v730_v18 = vsel %vm391_vm4, %v727_v10, %v3322_v43  ;;  %v513_v10 = vstv %s3616_s27  ;;  %s3860_s27 = sld [smem:[#allocation9 + $0x5c]]  ;;  %6282 = vst [vmem:[#allocation106_spill] sm:$0xff] %v3911_v5 }
 0x1b4   : > { %772 = vrot.lane.b32.xlu0 %v760_v49, %s5952_s21  ;;  %468 = vrot.lane.b32.xlu1 %v463_v1, %s5942_s11  ;;  %v3841_v53 = vmul.f32 %v513_v10, %v3276_v25 }
 0x1b5   : > { %6273 = sst [smem:[#allocation91_spill]] %s3850_s24  ;;  %s4182_s24 = sld [smem:[#allocation9 + $0x89]] }
 0x1b6   : > { %v3548_v19 = vpop.permute.xlu0 %1412  ;;  %v789_v23 = vpop.permute.xlu1 %788 }
 0x1b7   : > { %v791_v28 = vsel %vm391_vm4, %v789_v23, %v3333_v45  ;;  %v3676_v49 = vsel %vm391_vm4, %v3548_v19, %v3361_v59  ;;  %v3722_v23 = vand.u32 127, %v350_v3  ;;  %v3740_v3 = vmul.f32 %v513_v10, %v3290_v30 }
 0x1b8   : > { %794 = vrot.lane.b32.xlu0 %v790_v6, %s5942_s11  ;;  %476 = vrot.lane.b32.xlu1 %v463_v1, %s5952_s21  ;;  %v853_v19 = vstv %s3785_s3  ;;  %s3919_s3 = sld [smem:[#allocation9 + $0x10]] }
 0x1b9   : > { %6275 = sst [smem:[#allocation99_spill]] %s3860_s27  ;;  %s4001_s27 = sld [smem:[#allocation9 + $0x5e]]  ;;  %vm359_vm5 = vcmp.eq.s32.totalorder %v3722_v23, 0  ;;  %vm360_vm6 = vcmp.eq.s32.totalorder %v3722_v23, 15 }
 0x1ba   : > { %v3556_v24 = vpop.permute.xlu0 %1442  ;;  %v1117_v33 = vpop.permute.xlu1 %1116 }
 0x1bb   : > { %v1119_v36 = vsel %vm391_vm4, %v1117_v33, %v3379_v63  ;;  %v1446_v10 = vsel %vm391_vm4, %v3556_v24, %v3425_v13  ;;  %6347 = sst [smem:[#allocation171_spill]] %s4182_s24  ;;  %s6374_s24 = sld [smem:[#allocation64_spill]] }
 0x1bc   : > { %802 = vrot.lane.b32.xlu0 %v790_v6, %s5952_s21  ;;  %1064 = vrot.lane.b32.xlu1 %v1059_v14, %s5942_s11 }
 0x1be   : > { %v1055_v29 = vpop.permute.xlu0 %1054 }
 0x1bf   : > { %v1058_v31 = vsel %vm391_vm4, %v1055_v29, %v3368_v61 }
 0x1c0   : > { %734 = vrot.lane.b32.xlu0 %v730_v18, %s5942_s11  ;;  %1072 = vrot.lane.b32.xlu1 %v1059_v14, %s5952_s21 }
 0x1c2   : > { %v1383_v54 = vpop.permute.xlu0 %1382 }
 0x1c3   : > { %v1386_v14 = vsel %vm391_vm4, %v1383_v54, %v3406_v8  ;;  %v585_v54 = vstv %s3671_s6  ;;  %s6262_s6 = smov 113  }
 0x1c4   : > { %742 = vrot.lane.b32.xlu0 %v730_v18, %s5952_s21  ;;  %1094 = vrot.lane.b32.xlu1 %v1089_v20, %s5942_s11  ;;  %v1417_v18 = vsel %vm391_vm4, %v3544_v16, %v3363_v60  ;;  %v3735_v16 = vmul.f32 %v507_v7, %v3290_v30 }
 0x1c8   : > { %1092 = vrot.lane.b32.xlu0 %v1088_v27, %s5942_s11  ;;  %796 = vrot.lane.b32.xlu1 %v791_v28, %s5942_s11 }
 0x1cc   : > { %1100 = vrot.lane.b32.xlu0 %v1088_v27, %s5952_s21  ;;  %804 = vrot.lane.b32.xlu1 %v791_v28, %s5952_s21  ;;  %v3809_v28 = vmul.f32 %v579_v56, %v3246_v12  ;;  %v3829_v56 = vmul.f32 %v507_v7, %v3276_v25  ;;  %v3832_v27 = vmul.f32 %v585_v54, %v3248_v15  ;;  %v835_v7 = vstv %s3774_s12  ;;  %s3902_s12 = sld [smem:[#allocation9 + $0x5d]] }
 0x1cd   : > { %v3908_v6 = vmul.f32 %v835_v7, %v3301_v34  ;;  %v3971_v58 = vmul.f32 %v835_v7, %v3322_v43  ;;  %v913_v7 = vstv %s3876_s17  ;;  %s4003_s17 = sld [smem:[#allocation9 + $0x82]] }
 0x1cf   : > { %6281 = vst [vmem:[#allocation105_spill] sm:$0xff] %v3908_v6  ;;  %6294 = vst [vmem:[#allocation118_spill] sm:$0xff] %v3971_v58 }
 0x1d0   : > { %1062 = vrot.lane.b32.xlu0 %v1058_v31, %s5942_s11  ;;  %1102 = vrot.lane.b32.xlu1 %v1089_v20, %s5952_s21  ;;  %s3610_s11 = sld [smem:[#allocation10 + $0x3]] }
 0x1d2   : > { %6279 = sst [smem:[#allocation103_spill]] %s3902_s12 }
 0x1d3   : > { %s4063_s12 = sld [smem:[#allocation9 + $0x19]] }
 0x1d4   : > { %1070 = vrot.lane.b32.xlu0 %v1058_v31, %s5952_s21  ;;  %1392 = vrot.lane.b32.xlu1 %v1387_v32, %s6217_s25  ;;  %s3630_s21 = sld [smem:[#allocation9 + $0x49]]  ;;  %v525_v31 = vstv %s6246_s1  ;;  %s3760_s1 = sld [smem:[#allocation9 + $0x4f]] }
 0x1d5   : > { %v3770_v33 = vmul.f32 %v525_v31, %v3290_v30  ;;  %v3847_v48 = vmul.f32 %v525_v31, %v3276_v25 }
 0x1d6   : > { %6216 = sst [smem:[#allocation67_spill]] %s3610_s11  ;;  %s6231_s11 = smov 127  }
 0x1d8   : > { %1122 = vrot.lane.b32.xlu0 %v1118_v35, %s6217_s25  ;;  %1124 = vrot.lane.b32.xlu1 %v1119_v36, %s6217_s25 }
 0x1da   : > { %6222 = sst [smem:[#allocation72_spill]] %s3630_s21  ;;  %s3644_s21 = sld [smem:[#allocation9 + $0x8]] }
 0x1db   : > { %s6245_s28 = sld [smem:[#allocation72_spill]] }
 0x1dc   : > { %1130 = vrot.lane.b32.xlu0 %v1118_v35, %s6231_s11  ;;  %1132 = vrot.lane.b32.xlu1 %v1119_v36, %s6231_s11  ;;  %6247 = sst [smem:[#allocation72_spill]] %s3717_s4  ;;  %s3730_s4 = sld [smem:[#allocation9 + $0x2b]]  ;;  %v597_v36 = vstv %s3700_s20 }
 0x1dd   : > { %v3824_v57 = vmul.f32 %v597_v36, %v3246_v12  ;;  %s3834_s20 = sld [smem:[#allocation9 + $0x5a]]  ;;  %v3870_v24 = vmul.f32 %v597_v36, %v3248_v15 }
 0x1e0   : > { %6227 = sst [smem:[#allocation77_spill]] %s3644_s21  ;;  %s3661_s21 = sld [smem:[#allocation9 + $0x51]]  ;;  %1420 = vrot.lane.b32.xlu0 %v3676_v49, %s6217_s25  ;;  %1400 = vrot.lane.b32.xlu1 %v1387_v32, %s6231_s11  ;;  %v1445_v32 = vpop.permute.xlu1 %1444 }
 0x1e1   : > { %v519_v29 = vstv %s6245_s28  ;;  %s3762_s28 = sld [smem:[#allocation9 + $0x73]] }
 0x1e2   : > { %6254 = sst [smem:[#allocation92_spill]] %s3730_s4  ;;  %s3752_s4 = sld [smem:[#allocation9 + $0x57]]  ;;  %v3767_v35 = vmul.f32 %v519_v29, %v3290_v30  ;;  %v3844_v50 = vmul.f32 %v519_v29, %v3276_v25  ;;  %v651_v29 = vstv %s6271_s19 }
 0x1e3   : > { %6269 = sst [smem:[#allocation97_spill]] %s3834_s20  ;;  %s6272_s16 = sld [smem:[#allocation92_spill]]  ;;  %v3897_v44 = vmul.f32 %v651_v29, %v3283_v26  ;;  %v3946_v62 = vmul.f32 %v651_v29, %v3305_v37  ;;  %v3984_v29 = vmul.f32 %v853_v19, %v3322_v43 }
 0x1e4   : > { %1390 = vrot.lane.b32.xlu0 %v1386_v14, %s6217_s25  ;;  %1422 = vrot.lane.b32.xlu1 %v1417_v18, %s6217_s25  ;;  %6274 = sst [smem:[#allocation92_spill]] %s3852_s7  ;;  %s3874_s25 = sld [smem:[#allocation9 + $0xd]] }
 0x1e5   : > { %s3890_s19 = sld [smem:[#allocation9 + $0x15]]  ;;  %6288 = vst [vmem:[#allocation112_spill] sm:$0xff] %v3946_v62  ;;  %s3965_s20 = sld [smem:[#allocation9 + $0x37]]  ;;  %6297 = vst [vmem:[#allocation121_spill] sm:$0xff] %v3984_v29  ;;  %v4012_v29 = vmul.f32 %v925_v38, %v3262_v21  ;;  %v6416_v62 = vstv %s6383_s18 }
 0x1e6   : > { %6234 = sst [smem:[#allocation83_spill]] %s3661_s21  ;;  %s4019_s7 = sld [smem:[#allocation9 + $0x3f]] }
 0x1e7   : > { %s3803_s21 = sld [smem:[#allocation9 + $0x7d]]  ;;  %v669_v36 = vstv %s3762_s28  ;;  %s3933_s28 = sld [smem:[#allocation9 + $0x7c]]  ;;  %6302 = vst [vmem:[#allocation126_spill] sm:$0xff] %v4012_v29  ;;  %v4035_v29 = vmul.f32 %v925_v38, %v3265_v22 }
 0x1e8   : > { %1398 = vrot.lane.b32.xlu0 %v1386_v14, %s6231_s11  ;;  %1430 = vrot.lane.b32.xlu1 %v1417_v18, %s6231_s11  ;;  %v1447_v14 = vsel %vm391_vm4, %v1445_v32, %v3417_v11  ;;  %v3812_v32 = vmul.f32 %v585_v54, %v3246_v12  ;;  %v591_v18 = vstv %s3698_s30  ;;  %s3836_s30 = sld [smem:[#allocation9 + $0x7e]]  ;;  %v663_v54 = vstv %s3760_s1  ;;  %s3931_s1 = sld [smem:[#allocation9 + $0x58]] }
 0x1e9   : > { %v3867_v31 = vmul.f32 %v591_v18, %v3248_v15  ;;  %v657_v20 = vstv %s6272_s16  ;;  %s3892_s16 = sld [smem:[#allocation9 + $0x39]]  ;;  %v3927_v1 = vmul.f32 %v669_v36, %v3283_v26  ;;  %v3956_v39 = vmul.f32 %v663_v54, %v3305_v37  ;;  %6309 = vst [vmem:[#allocation133_spill] sm:$0xff] %v4035_v29 }
 0x1ea   : > { %v3900_v40 = vmul.f32 %v657_v20, %v3283_v26  ;;  %v3949_v13 = vmul.f32 %v657_v20, %v3305_v37  ;;  %v3959_v17 = vmul.f32 %v669_v36, %v3305_v37  ;;  %v907_v9 = vstv %s3874_s25  ;;  %s3987_s25 = sld [smem:[#allocation9 + $0x16]] }
 0x1eb   : > { %6277 = sst [smem:[#allocation101_spill]] %s3890_s19  ;;  %6285 = vst [vmem:[#allocation109_spill] sm:$0xff] %v3927_v1  ;;  %6292 = vst [vmem:[#allocation116_spill] sm:$0xff] %v3956_v39  ;;  %v3981_v36 = vmul.f32 %v847_v46, %v3322_v43  ;;  %v3992_v0 = vmul.f32 %v907_v9, %v3262_v21  ;;  %v979_v11 = vstv %s3919_s3  ;;  %s4158_s19 = sld [smem:[#allocation9 + $0x66]] }
 0x1ec   : > { %1428 = vrot.lane.b32.xlu0 %v3676_v49, %s6231_s11  ;;  %1452 = vrot.lane.b32.xlu1 %v1447_v14, %s6262_s6  ;;  %v3821_v49 = vmul.f32 %v591_v18, %v3246_v12  ;;  %v3914_v18 = vmul.f32 %v847_v46, %v3301_v34  ;;  %6289 = vst [vmem:[#allocation113_spill] sm:$0xff] %v3949_v13  ;;  %6293 = vst [vmem:[#allocation117_spill] sm:$0xff] %v3959_v17  ;;  %6304 = sst [smem:[#allocation128_spill]] %s4019_s7  ;;  %s4029_s3 = sld [smem:[#allocation9 + $0x87]] }
 0x1ed   : > { %6261 = sst [smem:[#allocation95_spill]] %s3803_s21  ;;  %s3953_s21 = sld [smem:[#allocation9 + $0x83]]  ;;  %6296 = vst [vmem:[#allocation120_spill] sm:$0xff] %v3981_v36  ;;  %6298 = vst [vmem:[#allocation122_spill] sm:$0xff] %v3992_v0  ;;  %v985_v0 = vstv %s3921_s9 }
 0x1ee   : > { %6270 = sst [smem:[#allocation98_spill]] %s3836_s30  ;;  %6283 = vst [vmem:[#allocation107_spill] sm:$0xff] %v3914_v18  ;;  %s3963_s30 = sld [smem:[#allocation9 + $0x13]]  ;;  %v991_v36 = vstv %s3931_s1 }
 0x1ef   : > { %6278 = sst [smem:[#allocation102_spill]] %s3892_s16  ;;  %s4045_s1 = sld [smem:[#allocation9 + $0x3c]] }
 0x1f0   : > { %1450 = vrot.lane.b32.xlu0 %v1446_v10, %s6262_s6  ;;  %1460 = vrot.lane.b32.xlu1 %v1447_v14, %s6231_s11  ;;  %s3882_s6 = sld [smem:[#allocation9 + $0x55]]  ;;  %v3917_v14 = vmul.f32 %v663_v54, %v3283_v26  ;;  %v3978_v54 = vmul.f32 %v841_v47, %v3322_v43  ;;  %v3995_v47 = vmul.f32 %v913_v7, %v3262_v21  ;;  %s4043_s9 = sld [smem:[#allocation9 + $0x18]] }
 0x1f1   : > { %s4073_s16 = sld [smem:[#allocation9 + $0x85]]  ;;  %6340 = sst [smem:[#allocation164_spill]] %s4158_s19 }
 0x1f2   : > { %6295 = vst [vmem:[#allocation119_spill] sm:$0xff] %v3978_v54  ;;  %6299 = vst [vmem:[#allocation123_spill] sm:$0xff] %v3995_v47  ;;  %6307 = sst [smem:[#allocation131_spill]] %s4029_s3  ;;  %v1181_v54 = vstv %s3975_s13  ;;  %s4118_s13 = sld [smem:[#allocation9 + $0x1c]] }
 0x1f3   : > { %6291 = sst [smem:[#allocation115_spill]] %s3953_s21  ;;  %s4160_s7 = sld [smem:[#allocation9 + $0x8a]] }
 0x1f4   : > { %1458 = vrot.lane.b32.xlu0 %v1446_v10, %s6231_s11  ;;  %v3924_v10 = vmul.f32 %v853_v19, %v3301_v34  ;;  %s3939_s11 = sld [smem:[#allocation9 + $0x17]]  ;;  %v3999_v19 = vmul.f32 %v907_v9, %v3265_v22  ;;  %v4050_v9 = vmul.f32 %v991_v36, %v3333_v45  ;;  %v1163_v29 = vstv %s3963_s30  ;;  %s4085_s30 = sld [smem:[#allocation9 + $0x3e]] }
 0x1f5   : > { %v4090_v18 = vmul.f32 %v1163_v29, %v3347_v52  ;;  %s4146_s21 = sld [smem:[#allocation9 + $0x1e]]  ;;  %s4170_s3 = sld [smem:[#allocation9 + $0x1d]] }
 0x1f6   : > { %6284 = vst [vmem:[#allocation108_spill] sm:$0xff] %v3924_v10  ;;  %v919_v46 = vstv %s3882_s6  ;;  %6300 = vst [vmem:[#allocation124_spill] sm:$0xff] %v3999_v19  ;;  %v997_v10 = vstv %s3933_s28  ;;  %s4017_s6 = sld [smem:[#allocation9 + $0x1b]]  ;;  %v4038_v19 = vmul.f32 %v979_v11, %v3333_v45  ;;  %s4055_s28 = sld [smem:[#allocation9 + $0x60]] }
 0x1f7   : > { %v4006_v20 = vmul.f32 %v919_v46, %v3262_v21  ;;  %v4032_v47 = vmul.f32 %v919_v46, %v3265_v22  ;;  %6312 = vst [vmem:[#allocation136_spill] sm:$0xff] %v4050_v9  ;;  %v4053_v38 = vmul.f32 %v997_v10, %v3333_v45  ;;  %v1175_v46 = vstv %s3973_s10  ;;  %6320 = vst [vmem:[#allocation144_spill] sm:$0xff] %v4090_v18  ;;  %s4101_s10 = sld [smem:[#allocation9 + $0x62]]  ;;  %s6367_s19 = sld [smem:[#allocation50_spill]] }
 0x1f8   : > { %6310 = vst [vmem:[#allocation134_spill] sm:$0xff] %v4038_v19  ;;  %v1235_v9 = vstv %s3987_s25  ;;  %v1247_v19 = vstv %s4001_s27  ;;  %v4110_v18 = vmul.f32 %v1181_v54, %v3347_v52  ;;  %s4120_s27 = sld [smem:[#allocation9 + $0x40]]  ;;  %s4134_s25 = sld [smem:[#allocation9 + $0x64]] }
 0x1f9   : > { %6301 = vst [vmem:[#allocation125_spill] sm:$0xff] %v4006_v20  ;;  %v4025_v20 = vmul.f32 %v913_v7, %v3265_v22  ;;  %6308 = vst [vmem:[#allocation132_spill] sm:$0xff] %v4032_v47  ;;  %v4041_v7 = vmul.f32 %v985_v0, %v3333_v45  ;;  %v1169_v47 = vstv %s3965_s20  ;;  %v1253_v45 = vstv %s4003_s17  ;;  %s4083_s20 = sld [smem:[#allocation9 + $0x1a]]  ;;  %s4136_s17 = sld [smem:[#allocation9 + $0x88]] }
 0x1fa   : > { %6286 = sst [smem:[#allocation110_spill]] %s3939_s11  ;;  %6313 = vst [vmem:[#allocation137_spill] sm:$0xff] %v4053_v38  ;;  %s4065_s11 = sld [smem:[#allocation9 + $0x3d]]  ;;  %v4076_v38 = vmul.f32 %v979_v11, %v3351_v55  ;;  %v4093_v5 = vmul.f32 %v1169_v47, %v3347_v52  ;;  %v4096_v11 = vmul.f32 %v991_v36, %v3351_v55  ;;  %6327 = vst [vmem:[#allocation151_spill] sm:$0xff] %v4110_v18 }
 0x1fb   : > { %6305 = vst [vmem:[#allocation129_spill] sm:$0xff] %v4025_v20  ;;  %6311 = vst [vmem:[#allocation135_spill] sm:$0xff] %v4041_v7  ;;  %v1241_v20 = vstv %s3989_s2  ;;  %v4079_v7 = vmul.f32 %v985_v0, %v3351_v55  ;;  %6319 = sst [smem:[#allocation143_spill]] %s4085_s30  ;;  %v4099_v0 = vmul.f32 %v997_v10, %v3351_v55  ;;  %v4113_v36 = vmul.f32 %v1235_v9, %v3317_v42  ;;  %s4327_s30 = sld [smem:[#allocation9 + $0x21]] }
 0x1fc   : > { %6303 = sst [smem:[#allocation127_spill]] %s4017_s6  ;;  %6316 = vst [vmem:[#allocation140_spill] sm:$0xff] %v4076_v38  ;;  %6321 = vst [vmem:[#allocation145_spill] sm:$0xff] %v4093_v5  ;;  %s4103_s2 = sld [smem:[#allocation9 + $0x86]]  ;;  %v4116_v10 = vmul.f32 %v1241_v20, %v3317_v42  ;;  %v4129_v18 = vmul.f32 %v1163_v29, %v3368_v61  ;;  %v1325_v5 = vstv %s4073_s16 }
 0x1fd   : > { %6314 = sst [smem:[#allocation138_spill]] %s4055_s28  ;;  %6317 = vst [vmem:[#allocation141_spill] sm:$0xff] %v4079_v7  ;;  %6322 = vst [vmem:[#allocation146_spill] sm:$0xff] %v4096_v11  ;;  %v4107_v7 = vmul.f32 %v1175_v46, %v3347_v52  ;;  %s4180_s6 = sld [smem:[#allocation9 + $0x65]] }
 0x1fe   : > { %6323 = vst [vmem:[#allocation147_spill] sm:$0xff] %v4099_v0  ;;  %6324 = sst [smem:[#allocation148_spill]] %s4101_s10  ;;  %6328 = vst [vmem:[#allocation152_spill] sm:$0xff] %v4113_v36  ;;  %v4123_v0 = vmul.f32 %v1247_v19, %v3317_v42  ;;  %v4132_v36 = vmul.f32 %v1169_v47, %v3368_v61  ;;  %v437_v29 = vpop.permute.xlu0 %436  ;;  %v1319_v47 = vstv %s4071_s8  ;;  %s6357_s8 = sld [smem:[#allocation48_spill]] }
 0x1ff   : > { %6318 = sst [smem:[#allocation142_spill]] %s4083_s20  ;;  %6326 = vst [vmem:[#allocation150_spill] sm:$0xff] %v4107_v7  ;;  %6329 = vst [vmem:[#allocation153_spill] sm:$0xff] %v4116_v10  ;;  %v4126_v7 = vmul.f32 %v1253_v45, %v3317_v42  ;;  %v4139_v10 = vmul.f32 %v1175_v46, %v3368_v61  ;;  %v4153_v46 = vmul.f32 %v1235_v9, %v3315_v41  ;;  %s6359_s16 = sld [smem:[#allocation49_spill]] }
 0x200   : > { %6330 = vst [vmem:[#allocation154_spill] sm:$0xff] %v4123_v0  ;;  %6332 = vst [vmem:[#allocation156_spill] sm:$0xff] %v4129_v18  ;;  %v4142_v0 = vmul.f32 %v1181_v54, %v3368_v61  ;;  %6336 = sst [smem:[#allocation160_spill]] %s4146_s21  ;;  %v4163_v54 = vmul.f32 %v1247_v19, %v3315_v41  ;;  %v1313_v19 = vstv %s4065_s11  ;;  %v4196_v9 = vmul.f32 %v1319_v47, %v3393_v4  ;;  %s4203_s11 = sld [smem:[#allocation9 + $0x43]] }
 0x201   : > { %6331 = vst [vmem:[#allocation155_spill] sm:$0xff] %v4126_v7  ;;  %6333 = vst [vmem:[#allocation157_spill] sm:$0xff] %v4132_v36  ;;  %6341 = sst [smem:[#allocation165_spill]] %s4160_s7  ;;  %v4166_v7 = vmul.f32 %v1253_v45, %v3315_v41  ;;  %v4189_v36 = vmul.f32 %v1313_v19, %v3393_v4  ;;  %v1491_v18 = vstv %s4118_s13  ;;  %v4222_v61 = vmul.f32 %v1319_v47, %v3379_v63  ;;  %s6363_s13 = sld [smem:[#allocation60_spill]] }
 0x202   : > { %v4087_v58 = vpop.permute.xlu1 %438  ;;  %6325 = sst [smem:[#allocation149_spill]] %s4103_s2  ;;  %6334 = vst [vmem:[#allocation158_spill] sm:$0xff] %v4139_v10  ;;  %6335 = vst [vmem:[#allocation159_spill] sm:$0xff] %v4142_v0  ;;  %v4156_v10 = vmul.f32 %v1241_v20, %v3315_v41  ;;  %v4235_v42 = vmul.f32 %v1491_v18, %v3389_v2  ;;  %s6366_s7 = sld [smem:[#allocation63_spill]] }
 0x203   : > { %6338 = vst [vmem:[#allocation162_spill] sm:$0xff] %v4153_v46  ;;  %6342 = vst [vmem:[#allocation166_spill] sm:$0xff] %v4163_v54  ;;  %6344 = sst [smem:[#allocation168_spill]] %s4170_s3  ;;  %v4216_v54 = vmul.f32 %v1313_v19, %v3379_v63  ;;  %v1497_v46 = vstv %s4120_s27  ;;  %v442_v19 = vsel %vm359_vm5, %v3246_v12, %v437_v29  ;;  %s4247_s27 = sld [smem:[#allocation9 + $0x20]] }
 0x204   : > { %6339 = vst [vmem:[#allocation163_spill] sm:$0xff] %v4156_v10  ;;  %6343 = vst [vmem:[#allocation167_spill] sm:$0xff] %v4166_v7  ;;  %v1307_v10 = vstv %s4063_s12  ;;  %6346 = sst [smem:[#allocation170_spill]] %s4180_s6  ;;  %v4199_v7 = vmul.f32 %v1325_v5, %v3393_v4  ;;  %v4238_v47 = vmul.f32 %v1497_v46, %v3389_v2  ;;  %s6368_s2 = sld [smem:[#allocation51_spill]] }
 0x205   : > { %v4186_v45 = vmul.f32 %v1307_v10, %v3393_v4  ;;  %6349 = vst [vmem:[#allocation173_spill] sm:$0xff] %v4189_v36  ;;  %s4193_s12 = sld [smem:[#allocation9 + $0x1f]]  ;;  %6350 = vst [vmem:[#allocation174_spill] sm:$0xff] %v4196_v9  ;;  %v4210_v0 = vmul.f32 %v1307_v10, %v3379_v63  ;;  %v445_v9 = vpop.permute.xlu0 %444  ;;  %v1509_v4 = vstv %s4136_s17  ;;  %s6365_s17 = sld [smem:[#allocation62_spill]]  ;;  %v6407_v6 = vstv %s6359_s16 }
 0x206   : > { %v4174_v20 = vpop.permute.xlu1 %446  ;;  %6351 = vst [vmem:[#allocation175_spill] sm:$0xff] %v4199_v7  ;;  %6354 = vst [vmem:[#allocation178_spill] sm:$0xff] %v4216_v54  ;;  %v1503_v7 = vstv %s4134_s25  ;;  %v4244_v36 = vmul.f32 %v1509_v4, %v3389_v2  ;;  %s6364_s25 = sld [smem:[#allocation61_spill]]  ;;  %v6373_v54 = vstv %s6359_s16  ;;  %s6376_s6 = sld [smem:[#allocation65_spill]] }
 0x207   : > { %6348 = vst [vmem:[#allocation172_spill] sm:$0xff] %v4186_v45  ;;  %6353 = vst [vmem:[#allocation177_spill] sm:$0xff] %v4210_v0  ;;  %v4225_v45 = vmul.f32 %v1325_v5, %v3379_v63  ;;  %v4241_v5 = vmul.f32 %v1503_v7, %v3389_v2  ;;  %v4268_v2 = vmul.f32 %v1503_v7, %v3406_v8  ;;  %v6375_v63 = vstv %s6363_s13  ;;  %s6386_s21 = sld [smem:[#allocation54_spill]]  ;;  %s6388_s10 = sld [smem:[#allocation55_spill]] }
 0x208   : > { %6355 = vst [vmem:[#allocation179_spill] sm:$0xff] %v4222_v61  ;;  %6358 = vst [vmem:[#allocation181_spill] sm:$0xff] %v4235_v42  ;;  %v4265_v42 = vmul.f32 %v1497_v46, %v3406_v8  ;;  %v6380_v46 = vstv %s6366_s7  ;;  %v6381_v7 = vstv %s6367_s19  ;;  %s4301_s3 = sld [smem:[#allocation9 + $0x44]]  ;;  %s6406_s28 = sld [smem:[#allocation76_spill]] }
 0x209   : > { %6356 = vst [vmem:[#allocation180_spill] sm:$0xff] %v4225_v45  ;;  %6360 = vst [vmem:[#allocation182_spill] sm:$0xff] %v4238_v47  ;;  %v4255_v47 = vmul.f32 %v1491_v18, %v3406_v8  ;;  %v4272_v45 = vmul.f32 %v6373_v54, %v442_v19  ;;  %v1569_v18 = vstv %s4203_s11  ;;  %s6385_s11 = sld [smem:[#allocation67_spill]]  ;;  %s6400_s20 = sld [smem:[#allocation74_spill]] }
 0x20a   : > { %6361 = vst [vmem:[#allocation183_spill] sm:$0xff] %v4241_v5  ;;  %6362 = vst [vmem:[#allocation184_spill] sm:$0xff] %v4244_v36  ;;  %v6370_v36 = vstv %s6357_s8  ;;  %v6382_v54 = vstv %s6368_s2  ;;  %s6466_s16 = sld [smem:[#allocation83_spill]] }
 0x20b   : > { %6369 = vst [vmem:[#allocation185_spill] sm:$0xff] %v4255_v47  ;;  %v4259_v61 = vmul.f32 %v6370_v36, %v442_v19  ;;  %6371 = vst [vmem:[#allocation186_spill] sm:$0xff] %v4265_v42  ;;  %v1563_v5 = vstv %s4193_s12  ;;  %v4291_v55 = vmul.f32 %v6382_v54, %v442_v19  ;;  %s6384_s12 = sld [smem:[#allocation53_spill]]  ;;  %v6393_v54 = vstv %s6378_s29 }
 0x20c   : > { %6372 = vst [vmem:[#allocation187_spill] sm:$0xff] %v4268_v2  ;;  %v6377_v11 = vstv %s6364_s25  ;;  %v4287_v2 = vmul.f32 %v6381_v7, %v442_v19  ;;  %v443_v19 = vsel %vm359_vm5, %v3248_v15, %v4087_v58  ;;  %v6394_v58 = vstv %s4205_s0  ;;  %s6403_s0 = sld [smem:[#allocation75_spill]] }
 0x20d   : > { %v4325_v43 = vmul.f32 %v6394_v58, %v3363_v60 }
 0x20e   : > { %v4213_v41 = vpop.permute.xlu1 %766 }
 0x20f   : > { %6395 = vst [vmem:[#allocation191_spill] sm:$0xff] %v4325_v43  ;;  %v6405_v43 = vstv %s6357_s8  ;;  %v771_v39 = vsel %vm359_vm5, %v3265_v22, %v4213_v41  ;;  %s6412_s8 = sld [smem:[#allocation57_spill]]  ;;  %v6438_v22 = vstv %s6385_s11 }
 0x212   : > { %v4249_v29 = vpop.permute.xlu0 %764  ;;  %v409_v0 = vpop.permute.xlu1 %408 }
 0x213   : > { %v413_v10 = vsel %vm359_vm5, %v3290_v30, %v409_v0  ;;  %v6379_v0 = vstv %s6365_s17 }
 0x214   : > { %v485_v36 = vmul.f32 %v6375_v63, %v413_v10  ;;  %v491_v38 = vmul.f32 %v6377_v11, %v413_v10  ;;  %v497_v52 = vmul.f32 %v6379_v0, %v413_v10  ;;  %v503_v42 = vmul.f32 %v6380_v46, %v413_v10 }
 0x215   : > { %v450_v63 = vsel %vm360_vm6, %v3246_v12, %v445_v9  ;;  %v4299_v10 = vmul.f32 %v1509_v4, %v3406_v8  ;;  %v6389_v0 = vstv %s6374_s24  ;;  %v4310_v9 = vmul.f32 %v1563_v5, %v3363_v60 }
 0x216   : > { %v4296_v47 = vpop.permute.xlu0 %466  ;;  %v417_v11 = vpop.permute.xlu1 %416  ;;  %v487_v12 = vadd.f32 %v485_v36, %v6389_v0  ;;  %v4313_v46 = vmul.f32 %v1569_v18, %v3363_v60  ;;  %v6392_v4 = vstv %s6376_s6  ;;  %v6396_v36 = vstv %s6383_s18  ;;  %s6422_s18 = sld [smem:[#allocation58_spill]] }
 0x217   : > { %6387 = vst [vmem:[#allocation188_spill] sm:$0xff] %v4299_v10  ;;  %6390 = vst [vmem:[#allocation189_spill] sm:$0xff] %v4310_v9  ;;  %v493_v7 = vadd.f32 %v491_v38, %v6392_v4  ;;  %v499_v10 = vadd.f32 %v497_v52, %v6393_v54  ;;  %v421_v8 = vsel %vm360_vm6, %v3290_v30, %v417_v11  ;;  %v6398_v38 = vstv %s6385_s11  ;;  %s6478_s11 = sld [smem:[#allocation88_spill]] }
 0x218   : > { %6391 = vst [vmem:[#allocation190_spill] sm:$0xff] %v4313_v46  ;;  %v4331_v0 = vmul.f32 %v6396_v36, %v450_v63  ;;  %v6397_v46 = vstv %s6384_s12  ;;  %v505_v52 = vadd.f32 %v503_v42, %v6398_v38  ;;  %v6399_v54 = vstv %s6386_s21 }
 0x219   : > { %v4335_v9 = vmul.f32 %v6397_v46, %v450_v63  ;;  %v4342_v30 = vmul.f32 %v6399_v54, %v450_v63  ;;  %v6402_v11 = vstv %s6388_s10  ;;  %v557_v60 = vmul.f32 %v6405_v43, %v443_v19 }
 0x21a   : > { %v4346_v58 = vmul.f32 %v6402_v11, %v450_v63  ;;  %v563_v36 = vmul.f32 %v6407_v6, %v443_v19  ;;  %v4352_v17 = vpop.permute.xlu0 %474  ;;  %v4354_v46 = vpop.permute.xlu1 %736  ;;  %v6408_v42 = vstv %s6367_s19  ;;  %v451_v54 = vsel %vm360_vm6, %v3248_v15, %v4174_v20  ;;  %s6411_s19 = sld [smem:[#allocation56_spill]] }
 0x21b   : > { %6401 = vst [vmem:[#allocation192_spill] sm:$0xff] %v4342_v30  ;;  %v569_v38 = vmul.f32 %v6408_v42, %v443_v19  ;;  %v511_v63 = vadd.f32 %v3735_v16, %v487_v12  ;;  %v6409_v11 = vstv %s3636_s5  ;;  %v6410_v4 = vstv %s6368_s2  ;;  %s6424_s2 = sld [smem:[#allocation59_spill]] }
 0x21c   : > { %6404 = vst [vmem:[#allocation193_spill] sm:$0xff] %v4346_v58  ;;  %v533_v43 = vmul.f32 %v6409_v11, %v421_v8  ;;  %v575_v6 = vmul.f32 %v6410_v4, %v443_v19  ;;  %v517_v42 = vadd.f32 %v3740_v3, %v493_v7  ;;  %v523_v13 = vadd.f32 %v3767_v35, %v499_v10 }
 0x21d   : > { %v529_v15 = vadd.f32 %v3770_v33, %v505_v52  ;;  %v6413_v16 = vstv %s6400_s20  ;;  %v6414_v12 = vstv %s6403_s0  ;;  %v6415_v19 = vstv %s6406_s28 }
 0x21e   : > { %v539_v20 = vmul.f32 %v6413_v16, %v421_v8  ;;  %v545_v11 = vmul.f32 %v6414_v12, %v421_v8  ;;  %v551_v4 = vmul.f32 %v6415_v19, %v421_v8  ;;  %v4382_v58 = vmul.f32 %v6416_v62, %v451_v54  ;;  %v407_v30 = vpop.permute.xlu0 %406  ;;  %v4384_v41 = vpop.permute.xlu1 %744 }
 0x21f   : > { %v4388_v35 = vmul.f32 %v1563_v5, %v3361_v59  ;;  %v4391_v33 = vmul.f32 %v1569_v18, %v3361_v59  ;;  %v6419_v10 = vstv %s6384_s12  ;;  %v6420_v8 = vstv %s6386_s21  ;;  %s6447_s21 = sld [smem:[#allocation69_spill]]  ;;  %s6476_s12 = sld [smem:[#allocation87_spill]] }
 0x220   : > { %v4395_v7 = vmul.f32 %v6419_v10, %v451_v54  ;;  %v4399_v62 = vmul.f32 %v6420_v8, %v451_v54  ;;  %v6421_v52 = vstv %s6388_s10  ;;  %v535_v12 = vadd.f32 %v533_v43, %v511_v63  ;;  %s6464_s10 = sld [smem:[#allocation82_spill]] }
 0x221   : > { %6417 = vst [vmem:[#allocation194_spill] sm:$0xff] %v4388_v35  ;;  %6418 = vst [vmem:[#allocation195_spill] sm:$0xff] %v4391_v33  ;;  %v4403_v16 = vmul.f32 %v6421_v52, %v451_v54  ;;  %v6423_v19 = vstv %s6411_s19  ;;  %v6426_v3 = vstv %s6412_s8  ;;  %v770_v10 = vsel %vm359_vm5, %v3262_v21, %v4249_v29 }
 0x222   : > { %v4407_v5 = vmul.f32 %v6423_v19, %v771_v39  ;;  %v4411_v18 = vmul.f32 %v6426_v3, %v771_v39  ;;  %v541_v54 = vadd.f32 %v539_v20, %v517_v42  ;;  %v547_v52 = vadd.f32 %v545_v11, %v523_v13  ;;  %v415_v21 = vpop.permute.xlu0 %414  ;;  %v4429_v8 = vpop.permute.xlu1 %774 }
 0x223   : > { %v553_v63 = vadd.f32 %v551_v4, %v529_v15  ;;  %v412_v43 = vsel %vm359_vm5, %v3276_v25, %v407_v30  ;;  %v6428_v19 = vstv %s6363_s13  ;;  %v6429_v33 = vstv %s6364_s25  ;;  %s6473_s13 = sld [smem:[#allocation84_spill]]  ;;  %s6474_s25 = sld [smem:[#allocation85_spill]] }
 0x224   : > { %6425 = vst [vmem:[#allocation196_spill] sm:$0xff] %v4407_v5  ;;  %6427 = vst [vmem:[#allocation197_spill] sm:$0xff] %v4411_v18  ;;  %v484_v3 = vmul.f32 %v6428_v19, %v412_v43  ;;  %v490_v35 = vmul.f32 %v6429_v33, %v412_v43  ;;  %v6430_v59 = vstv %s6365_s17  ;;  %v6431_v5 = vstv %s6366_s7  ;;  %s6449_s7 = sld [smem:[#allocation71_spill]]  ;;  %s6475_s17 = sld [smem:[#allocation86_spill]] }
 0x225   : > { %v496_v18 = vmul.f32 %v6430_v59, %v412_v43  ;;  %v502_v29 = vmul.f32 %v6431_v5, %v412_v43  ;;  %v6432_v42 = vstv %s6422_s18  ;;  %v6433_v13 = vstv %s6424_s2 }
 0x226   : > { %v4433_v20 = vmul.f32 %v6432_v42, %v771_v39  ;;  %v4437_v15 = vmul.f32 %v6433_v13, %v771_v39  ;;  %v6434_v11 = vstv %s6411_s19  ;;  %v559_v30 = vadd.f32 %v557_v60, %v535_v12  ;;  %s6483_s19 = sld [smem:[#allocation90_spill]] }
 0x227   : > { %v4441_v4 = vmul.f32 %v6434_v11, %v770_v10  ;;  %v6435_v19 = vstv %s6374_s24  ;;  %v6436_v59 = vstv %s6376_s6  ;;  %v6437_v43 = vstv %s6378_s29  ;;  %s6442_s29 = sld [smem:[#allocation68_spill]]  ;;  %s6450_s24 = sld [smem:[#allocation77_spill]] }
 0x228   : > { %v486_v33 = vadd.f32 %v484_v3, %v6435_v19  ;;  %v492_v5 = vadd.f32 %v490_v35, %v6436_v59  ;;  %v498_v1 = vadd.f32 %v496_v18, %v6437_v43  ;;  %v504_v42 = vadd.f32 %v502_v29, %v6438_v22  ;;  %v4458_v19 = vpop.permute.xlu0 %772  ;;  %v469_v22 = vpop.permute.xlu1 %468  ;;  %s6458_s6 = sld [smem:[#allocation79_spill]] }
 0x229   : > { %v565_v39 = vadd.f32 %v563_v36, %v541_v54  ;;  %v571_v13 = vadd.f32 %v569_v38, %v547_v52  ;;  %v577_v11 = vadd.f32 %v575_v6, %v553_v63  ;;  %v420_v60 = vsel %vm360_vm6, %v3276_v25, %v415_v21 }
 0x22a   : > { %v510_v12 = vadd.f32 %v3829_v56, %v486_v33  ;;  %v516_v3 = vadd.f32 %v3841_v53, %v492_v5  ;;  %v522_v35 = vadd.f32 %v3844_v50, %v498_v1  ;;  %v528_v18 = vadd.f32 %v3847_v48, %v504_v42 }
 0x22b   : > { %v6439_v29 = vstv %s3636_s5  ;;  %v6440_v54 = vstv %s6400_s20  ;;  %v6441_v6 = vstv %s6403_s0  ;;  %v6443_v63 = vstv %s6406_s28  ;;  %s6448_s5 = sld [smem:[#allocation70_spill]]  ;;  %s6459_s28 = sld [smem:[#allocation80_spill]] }
 0x22c   : > { %v532_v36 = vmul.f32 %v6439_v29, %v420_v60  ;;  %v538_v38 = vmul.f32 %v6440_v54, %v420_v60  ;;  %v544_v52 = vmul.f32 %v6441_v6, %v420_v60  ;;  %v550_v21 = vmul.f32 %v6443_v63, %v420_v60  ;;  %s6451_s0 = sld [smem:[#allocation78_spill]]  ;;  %v4491_v6 = vpop.permute.xlu0 %794  ;;  %s6460_s20 = sld [smem:[#allocation81_spill]] }
 0x22d   : > { %v6444_v25 = vstv %s6412_s8  ;;  %v6445_v53 = vstv %s6422_s18  ;;  %v6446_v50 = vstv %s6424_s2  ;;  %v472_v1 = vsel %vm359_vm5, %v3305_v37, %v4296_v47  ;;  %s6489_s8 = sld [smem:[#allocation72_spill]]  ;;  %s6491_s18 = sld [smem:[#allocation73_spill]] }
 0x22e   : > { %v4470_v56 = vmul.f32 %v6444_v25, %v770_v10  ;;  %v4474_v33 = vmul.f32 %v6445_v53, %v770_v10  ;;  %v4478_v48 = vmul.f32 %v6446_v50, %v770_v10  ;;  %v534_v59 = vadd.f32 %v532_v36, %v510_v12  ;;  %s6540_s2 = sld [smem:[#allocation94_spill]] }
 0x22f   : > { %v540_v5 = vadd.f32 %v538_v38, %v516_v3  ;;  %v546_v43 = vadd.f32 %v544_v52, %v522_v35  ;;  %v583_v42 = vadd.f32 %v3799_v51, %v559_v30  ;;  %v480_v10 = vsel %vm360_vm6, %v3305_v37, %v4352_v17 }
 0x230   : > { %v552_v60 = vadd.f32 %v550_v21, %v528_v18  ;;  %v589_v29 = vadd.f32 %v3832_v27, %v565_v39  ;;  %v595_v54 = vadd.f32 %v3867_v31, %v571_v13  ;;  %v6452_v47 = vstv %s6442_s29  ;;  %s6542_s29 = sld [smem:[#allocation89_spill]] }
 0x231   : > { %v628_v12 = vmul.f32 %v6452_v47, %v472_v1  ;;  %v558_v3 = vadd.f32 %v4259_v61, %v534_v59  ;;  %v564_v35 = vadd.f32 %v4272_v45, %v540_v5  ;;  %v601_v51 = vadd.f32 %v3870_v24, %v577_v11  ;;  %v477_v61 = vpop.permute.xlu1 %476 }
 0x232   : > { %v6453_v30 = vstv %s6447_s21  ;;  %v6454_v38 = vstv %s6448_s5  ;;  %v6455_v17 = vstv %s6449_s7  ;;  %v741_v27 = vsel %vm359_vm5, %v3301_v34, %v4354_v46  ;;  %s6545_s21 = sld [smem:[#allocation96_spill]]  ;;  %s6574_s5 = sld [smem:[#allocation101_spill]] }
 0x233   : > { %v634_v36 = vmul.f32 %v6453_v30, %v472_v1  ;;  %v4502_v52 = vmul.f32 %v6454_v38, %v472_v1  ;;  %v4506_v37 = vmul.f32 %v6455_v17, %v472_v1  ;;  %v6456_v31 = vstv %s6450_s24  ;;  %s6576_s7 = sld [smem:[#allocation102_spill]]  ;;  %s6580_s24 = sld [smem:[#allocation99_spill]] }
 0x234   : > { %v4514_v24 = vmul.f32 %v6456_v31, %v480_v10  ;;  %v6457_v45 = vstv %s6451_s0  ;;  %v570_v13 = vadd.f32 %v4287_v2, %v546_v43  ;;  %v607_v11 = vadd.f32 %v4382_v58, %v583_v42 }
 0x235   : > { %v4518_v39 = vmul.f32 %v6457_v45, %v480_v10  ;;  %v576_v18 = vadd.f32 %v4291_v55, %v552_v60  ;;  %v613_v46 = vadd.f32 %v4395_v7, %v589_v29  ;;  %v619_v63 = vadd.f32 %v4399_v62, %v595_v54 }
 0x236   : > { %v473_v21 = vsel %vm359_vm5, %v3283_v26, %v469_v22  ;;  %v582_v25 = vadd.f32 %v3809_v28, %v558_v3  ;;  %v588_v53 = vadd.f32 %v3812_v32, %v564_v35  ;;  %v625_v2 = vadd.f32 %v4403_v16, %v601_v51  ;;  %v4542_v28 = vpop.permute.xlu0 %802 }
 0x237   : > { %v481_v58 = vsel %vm360_vm6, %v3283_v26, %v477_v61  ;;  %v6461_v50 = vmov %v6452_v47  ;;  %v6462_v1 = vmov %v6453_v30  ;;  %v6463_v62 = vmov %v6454_v38 }
 0x238   : > { %v629_v55 = vmul.f32 %v6461_v50, %v473_v21  ;;  %v635_v7 = vmul.f32 %v6462_v1, %v473_v21  ;;  %v641_v59 = vmul.f32 %v6463_v62, %v473_v21  ;;  %v6465_v5 = vmov %v6455_v17  ;;  %v6485_v1 = vld [vmem:[#allocation193_spill] sm:$0xff] }
 0x239   : > { %v647_v22 = vmul.f32 %v6465_v5, %v473_v21  ;;  %v6467_v32 = vstv %s6458_s6  ;;  %v6468_v16 = vstv %s6459_s28  ;;  %v6469_v26 = vstv %s6460_s20  ;;  %s6597_s6 = sld [smem:[#allocation110_spill]]  ;;  %s6600_s28 = sld [smem:[#allocation111_spill]] }
 0x23a   : > { %v4546_v43 = vmul.f32 %v6467_v32, %v480_v10  ;;  %v4550_v42 = vmul.f32 %v6468_v16, %v480_v10  ;;  %v813_v60 = vmul.f32 %v6469_v26, %v741_v27  ;;  %v594_v29 = vadd.f32 %v3821_v49, %v570_v13  ;;  %v735_v50 = vpop.permute.xlu0 %734 }
 0x23b   : > { %v631_v54 = vadd.f32 %v629_v55, %v607_v11  ;;  %v637_v47 = vadd.f32 %v635_v7, %v613_v46  ;;  %v643_v3 = vadd.f32 %v641_v59, %v619_v63  ;;  %v649_v35 = vadd.f32 %v647_v22, %v625_v2  ;;  %v6484_v55 = vld [vmem:[#allocation192_spill] sm:$0xff] }
 0x23c   : > { %v600_v51 = vadd.f32 %v3824_v57, %v576_v18  ;;  %v606_v30 = vadd.f32 %v4331_v0, %v582_v25  ;;  %v612_v38 = vadd.f32 %v4335_v9, %v588_v53  ;;  %v6470_v17 = vmov %v6456_v31  ;;  %v4569_v57 = vpop.permute.xlu1 %1064  ;;  %v6480_v25 = vld [vmem:[#allocation32_spill] sm:$0xff] }
 0x23d   : > { %v677_v10 = vmul.f32 %v6470_v17, %v481_v58  ;;  %v6471_v61 = vstv %s6464_s10  ;;  %v6472_v45 = vstv %s6466_s16  ;;  %v749_v49 = vsel %vm360_vm6, %v3301_v34, %v4384_v41 }
 0x23e   : > { %v819_v31 = vmul.f32 %v6471_v61, %v741_v27  ;;  %v825_v21 = vmul.f32 %v6472_v45, %v741_v27  ;;  %v655_v13 = vadd.f32 %v3897_v44, %v631_v54  ;;  %v661_v9 = vadd.f32 %v3900_v40, %v637_v47  ;;  %v6481_v44 = vld [vmem:[#allocation109_spill] sm:$0xff] }
 0x23f   : > { %v667_v0 = vadd.f32 %v3917_v14, %v643_v3  ;;  %v6477_v11 = vstv %s6451_s0  ;;  %v6479_v46 = vmov %v6467_v32  ;;  %v779_v34 = vsel %vm360_vm6, %v6480_v25, %v4429_v8  ;;  %s6581_s0 = sld [smem:[#allocation103_spill]] }
 0x240   : > { %v683_v18 = vmul.f32 %v6477_v11, %v481_v58  ;;  %v689_v63 = vmul.f32 %v6479_v46, %v481_v58  ;;  %v673_v41 = vadd.f32 %v6481_v44, %v649_v35  ;;  %v679_v53 = vadd.f32 %v677_v10, %v655_v13  ;;  %v4610_v61 = vpop.permute.xlu1 %1072  ;;  %v6496_v13 = vld [vmem:[#allocation112_spill] sm:$0xff]  ;;  %v6497_v46 = vld [vmem:[#allocation113_spill] sm:$0xff] }
 0x241   : > { %v6482_v2 = vmov %v6468_v16  ;;  %v618_v14 = vadd.f32 %v6484_v55, %v594_v29  ;;  %v624_v7 = vadd.f32 %v6485_v1, %v600_v51  ;;  %v630_v62 = vadd.f32 %v628_v12, %v606_v30  ;;  %v6493_v29 = vld [vmem:[#allocation31_spill] sm:$0xff]  ;;  %v6503_v55 = vld [vmem:[#allocation117_spill] sm:$0xff] }
 0x242   : > { %v695_v40 = vmul.f32 %v6482_v2, %v481_v58  ;;  %v636_v59 = vadd.f32 %v634_v36, %v612_v38  ;;  %v6486_v5 = vstv %s6473_s13  ;;  %v6487_v32 = vstv %s6474_s25  ;;  %v6502_v2 = vld [vmem:[#allocation116_spill] sm:$0xff] }
 0x243   : > { %v831_v22 = vmul.f32 %v6486_v5, %v741_v27  ;;  %v861_v16 = vmul.f32 %v6487_v32, %v749_v49  ;;  %v6488_v26 = vstv %s6475_s17  ;;  %v6490_v54 = vstv %s6476_s12 }
 0x244   : > { %v867_v8 = vmul.f32 %v6488_v26, %v749_v49  ;;  %v873_v47 = vmul.f32 %v6490_v54, %v749_v49  ;;  %v6492_v3 = vstv %s6478_s11  ;;  %v778_v12 = vsel %vm360_vm6, %v6493_v29, %v4458_v19 }
 0x245   : > { %v4596_v58 = vmul.f32 %v6492_v3, %v749_v49  ;;  %v685_v36 = vadd.f32 %v683_v18, %v661_v9  ;;  %v691_v27 = vadd.f32 %v689_v63, %v667_v0  ;;  %v6494_v35 = vstv %s6263_s15  ;;  %s6525_s15 = sld [smem:[#allocation93_spill]] }
 0x246   : > { %v4604_v51 = vmul.f32 %v6494_v35, %v779_v34  ;;  %v6495_v30 = vstv %s6483_s19  ;;  %v697_v17 = vadd.f32 %v695_v40, %v673_v41  ;;  %v815_v10 = vadd.f32 %v813_v60, %v679_v53  ;;  %s6632_s19 = sld [smem:[#allocation142_spill]] }
 0x247   : > { %v4608_v38 = vmul.f32 %v6495_v30, %v779_v34  ;;  %v642_v45 = vadd.f32 %v4502_v52, %v618_v14  ;;  %v648_v49 = vadd.f32 %v4506_v37, %v624_v7  ;;  %v654_v11 = vadd.f32 %v6496_v13, %v630_v62  ;;  %v743_v52 = vpop.permute.xlu0 %742  ;;  %v6504_v7 = vld [vmem:[#allocation105_spill] sm:$0xff] }
 0x248   : > { %v660_v19 = vadd.f32 %v6497_v46, %v636_v59  ;;  %v6498_v9 = vstv %s6489_s8  ;;  %v6499_v18 = vstv %s6491_s18  ;;  %v6500_v25 = vmov %v6494_v35  ;;  %v6505_v59 = vld [vmem:[#allocation35_spill] sm:$0xff]  ;;  %v6510_v35 = vld [vmem:[#allocation106_spill] sm:$0xff] }
 0x249   : > { %v4618_v0 = vmul.f32 %v6498_v9, %v779_v34  ;;  %v4622_v63 = vmul.f32 %v6499_v18, %v779_v34  ;;  %v4626_v60 = vmul.f32 %v6500_v25, %v778_v12  ;;  %v6501_v44 = vmov %v6495_v30  ;;  %v6515_v25 = vld [vmem:[#allocation119_spill] sm:$0xff] }
 0x24a   : > { %v4630_v41 = vmul.f32 %v6501_v44, %v778_v12  ;;  %v821_v37 = vadd.f32 %v819_v31, %v685_v36  ;;  %v827_v53 = vadd.f32 %v825_v21, %v691_v27  ;;  %v666_v40 = vadd.f32 %v6502_v2, %v642_v45 }
 0x24b   : > { %v672_v14 = vadd.f32 %v6503_v55, %v648_v49  ;;  %v833_v1 = vadd.f32 %v831_v22, %v697_v17  ;;  %v839_v62 = vadd.f32 %v6504_v7, %v815_v10  ;;  %v678_v34 = vadd.f32 %v4514_v24, %v654_v11  ;;  %v6511_v17 = vld [vmem:[#allocation107_spill] sm:$0xff] }
 0x24c   : > { %v740_v5 = vsel %vm359_vm5, %v6505_v59, %v735_v50  ;;  %v684_v32 = vadd.f32 %v4518_v39, %v660_v19  ;;  %v6506_v26 = vstv %s6460_s20  ;;  %v6507_v21 = vstv %s6464_s10  ;;  %v4653_v39 = vpop.permute.xlu1 %1094  ;;  %s4860_s20 = sld [smem:[#allocation9 + $0x45]]  ;;  %s6607_s10 = sld [smem:[#allocation100_spill]] }
 0x24d   : > { %v812_v31 = vmul.f32 %v6506_v26, %v740_v5  ;;  %v818_v54 = vmul.f32 %v6507_v21, %v740_v5  ;;  %v748_v22 = vsel %vm360_vm6, %v6505_v59, %v743_v52  ;;  %v690_v3 = vadd.f32 %v4546_v43, %v666_v40 }
 0x24e   : > { %v696_v24 = vadd.f32 %v4550_v42, %v672_v14  ;;  %v6508_v29 = vstv %s6466_s16  ;;  %v6509_v36 = vstv %s6473_s13  ;;  %v845_v30 = vadd.f32 %v6510_v35, %v821_v37  ;;  %v6514_v42 = vld [vmem:[#allocation118_spill] sm:$0xff]  ;;  %v6519_v14 = vld [vmem:[#allocation108_spill] sm:$0xff]  ;;  %s4871_s16 = sld [smem:[#allocation9 + $0x22]]  ;;  %s4873_s13 = sld [smem:[#allocation9 + $0x46]] }
 0x24f   : > { %v824_v50 = vmul.f32 %v6508_v29, %v740_v5  ;;  %v830_v27 = vmul.f32 %v6509_v36, %v740_v5  ;;  %v851_v10 = vadd.f32 %v6511_v17, %v827_v53  ;;  %v814_v45 = vadd.f32 %v812_v31, %v678_v34  ;;  %v6518_v53 = vld [vmem:[#allocation38_spill] sm:$0xff]  ;;  %v6520_v34 = vld [vmem:[#allocation120_spill] sm:$0xff]  ;;  %v6521_v5 = vld [vmem:[#allocation121_spill] sm:$0xff] }
 0x250   : > { %v820_v49 = vadd.f32 %v818_v54, %v684_v32  ;;  %v6512_v46 = vstv %s6474_s25  ;;  %v6513_v19 = vstv %s6475_s17  ;;  %v6516_v52 = vstv %s6476_s12  ;;  %v797_v36 = vpop.permute.xlu1 %796  ;;  %s6616_s25 = sld [smem:[#allocation104_spill]]  ;;  %s6622_s17 = sld [smem:[#allocation114_spill]] }
 0x251   : > { %v826_v13 = vadd.f32 %v824_v50, %v690_v3  ;;  %v832_v11 = vadd.f32 %v830_v27, %v696_v24  ;;  %v860_v43 = vmul.f32 %v6512_v46, %v748_v22  ;;  %v866_v9 = vmul.f32 %v6513_v19, %v748_v22  ;;  %v6530_v46 = vld [vmem:[#allocation197_spill] sm:$0xff]  ;;  %s6626_s12 = sld [smem:[#allocation115_spill]] }
 0x252   : > { %v838_v18 = vadd.f32 %v6514_v42, %v814_v45  ;;  %v844_v44 = vadd.f32 %v6515_v25, %v820_v49  ;;  %v872_v2 = vmul.f32 %v6516_v52, %v748_v22  ;;  %v6517_v40 = vstv %s6478_s11  ;;  %s6630_s11 = sld [smem:[#allocation138_spill]] }
 0x253   : > { %v878_v37 = vmul.f32 %v6517_v40, %v748_v22  ;;  %v800_v55 = vsel %vm359_vm5, %v6518_v53, %v4491_v6  ;;  %v857_v7 = vadd.f32 %v6519_v14, %v833_v1  ;;  %v850_v59 = vadd.f32 %v6520_v34, %v826_v13  ;;  %v6529_v13 = vld [vmem:[#allocation196_spill] sm:$0xff] }
 0x254   : > { %v856_v32 = vadd.f32 %v6521_v5, %v832_v11  ;;  %v863_v26 = vadd.f32 %v861_v16, %v839_v62  ;;  %v869_v31 = vadd.f32 %v867_v8, %v845_v30  ;;  %v862_v21 = vadd.f32 %v860_v43, %v838_v18  ;;  %v805_v5 = vpop.permute.xlu1 %804 }
 0x255   : > { %v868_v54 = vadd.f32 %v866_v9, %v844_v44  ;;  %v6522_v3 = vstv %s6489_s8  ;;  %v875_v22 = vadd.f32 %v873_v47, %v851_v10  ;;  %v874_v29 = vadd.f32 %v872_v2, %v850_v59  ;;  %v4688_v10 = vpop.permute.xlu0 %1092  ;;  %v6532_v9 = vld [vmem:[#allocation123_spill] sm:$0xff]  ;;  %v6534_v44 = vld [vmem:[#allocation37_spill] sm:$0xff]  ;;  %v6535_v2 = vld [vmem:[#allocation124_spill] sm:$0xff]  ;;  %s6643_s8 = sld [smem:[#allocation128_spill]] }
 0x256   : > { %v944_v24 = vmul.f32 %v6522_v3, %v778_v12  ;;  %v880_v50 = vadd.f32 %v878_v37, %v856_v32  ;;  %v6523_v27 = vstv %s6491_s18  ;;  %v6524_v35 = vstv %s3744_s14  ;;  %v6536_v37 = vld [vmem:[#allocation129_spill] sm:$0xff]  ;;  %v6539_v59 = vld [vmem:[#allocation132_spill] sm:$0xff]  ;;  %v6544_v3 = vld [vmem:[#allocation126_spill] sm:$0xff]  ;;  %s6563_s14 = sld [smem:[#allocation92_spill]]  ;;  %s6652_s18 = sld [smem:[#allocation168_spill]] }
 0x257   : > { %v950_v6 = vmul.f32 %v6523_v27, %v778_v12  ;;  %v956_v1 = vmul.f32 %v6524_v35, %v800_v55  ;;  %v886_v17 = vadd.f32 %v4441_v4, %v862_v21  ;;  %v892_v45 = vadd.f32 %v4470_v56, %v868_v54  ;;  %v6528_v4 = vld [vmem:[#allocation36_spill] sm:$0xff] }
 0x258   : > { %v6526_v49 = vstv %s3746_s22  ;;  %v6527_v8 = vstv %s3752_s4  ;;  %v881_v30 = vadd.f32 %v4596_v58, %v857_v7  ;;  %v898_v47 = vadd.f32 %v4474_v33, %v874_v29  ;;  %v6531_v33 = vld [vmem:[#allocation122_spill] sm:$0xff]  ;;  %v6538_v7 = vld [vmem:[#allocation125_spill] sm:$0xff]  ;;  %s6557_s4 = sld [smem:[#allocation97_spill]]  ;;  %s6561_s22 = sld [smem:[#allocation91_spill]] }
 0x259   : > { %v962_v16 = vmul.f32 %v6526_v49, %v800_v55  ;;  %v968_v62 = vmul.f32 %v6527_v8, %v800_v55  ;;  %v4694_v12 = vsel %vm360_vm6, %v6518_v53, %v4542_v28  ;;  %v801_v56 = vsel %vm359_vm5, %v6528_v4, %v797_v36  ;;  %v4732_v27 = vpop.permute.xlu0 %1100 }
 0x25a   : > { %v887_v11 = vadd.f32 %v6529_v13, %v863_v26  ;;  %v893_v43 = vadd.f32 %v6530_v46, %v869_v31  ;;  %v904_v58 = vadd.f32 %v4478_v48, %v880_v50  ;;  %v910_v19 = vadd.f32 %v6531_v33, %v886_v17  ;;  %v6551_v46 = vld [vmem:[#allocation134_spill] sm:$0xff] }
 0x25b   : > { %v916_v42 = vadd.f32 %v6532_v9, %v892_v45  ;;  %v899_v18 = vadd.f32 %v4433_v20, %v875_v22  ;;  %v6533_v28 = vstv %s6525_s15  ;;  %v4711_v52 = vsel %vm359_vm5, %v6534_v44, %v4569_v57 }
 0x25c   : > { %v974_v25 = vmul.f32 %v6533_v28, %v800_v55  ;;  %v911_v40 = vadd.f32 %v6535_v2, %v887_v11  ;;  %v917_v48 = vadd.f32 %v6536_v37, %v893_v43  ;;  %v6537_v53 = vstv %s3791_s26  ;;  %s6572_s26 = sld [smem:[#allocation98_spill]] }
 0x25d   : > { %v1004_v14 = vmul.f32 %v6537_v53, %v4694_v12  ;;  %v922_v34 = vadd.f32 %v6538_v7, %v898_v47  ;;  %v905_v20 = vadd.f32 %v4437_v15, %v881_v30  ;;  %v923_v55 = vadd.f32 %v6539_v59, %v899_v18  ;;  %v6549_v30 = vld [vmem:[#allocation133_spill] sm:$0xff] }
 0x25e   : > { %v935_v32 = vadd.f32 %v4604_v51, %v911_v40  ;;  %v941_v57 = vadd.f32 %v4608_v38, %v917_v48  ;;  %v6541_v26 = vmov %v6524_v35  ;;  %v6543_v21 = vmov %v6526_v49 }
 0x25f   : > { %v957_v31 = vmul.f32 %v6541_v26, %v801_v56  ;;  %v963_v54 = vmul.f32 %v6543_v21, %v801_v56  ;;  %v928_v22 = vadd.f32 %v6544_v3, %v904_v58  ;;  %v934_v29 = vadd.f32 %v4626_v60, %v910_v19  ;;  %v6552_v58 = vld [vmem:[#allocation135_spill] sm:$0xff]  ;;  %v6560_v26 = vld [vmem:[#allocation140_spill] sm:$0xff] }
 0x260   : > { %v940_v15 = vadd.f32 %v4630_v41, %v916_v42  ;;  %v6546_v50 = vmov %v6527_v8  ;;  %v947_v51 = vadd.f32 %v4618_v0, %v923_v55  ;;  %v809_v17 = vsel %vm360_vm6, %v6528_v4, %v805_v5  ;;  %v6558_v55 = vld [vmem:[#allocation136_spill] sm:$0xff]  ;;  %v6566_v3 = vld [vmem:[#allocation34_spill] sm:$0xff] }
 0x261   : > { %v969_v36 = vmul.f32 %v6546_v50, %v801_v56  ;;  %v959_v38 = vadd.f32 %v957_v31, %v935_v32  ;;  %v965_v35 = vadd.f32 %v963_v54, %v941_v57  ;;  %v6547_v60 = vstv %s6540_s2  ;;  %v1103_v50 = vpop.permute.xlu1 %1102  ;;  %s6656_s2 = sld [smem:[#allocation148_spill]] }
 0x262   : > { %v1010_v45 = vmul.f32 %v6547_v60, %v4694_v12  ;;  %v6548_v41 = vstv %s3801_s23  ;;  %v946_v8 = vadd.f32 %v944_v24, %v922_v34  ;;  %v929_v47 = vadd.f32 %v6549_v30, %v905_v20  ;;  %s6567_s23 = sld [smem:[#allocation95_spill]] }
 0x263   : > { %v1016_v49 = vmul.f32 %v6548_v41, %v4694_v12  ;;  %v6550_v13 = vstv %s6542_s29  ;;  %v971_v0 = vadd.f32 %v969_v36, %v947_v51  ;;  %v983_v43 = vadd.f32 %v6551_v46, %v959_v38  ;;  %v6568_v36 = vld [vmem:[#allocation144_spill] sm:$0xff]  ;;  %v6569_v51 = vld [vmem:[#allocation145_spill] sm:$0xff] }
 0x264   : > { %v1141_v11 = vmul.f32 %v6550_v13, %v4711_v52  ;;  %v989_v33 = vadd.f32 %v6552_v58, %v965_v35  ;;  %v6553_v4 = vstv %s6545_s21  ;;  %v952_v9 = vadd.f32 %v950_v6, %v928_v22  ;;  %v1063_v6 = vpop.permute.xlu0 %1062  ;;  %v6573_v13 = vld [vmem:[#allocation41_spill] sm:$0xff]  ;;  %s6663_s21 = sld [smem:[#allocation160_spill]] }
 0x265   : > { %v1147_v19 = vmul.f32 %v6553_v4, %v4711_v52  ;;  %v6554_v42 = vmov %v6537_v53  ;;  %v6555_v28 = vmov %v6547_v60  ;;  %v4761_v24 = vsel %vm360_vm6, %v6534_v44, %v4610_v61  ;;  %v6562_v61 = vld [vmem:[#allocation141_spill] sm:$0xff] }
 0x266   : > { %v1005_v18 = vmul.f32 %v6554_v42, %v809_v17  ;;  %v1011_v2 = vmul.f32 %v6555_v28, %v809_v17  ;;  %v6556_v40 = vstv %s6525_s15  ;;  %v958_v48 = vadd.f32 %v956_v1, %v934_v29  ;;  %s6655_s15 = sld [smem:[#allocation139_spill]] }
 0x267   : > { %v975_v37 = vmul.f32 %v6556_v40, %v801_v56  ;;  %v964_v53 = vadd.f32 %v962_v16, %v940_v15  ;;  %v953_v7 = vadd.f32 %v4622_v63, %v929_v47  ;;  %v970_v59 = vadd.f32 %v968_v62, %v946_v8  ;;  %v6564_v16 = vld [vmem:[#allocation146_spill] sm:$0xff] }
 0x268   : > { %v1007_v34 = vadd.f32 %v1005_v18, %v983_v43  ;;  %v1013_v20 = vadd.f32 %v1011_v2, %v989_v33  ;;  %v995_v5 = vadd.f32 %v6558_v55, %v971_v0  ;;  %v6559_v32 = vmov %v6548_v41 }
 0x269   : > { %v1017_v57 = vmul.f32 %v6559_v32, %v809_v17  ;;  %v982_v31 = vadd.f32 %v6560_v26, %v958_v48  ;;  %v988_v44 = vadd.f32 %v6562_v61, %v964_v53  ;;  %v976_v1 = vadd.f32 %v974_v25, %v952_v9  ;;  %v4814_v32 = vpop.permute.xlu1 %1392  ;;  %v6590_v61 = vld [vmem:[#allocation33_spill] sm:$0xff] }
 0x26a   : > { %v1143_v56 = vadd.f32 %v1141_v11, %v1007_v34  ;;  %v1149_v21 = vadd.f32 %v1147_v19, %v1013_v20  ;;  %v994_v63 = vadd.f32 %v6564_v16, %v970_v59  ;;  %v6565_v54 = vstv %s6557_s4  ;;  %v6575_v11 = vld [vmem:[#allocation147_spill] sm:$0xff]  ;;  %v6582_v19 = vld [vmem:[#allocation137_spill] sm:$0xff]  ;;  %s6668_s4 = sld [smem:[#allocation169_spill]] }
 0x26b   : > { %v1153_v62 = vmul.f32 %v6565_v54, %v4711_v52  ;;  %v4779_v22 = vsel %vm359_vm5, %v6566_v3, %v4653_v39  ;;  %v977_v29 = vadd.f32 %v975_v37, %v953_v7  ;;  %v1006_v15 = vadd.f32 %v1004_v14, %v982_v31 }
 0x26c   : > { %v1167_v25 = vadd.f32 %v6568_v36, %v1143_v56  ;;  %v1173_v38 = vadd.f32 %v6569_v51, %v1149_v21  ;;  %v1012_v35 = vadd.f32 %v1010_v45, %v988_v44  ;;  %v1018_v60 = vadd.f32 %v1016_v49, %v994_v63 }
 0x26d   : > { %v6570_v41 = vstv %s6561_s22  ;;  %v6571_v30 = vstv %s6563_s14  ;;  %v1019_v39 = vadd.f32 %v1017_v57, %v995_v5  ;;  %v1068_v14 = vsel %vm359_vm5, %v6573_v13, %v1063_v6 }
 0x26e   : > { %v1189_v8 = vmul.f32 %v6570_v41, %v4761_v24  ;;  %v1195_v47 = vmul.f32 %v6571_v30, %v4761_v24  ;;  %v1000_v0 = vadd.f32 %v6575_v11, %v976_v1  ;;  %v6577_v46 = vstv %s6542_s29  ;;  %v6596_v41 = vld [vmem:[#allocation150_spill] sm:$0xff]  ;;  %s4984_s29 = sld [smem:[#allocation9 + $0x23]] }
 0x26f   : > { %v1140_v43 = vmul.f32 %v6577_v46, %v1068_v14  ;;  %v6578_v45 = vmov %v6553_v4  ;;  %v6579_v58 = vmov %v6565_v54  ;;  %v1071_v4 = vpop.permute.xlu0 %1070  ;;  %v1001_v9 = vadd.f32 %v6582_v19, %v977_v29 }
 0x270   : > { %v1146_v49 = vmul.f32 %v6578_v45, %v1068_v14  ;;  %v1152_v33 = vmul.f32 %v6579_v58, %v1068_v14  ;;  %v6583_v42 = vstv %s6567_s23  ;;  %v1191_v28 = vadd.f32 %v1189_v8, %v1167_v25  ;;  %v6604_v58 = vld [vmem:[#allocation152_spill] sm:$0xff]  ;;  %s6682_s23 = sld [smem:[#allocation149_spill]] }
 0x271   : > { %v1023_v18 = vmul.f32 %v6583_v42, %v809_v17  ;;  %v1197_v2 = vadd.f32 %v1195_v47, %v1173_v38  ;;  %v6584_v40 = vmov %v6583_v42  ;;  %v1142_v48 = vadd.f32 %v1140_v43, %v1006_v15  ;;  %v6593_v15 = vld [vmem:[#allocation157_spill] sm:$0xff] }
 0x272   : > { %v1022_v37 = vmul.f32 %v6584_v40, %v4694_v12  ;;  %v1148_v53 = vadd.f32 %v1146_v49, %v1012_v35  ;;  %v1154_v7 = vadd.f32 %v1152_v33, %v1018_v60  ;;  %v6585_v34 = vstv %s6572_s26  ;;  %s6684_s26 = sld [smem:[#allocation131_spill]] }
 0x273   : > { %v1159_v20 = vmul.f32 %v6585_v34, %v4711_v52  ;;  %v6586_v6 = vstv %s6574_s5  ;;  %v6587_v55 = vstv %s6576_s7  ;;  %v1155_v17 = vadd.f32 %v1153_v62, %v1019_v39  ;;  %v6592_v62 = vld [vmem:[#allocation156_spill] sm:$0xff]  ;;  %v1123_v51 = vpop.permute.xlu0 %1122  ;;  %s6691_s5 = sld [smem:[#allocation170_spill]]  ;;  %s5102_s7 = sld [smem:[#allocation9 + $0x68]] }
 0x274   : > { %v1213_v59 = vmul.f32 %v6586_v6, %v4779_v22  ;;  %v1219_v5 = vmul.f32 %v6587_v55, %v4779_v22  ;;  %v6588_v57 = vstv %s6580_s24  ;;  %v6589_v12 = vstv %s6581_s0  ;;  %s5130_s24 = sld [smem:[#allocation9 + $0x47]]  ;;  %s6711_s0 = sld [smem:[#allocation176_spill]] }
 0x275   : > { %v1201_v26 = vmul.f32 %v6588_v57, %v4761_v24  ;;  %v1225_v31 = vmul.f32 %v6589_v12, %v4779_v22  ;;  %v1098_v52 = vsel %vm359_vm5, %v6590_v61, %v4688_v10  ;;  %v1024_v44 = vadd.f32 %v1022_v37, %v1000_v0  ;;  %v6594_v10 = vld [vmem:[#allocation158_spill] sm:$0xff] }
 0x276   : > { %v1025_v56 = vadd.f32 %v1023_v18, %v1001_v9  ;;  %v6591_v21 = vmov %v6585_v34  ;;  %v1215_v16 = vadd.f32 %v1213_v59, %v1191_v28  ;;  %v1221_v63 = vadd.f32 %v1219_v5, %v1197_v2  ;;  %v1125_v9 = vpop.permute.xlu1 %1124  ;;  %v6610_v34 = vld [vmem:[#allocation159_spill] sm:$0xff] }
 0x277   : > { %v1158_v1 = vmul.f32 %v6591_v21, %v1068_v14  ;;  %v1076_v54 = vsel %vm360_vm6, %v6573_v13, %v1071_v4  ;;  %v1166_v29 = vadd.f32 %v6592_v62, %v1142_v48  ;;  %v1172_v36 = vadd.f32 %v6593_v15, %v1148_v53  ;;  %v6605_v4 = vld [vmem:[#allocation153_spill] sm:$0xff] }
 0x278   : > { %v1178_v25 = vadd.f32 %v6594_v10, %v1154_v7  ;;  %v6595_v38 = vmov %v6586_v6  ;;  %v4840_v60 = vsel %vm360_vm6, %v6590_v61, %v4732_v27  ;;  %v1179_v8 = vadd.f32 %v6596_v41, %v1155_v17  ;;  %v1131_v17 = vpop.permute.xlu0 %1130 }
 0x279   : > { %v1212_v35 = vmul.f32 %v6595_v38, %v1098_v52  ;;  %v4846_v30 = vsel %vm360_vm6, %v6566_v3, %v1103_v50  ;;  %v1160_v47 = vadd.f32 %v1158_v1, %v1024_v44  ;;  %v6598_v39 = vstv %s6561_s22  ;;  %s6670_s22 = sld [smem:[#allocation130_spill]] }
 0x27a   : > { %v1188_v13 = vmul.f32 %v6598_v39, %v1076_v54  ;;  %v6599_v14 = vstv %s6563_s14  ;;  %v6601_v0 = vmov %v6588_v57  ;;  %v6602_v43 = vmov %v6587_v55  ;;  %v6611_v55 = vld [vmem:[#allocation42_spill] sm:$0xff]  ;;  %s6677_s14 = sld [smem:[#allocation161_spill]] }
 0x27b   : > { %v1194_v11 = vmul.f32 %v6599_v14, %v1076_v54  ;;  %v1200_v46 = vmul.f32 %v6601_v0, %v1076_v54  ;;  %v1218_v27 = vmul.f32 %v6602_v43, %v1098_v52  ;;  %v6603_v45 = vmov %v6589_v12  ;;  %v1133_v14 = vpop.permute.xlu1 %1132 }
 0x27c   : > { %v1224_v49 = vmul.f32 %v6603_v45, %v1098_v52  ;;  %v1239_v33 = vadd.f32 %v6604_v58, %v1215_v16  ;;  %v1245_v19 = vadd.f32 %v6605_v4, %v1221_v63  ;;  %v1161_v3 = vadd.f32 %v1159_v20, %v1025_v56  ;;  %v6613_v56 = vld [vmem:[#allocation151_spill] sm:$0xff]  ;;  %v6615_v63 = vld [vmem:[#allocation162_spill] sm:$0xff] }
 0x27d   : > { %v1190_v50 = vadd.f32 %v1188_v13, %v1166_v29  ;;  %v1196_v42 = vadd.f32 %v1194_v11, %v1172_v36  ;;  %v1202_v18 = vadd.f32 %v1200_v46, %v1178_v25  ;;  %v6606_v28 = vstv %s6597_s6  ;;  %v6617_v29 = vld [vmem:[#allocation163_spill] sm:$0xff]  ;;  %v6619_v25 = vld [vmem:[#allocation44_spill] sm:$0xff]  ;;  %v6623_v11 = vld [vmem:[#allocation166_spill] sm:$0xff]  ;;  %s5135_s6 = sld [smem:[#allocation9 + $0x8b]] }
 0x27e   : > { %v1260_v2 = vmul.f32 %v6606_v28, %v4840_v60  ;;  %v1203_v40 = vadd.f32 %v1201_v26, %v1179_v8  ;;  %v6608_v37 = vmov %v6606_v28  ;;  %v6609_v53 = vstv %s6600_s28  ;;  %v6631_v28 = vld [vmem:[#allocation154_spill] sm:$0xff]  ;;  %s5167_s28 = sld [smem:[#allocation9 + $0x6a]] }
 0x27f   : > { %v1261_v48 = vmul.f32 %v6608_v37, %v4846_v30  ;;  %v1267_v7 = vmul.f32 %v6609_v53, %v4846_v30  ;;  %v1184_v20 = vadd.f32 %v6610_v34, %v1160_v47  ;;  %v1214_v6 = vadd.f32 %v1212_v35, %v1190_v50 }
 0x280   : > { %v1220_v59 = vadd.f32 %v1218_v27, %v1196_v42  ;;  %v4879_v5 = vsel %vm359_vm5, %v6611_v55, %v1125_v9  ;;  %v6612_v57 = vmov %v6609_v53  ;;  %v1226_v44 = vadd.f32 %v1224_v49, %v1202_v18 }
 0x281   : > { %v1266_v26 = vmul.f32 %v6612_v57, %v4840_v60  ;;  %v1263_v12 = vadd.f32 %v1261_v48, %v1239_v33  ;;  %v1269_v61 = vadd.f32 %v1267_v7, %v1245_v19  ;;  %v1185_v21 = vadd.f32 %v6613_v56, %v1161_v3  ;;  %v4913_v19 = vpop.permute.xlu0 %1420 }
 0x282   : > { %v6614_v1 = vstv %s6607_s10  ;;  %v1238_v62 = vadd.f32 %v6615_v63, %v1214_v6  ;;  %v1244_v15 = vadd.f32 %v6617_v29, %v1220_v59  ;;  %v4895_v38 = vsel %vm359_vm5, %v6619_v25, %v1123_v51  ;;  %s5199_s10 = sld [smem:[#allocation9 + $0x8c]] }
 0x283   : > { %v1206_v16 = vmul.f32 %v6614_v1, %v1076_v54  ;;  %v6618_v36 = vmov %v6614_v1  ;;  %v6620_v35 = vstv %s4043_s9  ;;  %v6621_v54 = vstv %s4045_s1  ;;  %s6633_s9 = sld [smem:[#allocation143_spill]]  ;;  %s6636_s1 = sld [smem:[#allocation127_spill]] }
 0x284   : > { %v1207_v10 = vmul.f32 %v6618_v36, %v4761_v24  ;;  %v1285_v41 = vmul.f32 %v6620_v35, %v4879_v5  ;;  %v1291_v8 = vmul.f32 %v6621_v54, %v4879_v5  ;;  %v1227_v47 = vadd.f32 %v1225_v31, %v1203_v40 }
 0x285   : > { %v1208_v39 = vadd.f32 %v1206_v16, %v1184_v20  ;;  %v1262_v13 = vadd.f32 %v1260_v2, %v1238_v62  ;;  %v1268_v24 = vadd.f32 %v1266_v26, %v1244_v15  ;;  %v1250_v0 = vadd.f32 %v6623_v11, %v1226_v44  ;;  %v6635_v20 = vld [vmem:[#allocation178_spill] sm:$0xff]  ;;  %v6639_v44 = vld [vmem:[#allocation43_spill] sm:$0xff]  ;;  %v6644_v15 = vld [vmem:[#allocation167_spill] sm:$0xff] }
 0x286   : > { %v1287_v46 = vadd.f32 %v1285_v41, %v1263_v12  ;;  %v1293_v51 = vadd.f32 %v1291_v8, %v1269_v61  ;;  %v1617_v43 = vstv %s4860_s20  ;;  %v6624_v27 = vstv %s6616_s25  ;;  %v6646_v41 = vld [vmem:[#allocation173_spill] sm:$0xff]  ;;  %v1391_v8 = vpop.permute.xlu0 %1390  ;;  %s6721_s20 = sld [smem:[#allocation165_spill]]  ;;  %s6726_s25 = smov 16  }
 0x287   : > { %v1230_v45 = vmul.f32 %v6624_v27, %v1098_v52  ;;  %v1209_v49 = vadd.f32 %v1207_v10, %v1185_v21  ;;  %v6625_v58 = vmov %v6620_v35  ;;  %v6627_v31 = vmov %v6621_v54  ;;  %v6645_v10 = vld [vmem:[#allocation172_spill] sm:$0xff] }
 0x288   : > { %v1284_v33 = vmul.f32 %v6625_v58, %v4895_v38  ;;  %v1290_v4 = vmul.f32 %v6627_v31, %v4895_v38  ;;  %v6628_v9 = vmov %v6624_v27  ;;  %v6629_v50 = vstv %s6622_s17  ;;  %s5244_s17 = sld [smem:[#allocation9 + $0x8e]] }
 0x289   : > { %v1231_v3 = vmul.f32 %v6628_v9, %v4779_v22  ;;  %v1272_v42 = vmul.f32 %v6629_v50, %v4840_v60  ;;  %v1635_v18 = vstv %s4871_s16  ;;  %v1641_v52 = vstv %s4873_s13  ;;  %v6634_v22 = vld [vmem:[#allocation177_spill] sm:$0xff]  ;;  %s5203_s16 = sld [smem:[#allocation9 + $0x6b]]  ;;  %s5219_s13 = sld [smem:[#allocation9 + $0x8d]] }
 0x28a   : > { %v1251_v2 = vadd.f32 %v6631_v28, %v1227_v47  ;;  %v1232_v40 = vadd.f32 %v1230_v45, %v1208_v39  ;;  %v1286_v37 = vadd.f32 %v1284_v33, %v1262_v13  ;;  %v1292_v48 = vadd.f32 %v1290_v4, %v1268_v24 }
 0x28b   : > { %v1274_v53 = vadd.f32 %v1272_v42, %v1250_v0  ;;  %v4927_v7 = vsel %vm360_vm6, %v6611_v55, %v1133_v14  ;;  %v1311_v34 = vadd.f32 %v6634_v22, %v1287_v46  ;;  %v1317_v6 = vadd.f32 %v6635_v20, %v1293_v51  ;;  %v1401_v55 = vpop.permute.xlu1 %1400  ;;  %v6659_v22 = vld [vmem:[#allocation45_spill] sm:$0xff] }
 0x28c   : > { %v6637_v59 = vstv %s6626_s12  ;;  %v1233_v26 = vadd.f32 %v1231_v3, %v1209_v49  ;;  %v6638_v12 = vmov %v6629_v50  ;;  %v4941_v56 = vsel %vm359_vm5, %v6639_v44, %v4814_v32  ;;  %v6653_v49 = vld [vmem:[#allocation155_spill] sm:$0xff]  ;;  %s5259_s12 = sld [smem:[#allocation9 + $0x8f]] }
 0x28d   : > { %v1278_v57 = vmul.f32 %v6637_v59, %v4840_v60  ;;  %v1273_v61 = vmul.f32 %v6638_v12, %v4846_v30  ;;  %v6640_v21 = vstv %s6630_s11  ;;  %v4949_v60 = vsel %vm360_vm6, %v6619_v25, %v1131_v17  ;;  %s6728_s11 = smov 113  }
 0x28e   : > { %v1296_v1 = vmul.f32 %v6640_v21, %v4895_v38  ;;  %v6641_v16 = vstv %s6632_s19  ;;  %v6642_v62 = vstv %s6633_s9  ;;  %v1256_v36 = vadd.f32 %v6644_v15, %v1232_v40  ;;  %v6669_v15 = vld [vmem:[#allocation179_spill] sm:$0xff]  ;;  %s6729_s19 = smov 127   ;;  %s5573_s9 = sld [smem:[#allocation12]] }
 0x28f   : > { %v1333_v63 = vmul.f32 %v6641_v16, %v4927_v7  ;;  %v1339_v32 = vmul.f32 %v6642_v62, %v4927_v7  ;;  %v1275_v29 = vadd.f32 %v1273_v61, %v1251_v2  ;;  %v1310_v35 = vadd.f32 %v6645_v10, %v1286_v37  ;;  %v1423_v28 = vpop.permute.xlu1 %1422  ;;  %v6657_v2 = vld [vmem:[#allocation174_spill] sm:$0xff]  ;;  %v1399_v61 = vpop.permute.xlu0 %1398 }
 0x290   : > { %v1316_v54 = vadd.f32 %v6646_v41, %v1292_v48  ;;  %v6647_v47 = vstv %s6636_s1  ;;  %v1298_v17 = vadd.f32 %v1296_v1, %v1274_v53  ;;  %v6648_v24 = vmov %v6637_v59  ;;  %v6658_v48 = vld [vmem:[#allocation181_spill] sm:$0xff]  ;;  %s5575_s1 = sld [smem:[#allocation2]] }
 0x291   : > { %v1469_v39 = vmul.f32 %v6647_v47, %v4941_v56  ;;  %v1335_v25 = vadd.f32 %v1333_v63, %v1311_v34  ;;  %v1341_v13 = vadd.f32 %v1339_v32, %v1317_v6  ;;  %v1279_v14 = vmul.f32 %v6648_v24, %v4846_v30  ;;  %v6667_v32 = vld [vmem:[#allocation40_spill] sm:$0xff] }
 0x292   : > { %v6649_v11 = vmov %v6640_v21  ;;  %v6650_v46 = vmov %v6641_v16  ;;  %v6651_v27 = vmov %v6642_v62  ;;  %v1257_v58 = vadd.f32 %v6653_v49, %v1233_v26 }
 0x293   : > { %v1297_v0 = vmul.f32 %v6649_v11, %v4879_v5  ;;  %v1332_v51 = vmul.f32 %v6650_v46, %v4949_v60  ;;  %v1338_v45 = vmul.f32 %v6651_v27, %v4949_v60  ;;  %v6654_v33 = vstv %s6643_s8  ;;  %s5577_s8 = sld [smem:[#allocation12 + $0x1]] }
 0x294   : > { %v1475_v31 = vmul.f32 %v6654_v33, %v4941_v56  ;;  %v1471_v4 = vadd.f32 %v1469_v39, %v1335_v25  ;;  %v4982_v30 = vsel %vm360_vm6, %v6639_v44, %v1401_v55  ;;  %v1280_v9 = vadd.f32 %v1278_v57, %v1256_v36  ;;  %v6664_v44 = vld [vmem:[#allocation46_spill] sm:$0xff] }
 0x295   : > { %v1299_v3 = vadd.f32 %v1297_v0, %v1275_v29  ;;  %v1334_v50 = vadd.f32 %v1332_v51, %v1310_v35  ;;  %v1340_v42 = vadd.f32 %v1338_v45, %v1316_v54  ;;  %v1322_v40 = vadd.f32 %v6657_v2, %v1298_v17  ;;  %v6672_v39 = vld [vmem:[#allocation182_spill] sm:$0xff]  ;;  %v6675_v0 = vld [vmem:[#allocation185_spill] sm:$0xff]  ;;  %v6676_v51 = vld [vmem:[#allocation39_spill] sm:$0xff] }
 0x296   : > { %v1477_v37 = vadd.f32 %v1475_v31, %v1341_v13  ;;  %v1495_v53 = vadd.f32 %v6658_v48, %v1471_v4  ;;  %v4991_v34 = vsel %vm359_vm5, %v6659_v22, %v1391_v8  ;;  %v6660_v20 = vstv %s6652_s18  ;;  %v6680_v31 = vld [vmem:[#allocation186_spill] sm:$0xff]  ;;  %s5579_s18 = sld [smem:[#allocation12 + $0x2]] }
 0x297   : > { %v1517_v6 = vmul.f32 %v6660_v20, %v4982_v30  ;;  %v6661_v59 = vmov %v6647_v47  ;;  %v6662_v26 = vmov %v6654_v33  ;;  %v5005_v55 = vmul.f32 %v1635_v18, %v6664_v44 }
 0x298   : > { %v1468_v57 = vmul.f32 %v6661_v59, %v4991_v34  ;;  %v1474_v12 = vmul.f32 %v6662_v26, %v4991_v34  ;;  %v1281_v21 = vadd.f32 %v1279_v14, %v1257_v58  ;;  %v6665_v1 = vstv %s6655_s15  ;;  %s5586_s15 = sld [smem:[#allocation12 + $0x3]] }
 0x299   : > { %v1302_v16 = vmul.f32 %v6665_v1, %v4895_v38  ;;  %v6666_v63 = vstv %s6656_s2  ;;  %v5016_v29 = vsel %vm359_vm5, %v6667_v32, %v1423_v28  ;;  %v1323_v36 = vadd.f32 %v6669_v15, %v1299_v3  ;;  %v1429_v28 = vpop.permute.xlu0 %1428  ;;  %s5600_s2 = sld [smem:[#allocation12 + $0x4]] }
 0x29a   : > { %v1344_v62 = vmul.f32 %v6666_v63, %v4949_v60  ;;  %v1519_v10 = vadd.f32 %v1517_v6, %v1495_v53  ;;  %v1470_v35 = vadd.f32 %v1468_v57, %v1334_v50  ;;  %v1476_v41 = vadd.f32 %v1474_v12, %v1340_v42 }
 0x29b   : > { %v1304_v54 = vadd.f32 %v1302_v16, %v1280_v9  ;;  %v6671_v8 = vmov %v6665_v1  ;;  %v1501_v17 = vadd.f32 %v6672_v39, %v1477_v37  ;;  %v6673_v25 = vmov %v6666_v63 }
 0x29c   : > { %v1303_v38 = vmul.f32 %v6671_v8, %v4879_v5  ;;  %v1346_v47 = vadd.f32 %v1344_v62, %v1322_v40  ;;  %v1345_v13 = vmul.f32 %v6673_v25, %v4927_v7  ;;  %v6674_v24 = vstv %s6663_s21  ;;  %v1431_v5 = vpop.permute.xlu1 %1430  ;;  %v6694_v25 = vld [vmem:[#allocation47_spill] sm:$0xff]  ;;  %s5611_s21 = sld [smem:[#allocation12 + $0x6]] }
 0x29d   : > { %v1541_v14 = vmul.f32 %v6674_v24, %v5016_v29  ;;  %v5032_v11 = vsel %vm360_vm6, %v6659_v22, %v1399_v61  ;;  %v1494_v46 = vadd.f32 %v6675_v0, %v1470_v35  ;;  %v5039_v27 = vsel %vm359_vm5, %v6676_v51, %v4913_v19 }
 0x29e   : > { %v6678_v45 = vstv %s6668_s4  ;;  %v6679_v58 = vstv %s6670_s22  ;;  %v1500_v4 = vadd.f32 %v6680_v31, %v1476_v41  ;;  %v1347_v9 = vadd.f32 %v1345_v13, %v1323_v36  ;;  %v6692_v41 = vld [vmem:[#allocation189_spill] sm:$0xff]  ;;  %s5615_s4 = sld [smem:[#allocation12 + $0x7]]  ;;  %s5623_s22 = sld [smem:[#allocation12 + $0x8]] }
 0x29f   : > { %v1523_v49 = vmul.f32 %v6678_v45, %v4982_v30  ;;  %v1480_v33 = vmul.f32 %v6679_v58, %v4991_v34  ;;  %v1543_v3 = vadd.f32 %v1541_v14, %v1519_v10  ;;  %v6681_v50 = vmov %v6660_v20  ;;  %v6686_v20 = vld [vmem:[#allocation175_spill] sm:$0xff] }
 0x2a0   : > { %v1516_v42 = vmul.f32 %v6681_v50, %v5032_v11  ;;  %v1659_v2 = vstv %s4984_s29  ;;  %v6683_v19 = vmov %v6679_v58  ;;  %v1305_v37 = vadd.f32 %v1303_v38, %v1281_v21  ;;  %v1453_v8 = vpop.permute.xlu1 %1452  ;;  %v6695_v14 = vld [vmem:[#allocation180_spill] sm:$0xff]  ;;  %s5606_s29 = sld [smem:[#allocation12 + $0x5]] }
 0x2a1   : > { %v1481_v40 = vmul.f32 %v6683_v19, %v4941_v56  ;;  %v1525_v48 = vadd.f32 %v1523_v49, %v1501_v17  ;;  %v6685_v53 = vmov %v6678_v45  ;;  %v1328_v6 = vadd.f32 %v6686_v20, %v1304_v54  ;;  %v6697_v45 = vld [vmem:[#allocation187_spill] sm:$0xff] }
 0x2a2   : > { %v1522_v22 = vmul.f32 %v6685_v53, %v5032_v11  ;;  %v6687_v59 = vmov %v6674_v24  ;;  %v6688_v26 = vstv %s6677_s14  ;;  %v1518_v61 = vadd.f32 %v1516_v42, %v1494_v46  ;;  %v6702_v42 = vld [vmem:[#allocation183_spill] sm:$0xff]  ;;  %s5632_s14 = sld [smem:[#allocation12 + $0x9]] }
 0x2a3   : > { %v1540_v57 = vmul.f32 %v6687_v59, %v5039_v27  ;;  %v1546_v12 = vmul.f32 %v6688_v26, %v5039_v27  ;;  %v1482_v1 = vadd.f32 %v1480_v33, %v1346_v47  ;;  %v6689_v16 = vmov %v6688_v26  ;;  %v6699_v33 = vld [vmem:[#allocation194_spill] sm:$0xff] }
 0x2a4   : > { %v1547_v21 = vmul.f32 %v6689_v16, %v5016_v29  ;;  %v1524_v63 = vadd.f32 %v1522_v22, %v1500_v4  ;;  %v5071_v62 = vsel %vm360_vm6, %v6667_v32, %v1431_v5  ;;  %v6690_v15 = vstv %s6682_s23  ;;  %v6700_v4 = vld [vmem:[#allocation195_spill] sm:$0xff]  ;;  %s5640_s23 = sld [smem:[#allocation12 + $0xa]] }
 0x2a5   : > { %v1350_v36 = vmul.f32 %v6690_v15, %v4949_v60  ;;  %v1483_v10 = vadd.f32 %v1481_v40, %v1347_v9  ;;  %v1542_v35 = vadd.f32 %v1540_v57, %v1518_v61  ;;  %v1567_v54 = vadd.f32 %v6692_v41, %v1543_v3 }
 0x2a6   : > { %v6693_v38 = vstv %s6684_s26  ;;  %v1549_v39 = vadd.f32 %v1547_v21, %v1525_v48  ;;  %v1548_v17 = vadd.f32 %v1546_v12, %v1524_v63  ;;  %v1636_v13 = vmul.f32 %v1635_v18, %v6694_v25  ;;  %v6704_v48 = vld [vmem:[#allocation190_spill] sm:$0xff]  ;;  %v1461_v21 = vpop.permute.xlu1 %1460  ;;  %s5646_s26 = sld [smem:[#allocation12 + $0xb]] }
 0x2a7   : > { %v1487_v47 = vmul.f32 %v6693_v38, %v4941_v56  ;;  %v1352_v24 = vadd.f32 %v1350_v36, %v1328_v6  ;;  %v1329_v0 = vadd.f32 %v6695_v14, %v1305_v37  ;;  %v6696_v60 = vstv %s4247_s27  ;;  %v1451_v56 = vpop.permute.xlu0 %1450  ;;  %s6707_s27 = sld [smem:[#allocation164_spill]] }
 0x2a8   : > { %v1589_v46 = vmul.f32 %v6696_v60, %v5071_v62  ;;  %v5090_v5 = vsel %vm360_vm6, %v6676_v51, %v1429_v28  ;;  %v1506_v49 = vadd.f32 %v6697_v45, %v1482_v1  ;;  %v6698_v58 = vstv %s6691_s5  ;;  %s5654_s5 = sld [smem:[#allocation12 + $0xc]] }
 0x2a9   : > { %v1528_v18 = vmul.f32 %v6698_v58, %v5032_v11  ;;  %v1566_v31 = vadd.f32 %v6699_v33, %v1542_v35  ;;  %v1572_v9 = vadd.f32 %v6700_v4, %v1548_v17  ;;  %v6701_v3 = vmov %v6690_v15 }
 0x2aa   : > { %v1351_v50 = vmul.f32 %v6701_v3, %v4927_v7  ;;  %v1507_v19 = vadd.f32 %v6702_v42, %v1483_v10  ;;  %v1591_v28 = vadd.f32 %v1589_v46, %v1567_v54  ;;  %v6703_v40 = vmov %v6696_v60 }
 0x2ab   : > { %v1588_v37 = vmul.f32 %v6703_v40, %v5090_v5  ;;  %v1573_v53 = vadd.f32 %v6704_v48, %v1549_v39  ;;  %v6705_v22 = vstv %s4301_s3  ;;  %v5114_v6 = vsel %vm359_vm5, %v6664_v44, %v1453_v8  ;;  %s5157_s3 = sld [smem:[#allocation9 + $0x69]] }
 0x2ac   : > { %v1594_v20 = vmul.f32 %v6705_v22, %v5090_v5  ;;  %v5119_v7 = vsel %vm359_vm5, %v6694_v25, %v1451_v56  ;;  %v6706_v59 = vmov %v6698_v58  ;;  %v6708_v26 = vmov %v6693_v38 }
 0x2ad   : > { %v1529_v57 = vmul.f32 %v6706_v59, %v4982_v30  ;;  %v1486_v12 = vmul.f32 %v6708_v26, %v4991_v34  ;;  %v1590_v61 = vadd.f32 %v1588_v37, %v1566_v31  ;;  %v6709_v1 = vstv %s4327_s30  ;;  %s6715_s30 = sld [smem:[#allocation171_spill]]  ;;  %v6717_v37 = vld [vmem:[#allocation188_spill] sm:$0xff] }
 0x2ae   : > { %v1613_v16 = vmul.f32 %v6709_v1, %v5114_v6  ;;  %v1353_v63 = vadd.f32 %v1351_v50, %v1329_v0  ;;  %v1530_v15 = vadd.f32 %v1528_v18, %v1506_v49  ;;  %v6710_v36 = vmov %v6705_v22  ;;  %v1459_v18 = vpop.permute.xlu0 %1458 }
 0x2af   : > { %v1595_v10 = vmul.f32 %v6710_v36, %v5071_v62  ;;  %v1596_v35 = vadd.f32 %v1594_v20, %v1572_v9  ;;  %v1531_v41 = vadd.f32 %v1529_v57, %v1507_v19  ;;  %v6712_v54 = vmov %v6709_v1 }
 0x2b0   : > { %v1615_v34 = vadd.f32 %v1613_v16, %v1591_v28  ;;  %v1612_v8 = vmul.f32 %v6712_v54, %v5119_v7  ;;  %v1618_v38 = vmul.f32 %v1617_v43, %v5119_v7  ;;  %v6713_v39 = vstv %s6707_s27  ;;  %s5681_s27 = sld [smem:[#allocation12 + $0xe]] }
 0x2b1   : > { %v1552_v17 = vmul.f32 %v6713_v39, %v5039_v27  ;;  %v1597_v14 = vadd.f32 %v1595_v10, %v1573_v53  ;;  %v1619_v0 = vmul.f32 %v1617_v43, %v5114_v6  ;;  %v5152_v60 = vsel %vm360_vm6, %v6664_v44, %v1461_v21 }
 0x2b2   : > { %v1488_v46 = vadd.f32 %v1486_v12, %v1352_v24  ;;  %v6714_v56 = vmov %v6713_v39  ;;  %v1614_v49 = vadd.f32 %v1612_v8, %v1590_v61  ;;  %v1639_v58 = vadd.f32 %v5005_v55, %v1615_v34  ;;  %v6719_v12 = vld [vmem:[#allocation184_spill] sm:$0xff] }
 0x2b3   : > { %v1553_v45 = vmul.f32 %v6714_v56, %v5016_v29  ;;  %v1554_v43 = vadd.f32 %v1552_v17, %v1530_v15  ;;  %v6716_v33 = vstv %s6711_s0  ;;  %v1620_v4 = vadd.f32 %v1618_v38, %v1596_v35  ;;  %s5696_s0 = sld [smem:[#allocation12 + $0x10]] }
 0x2b4   : > { %v1576_v31 = vmul.f32 %v6716_v33, %v6676_v51  ;;  %v1642_v24 = vmul.f32 %v1641_v52, %v6694_v25  ;;  %v1489_v9 = vadd.f32 %v1487_v47, %v1353_v63  ;;  %v1599_v50 = vstv %s5102_s7  ;;  %s5668_s7 = sld [smem:[#allocation12 + $0xd]] }
 0x2b5   : > { %v1555_v3 = vadd.f32 %v1553_v45, %v1531_v41  ;;  %v1661_v55 = vmul.f32 %v1659_v2, %v5152_v60  ;;  %v1621_v42 = vadd.f32 %v1619_v0, %v1597_v14  ;;  %v1643_v19 = vmul.f32 %v1641_v52, %v6664_v44 }
 0x2b6   : > { %v5178_v28 = vsel %vm360_vm6, %v6694_v25, %v1459_v18  ;;  %v1638_v40 = vadd.f32 %v1636_v13, %v1614_v49  ;;  %v1512_v47 = vadd.f32 %v6717_v37, %v1488_v46  ;;  %v6718_v48 = vstv %s6715_s30  ;;  %v6720_v13 = vld [vmem:[#allocation191_spill] sm:$0xff]  ;;  %s5722_s30 = sld [smem:[#allocation12 + $0x13]] }
 0x2b7   : > { %v1534_v53 = vmul.f32 %v6718_v48, %v5032_v11  ;;  %v1665_v22 = vstv %s5130_s24  ;;  %v1663_v20 = vadd.f32 %v1661_v55, %v1639_v58  ;;  %v1578_v59 = vadd.f32 %v1576_v31, %v1554_v43  ;;  %s5692_s24 = sld [smem:[#allocation12 + $0xf]] }
 0x2b8   : > { %v1644_v57 = vadd.f32 %v1642_v24, %v1620_v4  ;;  %v1660_v52 = vmul.f32 %v1659_v2, %v5178_v28  ;;  %v1666_v26 = vmul.f32 %v1665_v22, %v5178_v28  ;;  %v1513_v61 = vadd.f32 %v6719_v12, %v1489_v9 }
 0x2b9   : > { %v1581_v1 = vstv %s5135_s6  ;;  %v1579_v16 = vadd.f32 %v6720_v13, %v1555_v3  ;;  %v1600_v21 = vmul.f32 %v1599_v50, %v5090_v5  ;;  %v1645_v63 = vadd.f32 %v1643_v19, %v1621_v42  ;;  %s5707_s6 = sld [smem:[#allocation12 + $0x11]] }
 0x2ba   : > { %v1667_v11 = vmul.f32 %v1665_v22, %v5152_v60  ;;  %v5194_v15 = vmax.f32 %v1663_v20, 0.0  ;;  %v1662_v36 = vadd.f32 %v1660_v52, %v1638_v40  ;;  %v6722_v10 = vmov %v6718_v48 }
 0x2bb   : > { %v1535_v2 = vmul.f32 %v6722_v10, %v4982_v30  ;;  %v1536_v35 = vadd.f32 %v1534_v53, %v1512_v47  ;;  %v1601_v41 = vmul.f32 %v1599_v50, %v5071_v62  ;;  %v1623_v34 = vstv %s5157_s3  ;;  %s5715_s3 = sld [smem:[#allocation12 + $0x12]] }
 0x2bc   : > { %v1602_v54 = vadd.f32 %v1600_v21, %v1578_v59  ;;  %v1624_v8 = vmul.f32 %v1623_v34, %v5119_v7  ;;  %v1668_v38 = vadd.f32 %v1666_v26, %v1644_v57  ;;  %v5206_v39 = vmax.f32 %v1662_v36, 0.0 }
 0x2bd   : > { %v6723_v17 = vstv %s6721_s20  ;;  %v1537_v0 = vadd.f32 %v1535_v2, %v1513_v61  ;;  %v1603_v30 = vadd.f32 %v1601_v41, %v1579_v16  ;;  %v1647_v46 = vstv %s5167_s28  ;;  %s5730_s28 = sld [smem:[#allocation12 + $0x14]]  ;;  %s5735_s20 = sld [smem:[#allocation12 + $0x15]] }
 0x2be   : > { %v1558_v14 = vmul.f32 %v6723_v17, %v5039_v27  ;;  %v1625_v56 = vmul.f32 %v1623_v34, %v5114_v6  ;;  %v1669_v45 = vadd.f32 %v1667_v11, %v1645_v63  ;;  %v1692_v49 = vrot.slane %v5206_v39, 7 }
 0x2bf   : > { %v1693_v58 = vrot.slane %v5194_v15, 7  ;;  %v6724_v18 = vmov %v6723_v17  ;;  %v1582_v31 = vmul.f32 %v1581_v1, %v6676_v51  ;;  %v1648_v27 = vmul.f32 %v1647_v46, %v6694_v25 }
 0x2c0   : > { %v1559_v43 = vmul.f32 %v6724_v18, %v5016_v29  ;;  %v1560_v33 = vadd.f32 %v1558_v14, %v1536_v35  ;;  %v1626_v4 = vadd.f32 %v1624_v8, %v1602_v54  ;;  %v5222_v24 = vmax.f32 %v1668_v38, 0.0 }
 0x2c1   : > { %v5226_v3 = vsel %vm379_vm1, %v1692_v49, %v1693_v58  ;;  %v1695_v50 = vsel %vm379_vm1, %v1693_v58, %v1692_v49  ;;  %v1583_v55 = vmul.f32 %v1581_v1, %v6667_v32  ;;  %v1627_v42 = vadd.f32 %v1625_v56, %v1603_v30 }
 0x2c2   : > { %v1561_v29 = vadd.f32 %v1559_v43, %v1537_v0  ;;  %1707 = vrot.lane.b32.xlu1 %v5226_v3, %s6726_s25  ;;  %v5236_v51 = vsel %vm355_vm0, %v5206_v39, %v1695_v50  ;;  %v1649_v19 = vmul.f32 %v1647_v46, %v6664_v44  ;;  %v5239_v40 = vmax.f32 %v1669_v45, 0.0 }
 0x2c3   : > { %1704 = vrot.lane.b32.xlu0 %v5236_v51, %s6726_s25  ;;  %v1605_v37 = vstv %s5199_s10  ;;  %v1671_v32 = vstv %s5203_s16  ;;  %v1584_v47 = vadd.f32 %v1582_v31, %v1560_v33  ;;  %v1650_v48 = vadd.f32 %v1648_v27, %v1626_v4  ;;  %s5752_s10 = sld [smem:[#allocation12 + $0x16]]  ;;  %s5758_s16 = sld [smem:[#allocation12 + $0x17]] }
 0x2c4   : > { %v1672_v53 = vmul.f32 %v1671_v32, %v5178_v28  ;;  %v1848_v22 = vrot.slane %v5222_v24, 7  ;;  %v1585_v20 = vadd.f32 %v1583_v55, %v1561_v29  ;;  %v1698_v59 = vrot.slane %v5206_v39, 1 }
 0x2c5   : > { %v1606_v57 = vmul.f32 %v1605_v37, %v5090_v5  ;;  %v1651_v52 = vadd.f32 %v1649_v19, %v1627_v42  ;;  %v1673_v26 = vmul.f32 %v1671_v32, %v5152_v60  ;;  %v1849_v12 = vrot.slane %v5239_v40, 7 }
 0x2c6   : > { %1737 = vrot.lane.b32.xlu1 %v5194_v15, %s6726_s25  ;;  %v1607_v61 = vmul.f32 %v1605_v37, %v5071_v62  ;;  %v1629_v1 = vstv %s5219_s13  ;;  %v1699_v13 = vrot.slane %v5194_v15, 1  ;;  %v1674_v5 = vadd.f32 %v1672_v53, %v1650_v48  ;;  %s5769_s13 = sld [smem:[#allocation12 + $0x18]] }
 0x2c7   : > { %1734 = vrot.lane.b32.xlu0 %v5206_v39, %s6726_s25  ;;  %v1608_v16 = vadd.f32 %v1606_v57, %v1584_v47  ;;  %v1630_v21 = vmul.f32 %v1629_v1, %v5119_v7  ;;  %v5265_v63 = vsel %vm379_vm1, %v1848_v22, %v1849_v12  ;;  %v1631_v10 = vmul.f32 %v1629_v1, %v5114_v6 }
 0x2c8   : > { %v5271_v11 = vsel %vm386_vm2, %v1698_v59, %v1699_v13  ;;  %v1701_v62 = vsel %vm386_vm2, %v1699_v13, %v1698_v59  ;;  %v1609_v36 = vadd.f32 %v1607_v61, %v1585_v20  ;;  %v1675_v7 = vadd.f32 %v1673_v26, %v1651_v52 }
 0x2c9   : > { %v1653_v2 = vstv %s5244_s17  ;;  %v1632_v35 = vadd.f32 %v1630_v21, %v1608_v16  ;;  %v5280_v34 = vmax.f32 %v1674_v5, 0.0  ;;  %v5285_v8 = vsel %vm358_vm3, %v5194_v15, %v1701_v62  ;;  %s5782_s17 = sld [smem:[#allocation12 + $0x1a]] }
 0x2ca   : > { %1863 = vrot.lane.b32.xlu1 %v5265_v63, %s6726_s25  ;;  %v1654_v41 = vmul.f32 %v1653_v2, %v6694_v25  ;;  %v1633_v38 = vadd.f32 %v1631_v10, %v1609_v36  ;;  %v1655_v6 = vmul.f32 %v1653_v2, %v6664_v44  ;;  %v5290_v17 = vmax.f32 %v1675_v7, 0.0 }
 0x2cb   : > { %1764 = vrot.lane.b32.xlu0 %v5271_v11, %s6726_s25  ;;  %v1851_v25 = vsel %vm379_vm1, %v1849_v12, %v1848_v22  ;;  %v1677_v14 = vstv %s5259_s12  ;;  %v2004_v46 = vrot.slane %v5280_v34, 7  ;;  %v1854_v56 = vrot.slane %v5222_v24, 1  ;;  %s5787_s12 = sld [smem:[#allocation12 + $0x1b]] }
 0x2cc   : > { %v1656_v0 = vadd.f32 %v1654_v41, %v1632_v35  ;;  %v1678_v30 = vmul.f32 %v1677_v14, %v5178_v28  ;;  %v5304_v44 = vsel %vm355_vm0, %v5222_v24, %v1851_v25  ;;  %v1657_v45 = vadd.f32 %v1655_v6, %v1633_v38 }
 0x2cd   : > { %v1679_v49 = vmul.f32 %v1677_v14, %v5152_v60  ;;  %v2005_v28 = vrot.slane %v5290_v17, 7  ;;  %v1855_v58 = vrot.slane %v5239_v40, 1  ;;  %v2010_v4 = vrot.slane %v5280_v34, 1 }
 0x2ce   : > { %1767 = vrot.lane.b32.xlu1 %v5285_v8, %s6726_s25  ;;  %v1680_v18 = vadd.f32 %v1678_v30, %v1656_v0  ;;  %v2011_v29 = vrot.slane %v5290_v17, 1 }
 0x2cf   : > { %1890 = vrot.lane.b32.xlu0 %v5222_v24, %s6726_s25  ;;  %v5314_v43 = vsel %vm379_vm1, %v2004_v46, %v2005_v28  ;;  %v5320_v33 = vsel %vm386_vm2, %v1854_v56, %v1855_v58  ;;  %v1681_v60 = vadd.f32 %v1679_v49, %v1657_v45  ;;  %v1857_v27 = vsel %vm386_vm2, %v1855_v58, %v1854_v56 }
 0x2d0   : > { %v5324_v31 = vmax.f32 %v1680_v18, 0.0  ;;  %v5339_v55 = vsel %vm358_vm3, %v5239_v40, %v1857_v27  ;;  %v5346_v19 = vsel %vm386_vm2, %v2010_v4, %v2011_v29  ;;  %v2007_v47 = vsel %vm379_vm1, %v2005_v28, %v2004_v46 }
 0x2d1   : > { %v5331_v50 = vmax.f32 %v1681_v60, 0.0  ;;  %v5366_v48 = vsel %vm355_vm0, %v5280_v34, %v2007_v47  ;;  %v2013_v53 = vsel %vm386_vm2, %v2011_v29, %v2010_v4 }
 0x2d2   : > { %1893 = vrot.lane.b32.xlu1 %v5239_v40, %s6726_s25  ;;  %v2160_v42 = vrot.slane %v5324_v31, 7  ;;  %v2166_v22 = vrot.slane %v5324_v31, 1  ;;  %v5377_v59 = vsel %vm358_vm3, %v5290_v17, %v2013_v53 }
 0x2d3   : > { %1860 = vrot.lane.b32.xlu0 %v5304_v44, %s6726_s25  ;;  %v2161_v37 = vrot.slane %v5331_v50, 7  ;;  %v2167_v20 = vrot.slane %v5331_v50, 1 }
 0x2d5   : > { %v5353_v32 = vsel %vm379_vm1, %v2160_v42, %v2161_v37  ;;  %v5383_v57 = vsel %vm386_vm2, %v2166_v22, %v2167_v20  ;;  %v2169_v52 = vsel %vm386_vm2, %v2167_v20, %v2166_v22  ;;  %v2163_v26 = vsel %vm379_vm1, %v2161_v37, %v2160_v42 }
 0x2d6   : > { %2019 = vrot.lane.b32.xlu1 %v5314_v43, %s6726_s25  ;;  %v5394_v12 = vsel %vm358_vm3, %v5331_v50, %v2169_v52  ;;  %v5401_v61 = vsel %vm355_vm0, %v5324_v31, %v2163_v26 }
 0x2d7   : > { %1920 = vrot.lane.b32.xlu0 %v5320_v33, %s6726_s25 }
 0x2da   : > { %2049 = vrot.lane.b32.xlu1 %v5290_v17, %s6726_s25 }
 0x2db   : > { %2046 = vrot.lane.b32.xlu0 %v5280_v34, %s6726_s25 }
 0x2de   : > { %1923 = vrot.lane.b32.xlu1 %v5339_v55, %s6726_s25 }
 0x2df   : > { %2076 = vrot.lane.b32.xlu0 %v5346_v19, %s6726_s25 }
 0x2e2   : > { %2175 = vrot.lane.b32.xlu1 %v5353_v32, %s6726_s25 }
 0x2e3   : > { %2202 = vrot.lane.b32.xlu0 %v5324_v31, %s6726_s25 }
 0x2e6   : > { %2205 = vrot.lane.b32.xlu1 %v5331_v50, %s6726_s25 }
 0x2e7   : > { %2016 = vrot.lane.b32.xlu0 %v5366_v48, %s6726_s25 }
 0x2ea   : > { %2079 = vrot.lane.b32.xlu1 %v5377_v59, %s6726_s25 }
 0x2eb   : > { %2232 = vrot.lane.b32.xlu0 %v5383_v57, %s6726_s25 }
 0x2ee   : > { %2235 = vrot.lane.b32.xlu1 %v5394_v12, %s6726_s25 }
 0x2ef   : > { %2172 = vrot.lane.b32.xlu0 %v5401_v61, %s6726_s25 }
 0x334   : > { %v1708_v1 = vpop.permute.xlu1 %1707 }
 0x335   : > { %v1705_v13 = vpop.permute.xlu0 %1704  ;;  %v1709_v36 = vsel %vm391_vm4, %v1708_v1, %v5226_v3 }
 0x336   : > { %v1706_v54 = vsel %vm391_vm4, %v1705_v13, %v5236_v51 }
 0x338   : > { %v1738_v16 = vpop.permute.xlu1 %1737 }
 0x339   : > { %v1739_v21 = vsel %vm391_vm4, %v1738_v16, %v5194_v15  ;;  %v1735_v5 = vpop.permute.xlu0 %1734 }
 0x33a   : > { %v1736_v62 = vsel %vm391_vm4, %v1735_v5, %v5206_v39  ;;  %1742 = vrot.lane.b32.xlu1 %v1739_v21, %s6726_s25 }
 0x33b   : > { %1740 = vrot.lane.b32.xlu0 %v1736_v62, %s6726_s25 }
 0x33c   : > { %v1864_v9 = vpop.permute.xlu1 %1863 }
 0x33d   : > { %v1765_v10 = vpop.permute.xlu0 %1764  ;;  %v1865_v35 = vsel %vm391_vm4, %v1864_v9, %v5265_v63 }
 0x33e   : > { %v1766_v7 = vsel %vm391_vm4, %v1765_v10, %v5271_v11  ;;  %1712 = vrot.lane.b32.xlu1 %v1709_v36, %s6726_s25 }
 0x33f   : > { %1770 = vrot.lane.b32.xlu0 %v1766_v7, %s6726_s25 }
 0x340   : > { %v1768_v2 = vpop.permute.xlu1 %1767 }
 0x341   : > { %v1891_v41 = vpop.permute.xlu0 %1890  ;;  %v1769_v49 = vsel %vm391_vm4, %v1768_v2, %v5285_v8 }
 0x342   : > { %1868 = vrot.lane.b32.xlu1 %v1865_v35, %s6726_s25  ;;  %v1892_v14 = vsel %vm391_vm4, %v1891_v41, %v5222_v24 }
 0x343   : > { %1710 = vrot.lane.b32.xlu0 %v1706_v54, %s6726_s25 }
 0x344   : > { %v1894_v38 = vpop.permute.xlu1 %1893 }
 0x345   : > { %v1895_v6 = vsel %vm391_vm4, %v1894_v38, %v5239_v40  ;;  %v1861_v25 = vpop.permute.xlu0 %1860 }
 0x346   : > { %1898 = vrot.lane.b32.xlu1 %v1895_v6, %s6726_s25  ;;  %v1862_v47 = vsel %vm391_vm4, %v1861_v25, %v5304_v44 }
 0x347   : > { %1896 = vrot.lane.b32.xlu0 %v1892_v14, %s6726_s25 }
 0x348   : > { %v2020_v0 = vpop.permute.xlu1 %2019 }
 0x349   : > { %v2021_v30 = vsel %vm391_vm4, %v2020_v0, %v5314_v43  ;;  %v1921_v46 = vpop.permute.xlu0 %1920 }
 0x34a   : > { %v1922_v56 = vsel %vm391_vm4, %v1921_v46, %v5320_v33  ;;  %2024 = vrot.lane.b32.xlu1 %v2021_v30, %s6726_s25 }
 0x34b   : > { %1926 = vrot.lane.b32.xlu0 %v1922_v56, %s6726_s25 }
 0x34c   : > { %v2050_v45 = vpop.permute.xlu1 %2049 }
 0x34d   : > { %v2047_v28 = vpop.permute.xlu0 %2046  ;;  %v2051_v60 = vsel %vm391_vm4, %v2050_v45, %v5290_v17 }
 0x34e   : > { %v2048_v58 = vsel %vm391_vm4, %v2047_v28, %v5280_v34  ;;  %1772 = vrot.lane.b32.xlu1 %v1769_v49, %s6726_s25 }
 0x34f   : > { %2052 = vrot.lane.b32.xlu0 %v2048_v58, %s6726_s25 }
 0x350   : > { %v1924_v18 = vpop.permute.xlu1 %1923 }
 0x351   : > { %v2077_v27 = vpop.permute.xlu0 %2076  ;;  %v1925_v1 = vsel %vm391_vm4, %v1924_v18, %v5339_v55 }
 0x352   : > { %v2078_v4 = vsel %vm391_vm4, %v2077_v27, %v5346_v19  ;;  %2054 = vrot.lane.b32.xlu1 %v2051_v60, %s6726_s25 }
 0x353   : > { %2082 = vrot.lane.b32.xlu0 %v2078_v4, %s6726_s25 }
 0x354   : > { %v2176_v29 = vpop.permute.xlu1 %2175 }
 0x355   : > { %v2177_v42 = vsel %vm391_vm4, %v2176_v29, %v5353_v32  ;;  %v2203_v37 = vpop.permute.xlu0 %2202 }
 0x356   : > { %2180 = vrot.lane.b32.xlu1 %v2177_v42, %s6726_s25  ;;  %v2204_v52 = vsel %vm391_vm4, %v2203_v37, %v5324_v31 }
 0x357   : > { %1866 = vrot.lane.b32.xlu0 %v1862_v47, %s6726_s25 }
 0x358   : > { %v2206_v53 = vpop.permute.xlu1 %2205 }
 0x359   : > { %v2207_v22 = vsel %vm391_vm4, %v2206_v53, %v5331_v50  ;;  %v2017_v20 = vpop.permute.xlu0 %2016 }
 0x35a   : > { %2210 = vrot.lane.b32.xlu1 %v2207_v22, %s6726_s25  ;;  %v2018_v5 = vsel %vm391_vm4, %v2017_v20, %v5366_v48 }
 0x35b   : > { %2208 = vrot.lane.b32.xlu0 %v2204_v52, %s6726_s25 }
 0x35c   : > { %v2080_v26 = vpop.permute.xlu1 %2079 }
 0x35d   : > { %v2233_v13 = vpop.permute.xlu0 %2232  ;;  %v2081_v21 = vsel %vm391_vm4, %v2080_v26, %v5377_v59 }
 0x35e   : > { %v2234_v16 = vsel %vm391_vm4, %v2233_v13, %v5383_v57  ;;  %1928 = vrot.lane.b32.xlu1 %v1925_v1, %s6726_s25 }
 0x35f   : > { %2238 = vrot.lane.b32.xlu0 %v2234_v16, %s6726_s25 }
 0x360   : > { %v2236_v62 = vpop.permute.xlu1 %2235 }
 0x361   : > { %v2173_v9 = vpop.permute.xlu0 %2172  ;;  %v2237_v36 = vsel %vm391_vm4, %v2236_v62, %v5394_v12 }
 0x362   : > { %2084 = vrot.lane.b32.xlu1 %v2081_v21, %s6726_s25  ;;  %v2174_v10 = vsel %vm391_vm4, %v2173_v9, %v5401_v61 }
 0x363   : > { %2022 = vrot.lane.b32.xlu0 %v2018_v5, %s6726_s25 }
 0x366   : > { %2240 = vrot.lane.b32.xlu1 %v2237_v36, %s6726_s25 }
 0x367   : > { %2178 = vrot.lane.b32.xlu0 %v2174_v10, %s6726_s25  ;;  %s5776_s25 = sld [smem:[#allocation12 + $0x19]] }
 0x3ac   : > { %v1743_v7 = vpop.permute.xlu1 %1742 }
 0x3ad   : > { %v1745_v2 = vsel %vm391_vm4, %v1743_v7, %v5194_v15  ;;  %v1741_v35 = vpop.permute.xlu0 %1740 }
 0x3ae   : > { %v1744_v41 = vsel %vm391_vm4, %v1741_v35, %v5206_v39  ;;  %1750 = vrot.lane.b32.xlu1 %v1745_v2, %s6728_s11 }
 0x3af   : > { %1748 = vrot.lane.b32.xlu0 %v1744_v41, %s6728_s11 }
 0x3b0   : > { %v1713_v54 = vpop.permute.xlu1 %1712 }
 0x3b1   : > { %v1771_v38 = vpop.permute.xlu0 %1770  ;;  %v1715_v56 = vsel %vm391_vm4, %v1713_v54, %v5226_v3 }
 0x3b2   : > { %1758 = vrot.lane.b32.xlu1 %v1745_v2, %s6729_s19  ;;  %v1774_v45 = vsel %vm391_vm4, %v1771_v38, %v5271_v11 }
 0x3b3   : > { %1756 = vrot.lane.b32.xlu0 %v1744_v41, %s6729_s19 }
 0x3b4   : > { %v1869_v6 = vpop.permute.xlu1 %1868 }
 0x3b5   : > { %v1711_v25 = vpop.permute.xlu0 %1710  ;;  %v1871_v58 = vsel %vm391_vm4, %v1869_v6, %v5265_v63 }
 0x3b6   : > { %v1714_v18 = vsel %vm391_vm4, %v1711_v25, %v5236_v51 }
 0x3b8   : > { %v1899_v14 = vpop.permute.xlu1 %1898 }
 0x3b9   : > { %v1901_v0 = vsel %vm391_vm4, %v1899_v14, %v5239_v40  ;;  %v1897_v30 = vpop.permute.xlu0 %1896 }
 0x3ba   : > { %v1900_v46 = vsel %vm391_vm4, %v1897_v30, %v5222_v24  ;;  %1906 = vrot.lane.b32.xlu1 %v1901_v0, %s6728_s11 }
 0x3bb   : > { %1904 = vrot.lane.b32.xlu0 %v1900_v46, %s6728_s11 }
 0x3bc   : > { %v2025_v28 = vpop.permute.xlu1 %2024 }
 0x3bd   : > { %v1927_v49 = vpop.permute.xlu0 %1926  ;;  %v2027_v22 = vsel %vm391_vm4, %v2025_v28, %v5314_v43  ;;  %v1795_v28 = vstv %s5573_s9  ;;  %s5810_s9 = sld [smem:[#allocation12 + $0x1e]] }
 0x3be   : > { %1720 = vrot.lane.b32.xlu1 %v1715_v56, %s6728_s11  ;;  %v1930_v37 = vsel %vm391_vm4, %v1927_v49, %v5320_v33 }
 0x3bf   : > { %1778 = vrot.lane.b32.xlu0 %v1774_v45, %s6728_s11 }
 0x3c0   : > { %v1773_v27 = vpop.permute.xlu1 %1772 }
 0x3c1   : > { %v2053_v60 = vpop.permute.xlu0 %2052  ;;  %v1775_v42 = vsel %vm391_vm4, %v1773_v27, %v5285_v8 }
 0x3c2   : > { %1728 = vrot.lane.b32.xlu1 %v1715_v56, %s6729_s19  ;;  %v2056_v16 = vsel %vm391_vm4, %v2053_v60, %v5280_v34 }
 0x3c3   : > { %1786 = vrot.lane.b32.xlu0 %v1774_v45, %s6729_s19 }
 0x3c4   : > { %v2055_v29 = vpop.permute.xlu1 %2054 }
 0x3c5   : > { %v2083_v4 = vpop.permute.xlu0 %2082  ;;  %v2057_v1 = vsel %vm391_vm4, %v2055_v29, %v5290_v17 }
 0x3c6   : > { %1876 = vrot.lane.b32.xlu1 %v1871_v58, %s6728_s11  ;;  %v2086_v10 = vsel %vm391_vm4, %v2083_v4, %v5346_v19  ;;  %v1801_v4 = vstv %s5577_s8  ;;  %s5825_s8 = sld [smem:[#allocation12 + $0x20]] }
 0x3c7   : > { %1718 = vrot.lane.b32.xlu0 %v1714_v18, %s6728_s11 }
 0x3c8   : > { %v2181_v53 = vpop.permute.xlu1 %2180 }
 0x3c9   : > { %v1867_v47 = vpop.permute.xlu0 %1866  ;;  %v2183_v36 = vsel %vm391_vm4, %v2181_v53, %v5353_v32  ;;  %v1803_v53 = vmul.f32 %v1801_v4, %v5226_v3 }
 0x3ca   : > { %1884 = vrot.lane.b32.xlu1 %v1871_v58, %s6729_s19  ;;  %v1870_v20 = vsel %vm391_vm4, %v1867_v47, %v5304_v44 }
 0x3cb   : > { %1726 = vrot.lane.b32.xlu0 %v1714_v18, %s6729_s19  ;;  %v1691_v18 = vstv %s5575_s1  ;;  %s5822_s1 = sld [smem:[#allocation12 + $0x1f]] }
 0x3cc   : > { %v2211_v26 = vpop.permute.xlu1 %2210 }
 0x3cd   : > { %v2209_v52 = vpop.permute.xlu0 %2208  ;;  %v2213_v38 = vsel %vm391_vm4, %v2211_v26, %v5331_v50 }
 0x3ce   : > { %1914 = vrot.lane.b32.xlu1 %v1901_v0, %s6729_s19  ;;  %v2212_v35 = vsel %vm391_vm4, %v2209_v52, %v5324_v31 }
 0x3cf   : > { %1912 = vrot.lane.b32.xlu0 %v1900_v46, %s6729_s19 }
 0x3d0   : > { %v1929_v21 = vpop.permute.xlu1 %1928 }
 0x3d1   : > { %v2239_v13 = vpop.permute.xlu0 %2238  ;;  %v1931_v5 = vsel %vm391_vm4, %v1929_v21, %v5339_v55 }
 0x3d2   : > { %1780 = vrot.lane.b32.xlu1 %v1775_v42, %s6728_s11  ;;  %v2242_v14 = vsel %vm391_vm4, %v2239_v13, %v5383_v57  ;;  %v1813_v13 = vstv %s5586_s15  ;;  %s5842_s15 = sld [smem:[#allocation12 + $0x22]] }
 0x3d3   : > { %1934 = vrot.lane.b32.xlu0 %v1930_v37, %s6728_s11 }
 0x3d4   : > { %v2085_v7 = vpop.permute.xlu1 %2084 }
 0x3d5   : > { %v2023_v62 = vpop.permute.xlu0 %2022  ;;  %v2087_v2 = vsel %vm391_vm4, %v2085_v7, %v5377_v59  ;;  %v1819_v7 = vstv %s5600_s2  ;;  %s5851_s2 = sld [smem:[#allocation12 + $0x23]] }
 0x3d6   : > { %1788 = vrot.lane.b32.xlu1 %v1775_v42, %s6729_s19  ;;  %v2026_v9 = vsel %vm391_vm4, %v2023_v62, %v5366_v48  ;;  %v1807_v42 = vstv %s5579_s18  ;;  %s5834_s18 = sld [smem:[#allocation12 + $0x21]] }
 0x3d7   : > { %1942 = vrot.lane.b32.xlu0 %v1930_v37, %s6729_s19 }
 0x3d8   : > { %v2241_v6 = vpop.permute.xlu1 %2240 }
 0x3d9   : > { %v2179_v41 = vpop.permute.xlu0 %2178  ;;  %v2243_v25 = vsel %vm391_vm4, %v2241_v6, %v5394_v12 }
 0x3da   : > { %2032 = vrot.lane.b32.xlu1 %v2027_v22, %s6728_s11  ;;  %v2182_v54 = vsel %vm391_vm4, %v2179_v41, %v5401_v61 }
 0x3db   : > { %1874 = vrot.lane.b32.xlu0 %v1870_v20, %s6728_s11 }
 0x3de   : > { %2040 = vrot.lane.b32.xlu1 %v2027_v22, %s6729_s19 }
 0x3df   : > { %1882 = vrot.lane.b32.xlu0 %v1870_v20, %s6729_s19 }
 0x3e2   : > { %2062 = vrot.lane.b32.xlu1 %v2057_v1, %s6728_s11 }
 0x3e3   : > { %2060 = vrot.lane.b32.xlu0 %v2056_v16, %s6728_s11 }
 0x3e6   : > { %1936 = vrot.lane.b32.xlu1 %v1931_v5, %s6728_s11 }
 0x3e7   : > { %2068 = vrot.lane.b32.xlu0 %v2056_v16, %s6729_s19 }
 0x3ea   : > { %1944 = vrot.lane.b32.xlu1 %v1931_v5, %s6729_s19 }
 0x3eb   : > { %2030 = vrot.lane.b32.xlu0 %v2026_v9, %s6728_s11 }
 0x3ee   : > { %2070 = vrot.lane.b32.xlu1 %v2057_v1, %s6729_s19 }
 0x3ef   : > { %2038 = vrot.lane.b32.xlu0 %v2026_v9, %s6729_s19 }
 0x3f2   : > { %2188 = vrot.lane.b32.xlu1 %v2183_v36, %s6728_s11 }
 0x3f3   : > { %2090 = vrot.lane.b32.xlu0 %v2086_v10, %s6728_s11 }
 0x3f6   : > { %2092 = vrot.lane.b32.xlu1 %v2087_v2, %s6728_s11 }
 0x3f7   : > { %2098 = vrot.lane.b32.xlu0 %v2086_v10, %s6729_s19 }
 0x3fa   : > { %2100 = vrot.lane.b32.xlu1 %v2087_v2, %s6729_s19 }
 0x3fb   : > { %2216 = vrot.lane.b32.xlu0 %v2212_v35, %s6728_s11 }
 0x3fe   : > { %2196 = vrot.lane.b32.xlu1 %v2183_v36, %s6729_s19 }
 0x3ff   : > { %2186 = vrot.lane.b32.xlu0 %v2182_v54, %s6728_s11 }
 0x402   : > { %2218 = vrot.lane.b32.xlu1 %v2213_v38, %s6728_s11 }
 0x403   : > { %2194 = vrot.lane.b32.xlu0 %v2182_v54, %s6729_s19 }
 0x406   : > { %2226 = vrot.lane.b32.xlu1 %v2213_v38, %s6729_s19 }
 0x407   : > { %2224 = vrot.lane.b32.xlu0 %v2212_v35, %s6729_s19  ;;  %v1802_v35 = vmul.f32 %v1801_v4, %v5236_v51 }
 0x40a   : > { %2248 = vrot.lane.b32.xlu1 %v2243_v25, %s6728_s11 }
 0x40b   : > { %2246 = vrot.lane.b32.xlu0 %v2242_v14, %s6728_s11  ;;  %s5798_s11 = sld [smem:[#allocation12 + $0x1c]] }
 0x40e   : > { %2256 = vrot.lane.b32.xlu1 %v2243_v25, %s6729_s19 }
 0x40f   : > { %2254 = vrot.lane.b32.xlu0 %v2242_v14, %s6729_s19  ;;  %s5805_s19 = sld [smem:[#allocation12 + $0x1d]] }
 0x420   : > { %v1751_v0 = vpop.permute.xlu1 %1750 }
 0x421   : > { %v1749_v30 = vpop.permute.xlu0 %1748  ;;  %v1755_v16 = vsel %vm359_vm5, %v5194_v15, %v1751_v0  ;;  %v1821_v0 = vmul.f32 %v1819_v7, %v5194_v15 }
 0x422   : > { %v1815_v9 = vmul.f32 %v1813_v13, %v1755_v16  ;;  %v1754_v41 = vsel %vm359_vm5, %v5206_v39, %v1749_v30 }
 0x424   : > { %v1759_v46 = vpop.permute.xlu1 %1758 }
 0x425   : > { %v1757_v56 = vpop.permute.xlu0 %1756  ;;  %v1763_v30 = vsel %vm360_vm6, %v5194_v15, %v1759_v46 }
 0x42c   : > { %v5581_v45 = vpop.permute.xlu1 %1906 }
 0x42d   : > { %v5583_v49 = vpop.permute.xlu0 %1904 }
 0x430   : > { %v1721_v58 = vpop.permute.xlu1 %1720 }
 0x431   : > { %v1725_v60 = vsel %vm359_vm5, %v5226_v3, %v1721_v58  ;;  %v1779_v27 = vpop.permute.xlu0 %1778  ;;  %v1825_v58 = vstv %s5606_s29  ;;  %s6730_s29 = sld [smem:[#allocation28_spill]] }
 0x432   : > { %v1797_v29 = vmul.f32 %v1795_v28, %v1725_v60  ;;  %v1762_v60 = vsel %vm360_vm6, %v5206_v39, %v1757_v56  ;;  %v1784_v15 = vsel %vm359_vm5, %v5271_v11, %v1779_v27 }
 0x434   : > { %v1799_v37 = vadd.f32 %v1797_v29, %v1691_v18  ;;  %v1729_v47 = vpop.permute.xlu1 %1728  ;;  %v1820_v29 = vmul.f32 %v1819_v7, %v5206_v39 }
 0x435   : > { %v1733_v22 = vsel %vm360_vm6, %v5226_v3, %v1729_v47  ;;  %v5598_v20 = vpop.permute.xlu0 %1786  ;;  %v1831_v47 = vstv %s5611_s21  ;;  %s6731_s21 = sld [smem:[#allocation23_spill]] }
 0x436   : > { %v1805_v52 = vadd.f32 %v1803_v53, %v1799_v37  ;;  %v1809_v26 = vmul.f32 %v1807_v42, %v1733_v22  ;;  %v1827_v37 = vmul.f32 %v1825_v58, %v1763_v30  ;;  %v1826_v53 = vmul.f32 %v1825_v58, %v1762_v60 }
 0x437   : > { %v1832_v16 = vmul.f32 %v1831_v47, %v1784_v15  ;;  %v1963_v30 = vstv %s5646_s26 }
 0x438   : > { %v1877_v1 = vpop.permute.xlu1 %1876  ;;  %v1811_v5 = vadd.f32 %v1809_v26, %v1805_v52  ;;  %v1837_v52 = vstv %s5615_s4 }
 0x439   : > { %v1719_v21 = vpop.permute.xlu0 %1718  ;;  %v1881_v7 = vsel %vm359_vm5, %v5265_v63, %v1877_v1 }
 0x43a   : > { %v1724_v3 = vsel %vm359_vm5, %v5236_v51, %v1719_v21  ;;  %v1817_v54 = vadd.f32 %v1815_v9, %v1811_v5  ;;  %v1843_v21 = vstv %s5623_s22  ;;  %v1838_v9 = vmul.f32 %v1837_v52, %v5271_v11  ;;  %s2480_s22 = sshll.u32 %s6730_s29, 4 }
 0x43b   : > { %v1796_v62 = vmul.f32 %v1795_v28, %v1724_v3  ;;  %v1814_v28 = vmul.f32 %v1813_v13, %v1754_v41  ;;  %v1839_v3 = vmul.f32 %v1837_v52, %v5285_v8 }
 0x43c   : > { %v1885_v36 = vpop.permute.xlu1 %1884  ;;  %v1823_v4 = vadd.f32 %v1821_v0, %v1817_v54  ;;  %v1792_v54 = vsel %vm360_vm6, %v5271_v11, %v5598_v20 }
 0x43d   : > { %v1798_v10 = vadd.f32 %v1796_v62, %v1691_v18  ;;  %v1727_v2 = vpop.permute.xlu0 %1726 }
 0x43e   : > { %v1732_v38 = vsel %vm360_vm6, %v5236_v51, %v1727_v2  ;;  %v1829_v26 = vadd.f32 %v1827_v37, %v1823_v4 }
 0x43f   : > { %v1804_v6 = vadd.f32 %v1802_v35, %v1798_v10  ;;  %v1808_v25 = vmul.f32 %v1807_v42, %v1732_v38  ;;  %v1951_v10 = vstv %s5632_s14  ;;  %s2681_s14 = sshll.u32 %s6731_s21, 8 }
 0x440   : > { %v5625_v14 = vpop.permute.xlu1 %1914  ;;  %v1953_v1 = vmul.f32 %v1951_v10, %v1881_v7 }
 0x441   : > { %v1810_v18 = vadd.f32 %v1808_v25, %v1804_v6  ;;  %v5634_v51 = vpop.permute.xlu0 %1912  ;;  %v1957_v25 = vstv %s5640_s23  ;;  %s349_s23 = scalar_lea.vmem [#allocation13], %s2480_s22 }
 0x442   : > { %v1959_v11 = vmul.f32 %v1957_v25, %v5265_v63  ;;  %v1918_v7 = vsel %vm360_vm6, %v5222_v24, %v5634_v51  ;;  %s2335_s26 = sshll.u32 %s349_s23, 4  ;;  %s5886_s26 = int_to_ptr.vmem [resolvable:$true] %s2335_s26 }
 0x443   : > { %v1816_v42 = vadd.f32 %v1814_v28, %v1810_v18  ;;  %v1889_v18 = vsel %vm360_vm6, %v5265_v63, %v1885_v36 }
 0x444   : > { %v1781_v46 = vpop.permute.xlu1 %1780  ;;  %v1965_v36 = vmul.f32 %v1963_v30, %v1889_v18 }
 0x445   : > { %v1822_v22 = vadd.f32 %v1820_v29, %v1816_v42  ;;  %v1785_v39 = vsel %vm359_vm5, %v5285_v8, %v1781_v46  ;;  %v5651_v56 = vpop.permute.xlu0 %1934  ;;  %v1969_v29 = vstv %s5654_s5  ;;  %v1911_v42 = vsel %vm359_vm5, %v5239_v40, %v5581_v45 }
 0x446   : > { %v1833_v13 = vmul.f32 %v1831_v47, %v1785_v39  ;;  %v1971_v52 = vmul.f32 %v1969_v29, %v1911_v42  ;;  %v1910_v45 = vsel %vm359_vm5, %v5222_v24, %v5583_v49  ;;  %v1919_v49 = vsel %vm360_vm6, %v5239_v40, %v5625_v14 }
 0x447   : > { %v1828_v27 = vadd.f32 %v1826_v53, %v1822_v22  ;;  %v1958_v53 = vmul.f32 %v1957_v25, %v5304_v44  ;;  %v1975_v22 = vstv %s5668_s7  ;;  %v1993_v25 = vstv %s5696_s0  ;;  %s2322_s0 = scalar_lea.sflag [#allocation5], %s6730_s29 }
 0x448   : > { %v1835_v5 = vadd.f32 %v1833_v13, %v1829_v26  ;;  %v1789_v62 = vpop.permute.xlu1 %1788  ;;  %v2107_v42 = vstv %s5715_s3  ;;  %s2970_s3 = smov [#allocation13]  }
 0x449   : > { %v1793_v2 = vsel %vm360_vm6, %v5285_v8, %v1789_v62  ;;  %v5666_v35 = vpop.permute.xlu0 %1942  ;;  %v1834_v41 = vadd.f32 %v1832_v16, %v1828_v27  ;;  %v1844_v8 = vmul.f32 %v1843_v21, %v1792_v54  ;;  %v1970_v62 = vmul.f32 %v1969_v29, %v1910_v45 }
 0x44a   : > { %v1841_v38 = vadd.f32 %v1839_v3, %v1835_v5  ;;  %v1845_v6 = vmul.f32 %v1843_v21, %v1793_v2  ;;  %v1977_v5 = vmul.f32 %v1975_v22, %v5239_v40  ;;  %v1940_v40 = vsel %vm359_vm5, %v5320_v33, %v5651_v56 }
 0x44b   : > { %v1840_v0 = vadd.f32 %v1838_v9, %v1834_v41  ;;  %v1981_v9 = vstv %s5681_s27  ;;  %v1976_v41 = vmul.f32 %v1975_v22, %v5222_v24  ;;  %v1995_v56 = vmul.f32 %v1993_v25, %v5339_v55  ;;  %s6733_s27 = sld [smem:[#allocation203_spill]] }
 0x44c   : > { %v1847_v28 = vadd.f32 %v1845_v6, %v1841_v38  ;;  %v5675_v58 = vpop.permute.xlu1 %2032  ;;  %v1983_v38 = vmul.f32 %v1981_v9, %v1919_v49  ;;  %v1987_v6 = vstv %s5692_s24  ;;  %v1994_v29 = vmul.f32 %v1993_v25, %v5320_v33 }
 0x44d   : > { %v1875_v60 = vpop.permute.xlu0 %1874  ;;  %v1846_v37 = vadd.f32 %v1844_v8, %v1840_v0  ;;  %v1982_v0 = vmul.f32 %v1981_v9, %v1918_v7  ;;  %v2113_v22 = vstv %s5722_s30  ;;  %v2125_v9 = vstv %s5735_s20  ;;  %s2884_s30 = sshll.u32 %s2970_s3, 4  ;;  %s2885_s30 = int_to_ptr.vmem [resolvable:$false] %s2884_s30 }
 0x44e   : > { %v1955_v20 = vadd.f32 %v1953_v1, %v1847_v28  ;;  %v1880_v4 = vsel %vm359_vm5, %v5304_v44, %v1875_v60  ;;  %v1999_v60 = vstv %s5707_s6  ;;  %s2880_s6 = scalar_lea.vmem %s5886_s26, 256  ;;  %p2887_p13 = scmp.lt.s32.totalorder %s5886_s26, %s2885_s30 }
 0x44f   : > { %v1952_v47 = vmul.f32 %v1951_v10, %v1880_v4  ;;  %p2881_p6 = scmp.ne.s32.totalorder %s5886_s26, %s2880_s6 }
 0x450   : > { %v1961_v15 = vadd.f32 %v1959_v11, %v1955_v20  ;;  %v5694_v46 = vpop.permute.xlu1 %2040  ;;  %v1948_v11 = vsel %vm360_vm6, %v5320_v33, %v5666_v35 }
 0x451   : > { %v1954_v63 = vadd.f32 %v1952_v47, %v1846_v37  ;;  %v1883_v39 = vpop.permute.xlu0 %1882  ;;  %v2037_v37 = vsel %vm359_vm5, %v5314_v43, %v5675_v58  ;;  %s5884_s24 = scalar_lea.hbm %s6733_s27, %s2681_s14  ;;  %p2882_p8 = pnand %p2881_p6, %p3112_p9 }
 0x452   : > { %v1967_v26 = vadd.f32 %v1965_v36, %v1961_v15  ;;  %v1888_v13 = vsel %vm360_vm6, %v5304_v44, %v1883_v39 }
 0x453   : > { %v1960_v16 = vadd.f32 %v1958_v53, %v1954_v63  ;;  %v1964_v27 = vmul.f32 %v1963_v30, %v1888_v13  ;;  %v1988_v30 = vmul.f32 %v1987_v6, %v1940_v40  ;;  %v2000_v53 = vmul.f32 %v1999_v60, %v1948_v11  ;;  %p2883_p5 = pneg %p2882_p8 }
 0x454   : > { %v2063_v21 = vpop.permute.xlu1 %2062  ;;  %v1973_v3 = vadd.f32 %v1971_v52, %v1967_v26  ;;  %v2109_v52 = vmul.f32 %v2107_v42, %v2037_v37  ;;  %v2045_v26 = vsel %vm360_vm6, %v5314_v43, %v5694_v46  ;;  %v2114_v46 = vmul.f32 %v2113_v22, %v5366_v48 }
 0x455   : > { %v1966_v44 = vadd.f32 %v1964_v27, %v1960_v16  ;;  %v2061_v10 = vpop.permute.xlu0 %2060  ;;  %v2067_v49 = vsel %vm359_vm5, %v5290_v17, %v2063_v21 }
 0x456   : > { %v1979_v2 = vadd.f32 %v1977_v5, %v1973_v3  ;;  %v2115_v5 = vmul.f32 %v2113_v22, %v5314_v43  ;;  %v2066_v43 = vsel %vm359_vm5, %v5280_v34, %v2061_v10  ;;  %v2137_v10 = vstv %s5758_s16 }
 0x457   : > { %v1972_v54 = vadd.f32 %v1970_v62, %v1966_v44  ;;  %v2126_v21 = vmul.f32 %v2125_v9, %v2066_v43 }
 0x458   : > { %v1937_v14 = vpop.permute.xlu1 %1936  ;;  %v1985_v28 = vadd.f32 %v1983_v38, %v1979_v2 }
 0x459   : > { %v1978_v51 = vadd.f32 %v1976_v41, %v1972_v54  ;;  %v1941_v24 = vsel %vm359_vm5, %v5339_v55, %v1937_v14  ;;  %v2069_v1 = vpop.permute.xlu0 %2068  ;;  %v2131_v54 = vstv %s5752_s10  ;;  %v2127_v14 = vmul.f32 %v2125_v9, %v2067_v49 }
 0x45a   : > { %v1989_v8 = vmul.f32 %v1987_v6, %v1941_v24  ;;  %v2133_v24 = vmul.f32 %v2131_v54, %v5290_v17 }
 0x45b   : > { %v1984_v18 = vadd.f32 %v1982_v0, %v1978_v51  ;;  %v2074_v51 = vsel %vm360_vm6, %v5280_v34, %v2069_v1 }
 0x45c   : > { %v1991_v20 = vadd.f32 %v1989_v8, %v1985_v28  ;;  %v1945_v4 = vpop.permute.xlu1 %1944  ;;  %v2138_v1 = vmul.f32 %v2137_v10, %v2074_v51  ;;  %v2287_v51 = vstv %s5822_s1 }
 0x45d   : > { %v1949_v47 = vsel %vm360_vm6, %v5339_v55, %v1945_v4  ;;  %v2031_v36 = vpop.permute.xlu0 %2030  ;;  %v1990_v15 = vadd.f32 %v1988_v30, %v1984_v18  ;;  %v2119_v55 = vstv %s5730_s28  ;;  %v2132_v18 = vmul.f32 %v2131_v54, %v5280_v34  ;;  %s2886_s28 = scalar_lea.vmem %s2885_s30, 512 }
 0x45e   : > { %v1997_v35 = vadd.f32 %v1995_v56, %v1991_v20  ;;  %v2001_v63 = vmul.f32 %v1999_v60, %v1949_v47  ;;  %v2036_v33 = vsel %vm359_vm5, %v5366_v48, %v2031_v36  ;;  %v2121_v7 = vmul.f32 %v2119_v55, %v2045_v26  ;;  %p2888_p10 = scmp.lt.s32.totalorder %s2886_s28, %s2880_s6 }
 0x45f   : > { %v1996_v39 = vadd.f32 %v1994_v29, %v1990_v15  ;;  %v2108_v16 = vmul.f32 %v2107_v42, %v2036_v33  ;;  %v2143_v4 = vstv %s5769_s13  ;;  %v2149_v42 = vstv %s5776_s25 }
 0x460   : > { %v2003_v58 = vadd.f32 %v2001_v63, %v1997_v35  ;;  %v2071_v45 = vpop.permute.xlu1 %2070  ;;  %v2281_v54 = vstv %s5810_s9  ;;  %p2889_p12 = por %p2888_p10, %p2887_p13 }
 0x461   : > { %v2002_v13 = vadd.f32 %v2000_v53, %v1996_v39  ;;  %v2039_v27 = vpop.permute.xlu0 %2038  ;;  %v2155_v53 = vstv %s5782_s17  ;;  %v2151_v39 = vmul.f32 %v2149_v42, %v5377_v59 }
 0x462   : > { %v2111_v3 = vadd.f32 %v2109_v52, %v2003_v58  ;;  %v2044_v62 = vsel %vm360_vm6, %v5366_v48, %v2039_v27  ;;  %v2075_v48 = vsel %vm360_vm6, %v5290_v17, %v2071_v45  ;;  %v2263_v52 = vstv %s5787_s12  ;;  %p2890_p0 = pnand %p2889_p12, %p2883_p5 }
 0x463   : > { %v2110_v44 = vadd.f32 %v2108_v16, %v2002_v13  ;;  %v2120_v6 = vmul.f32 %v2119_v55, %v2044_v62  ;;  %v2139_v20 = vmul.f32 %v2137_v10, %v2075_v48  ;;  %v2150_v55 = vmul.f32 %v2149_v42, %v5346_v19 }
 0x464   : > { %v2117_v2 = vadd.f32 %v2115_v5, %v2111_v3  ;;  %v2189_v41 = vpop.permute.xlu1 %2188  ;;  %v2269_v3 = vstv %s5798_s11 }
 0x465   : > { %v2116_v38 = vadd.f32 %v2114_v46, %v2110_v44  ;;  %v2091_v40 = vpop.permute.xlu0 %2090  ;;  %v2193_v58 = vsel %vm359_vm5, %v5353_v32, %v2189_v41 }
 0x466   : > { %v2123_v25 = vadd.f32 %v2121_v7, %v2117_v2  ;;  %v2096_v17 = vsel %vm359_vm5, %v5346_v19, %v2091_v40  ;;  %v2271_v2 = vmul.f32 %v2269_v3, %v5353_v32  ;;  %v2270_v40 = vmul.f32 %v2269_v3, %v5401_v61 }
 0x467   : > { %v2122_v0 = vadd.f32 %v2120_v6, %v2116_v38  ;;  %v2144_v15 = vmul.f32 %v2143_v4, %v2096_v17 }
 0x468   : > { %v2129_v28 = vadd.f32 %v2127_v14, %v2123_v25  ;;  %v2093_v8 = vpop.permute.xlu1 %2092 }
 0x469   : > { %v2128_v30 = vadd.f32 %v2126_v21, %v2122_v0  ;;  %v2097_v56 = vsel %vm359_vm5, %v5377_v59, %v2093_v8  ;;  %v2099_v60 = vpop.permute.xlu0 %2098 }
 0x46a   : > { %v2135_v11 = vadd.f32 %v2133_v24, %v2129_v28  ;;  %v2145_v37 = vmul.f32 %v2143_v4, %v2097_v56  ;;  %v2104_v22 = vsel %vm360_vm6, %v5346_v19, %v2099_v60  ;;  %v2275_v19 = vstv %s5805_s19 }
 0x46b   : > { %v2134_v29 = vadd.f32 %v2132_v18, %v2128_v30  ;;  %v2156_v5 = vmul.f32 %v2155_v53, %v2104_v22  ;;  %v2293_v56 = vstv %s5825_s8 }
 0x46c   : > { %v2141_v34 = vadd.f32 %v2139_v20, %v2135_v11  ;;  %v2101_v47 = vpop.permute.xlu1 %2100 }
 0x46d   : > { %v2140_v36 = vadd.f32 %v2138_v1, %v2134_v29  ;;  %v2105_v35 = vsel %vm360_vm6, %v5377_v59, %v2101_v47  ;;  %v2217_v63 = vpop.permute.xlu0 %2216  ;;  %v2265_v59 = vmul.f32 %v2263_v52, %v2193_v58  ;;  %v2288_v1 = vmul.f32 %v2287_v51, %v5324_v31 }
 0x46e   : > { %v2147_v33 = vadd.f32 %v2145_v37, %v2141_v34  ;;  %v2157_v13 = vmul.f32 %v2155_v53, %v2105_v35  ;;  %v2222_v25 = vsel %vm359_vm5, %v5324_v31, %v2217_v63  ;;  %v2299_v29 = vstv %s5834_s18 }
 0x46f   : > { %v2146_v45 = vadd.f32 %v2144_v15, %v2140_v36  ;;  %v2282_v30 = vmul.f32 %v2281_v54, %v2222_v25 }
 0x470   : > { %v2153_v26 = vadd.f32 %v2151_v39, %v2147_v33  ;;  %v2197_v16 = vpop.permute.xlu1 %2196  ;;  %v2311_v39 = vstv %s5851_s2 }
 0x471   : > { %v2152_v27 = vadd.f32 %v2150_v55, %v2146_v45  ;;  %v2187_v62 = vpop.permute.xlu0 %2186  ;;  %v2201_v46 = vsel %vm360_vm6, %v5353_v32, %v2197_v16 }
 0x472   : > { %v2159_v9 = vadd.f32 %v2157_v13, %v2153_v26  ;;  %v2192_v49 = vsel %vm359_vm5, %v5401_v61, %v2187_v62  ;;  %v2277_v48 = vmul.f32 %v2275_v19, %v2201_v46 }
 0x473   : > { %v2158_v44 = vadd.f32 %v2156_v5, %v2152_v27  ;;  %v2264_v7 = vmul.f32 %v2263_v52, %v2192_v49 }
 0x474   : > { %v2267_v43 = vadd.f32 %v2265_v59, %v2159_v9  ;;  %v2219_v41 = vpop.permute.xlu1 %2218 }
 0x475   : > { %v2266_v38 = vadd.f32 %v2264_v7, %v2158_v44  ;;  %v2223_v6 = vsel %vm359_vm5, %v5331_v50, %v2219_v41  ;;  %v2195_v14 = vpop.permute.xlu0 %2194 }
 0x476   : > { %v2273_v21 = vadd.f32 %v2271_v2, %v2267_v43  ;;  %v2200_v32 = vsel %vm360_vm6, %v5401_v61, %v2195_v14  ;;  %v2283_v28 = vmul.f32 %v2281_v54, %v2223_v6  ;;  %v2289_v61 = vmul.f32 %v2287_v51, %v5331_v50 }
 0x477   : > { %v2272_v0 = vadd.f32 %v2270_v40, %v2266_v38  ;;  %v2276_v10 = vmul.f32 %v2275_v19, %v2200_v32 }
 0x478   : > { %v2279_v24 = vadd.f32 %v2277_v48, %v2273_v21  ;;  %v2227_v8 = vpop.permute.xlu1 %2226 }
 0x479   : > { %v2278_v18 = vadd.f32 %v2276_v10, %v2272_v0  ;;  %v2231_v60 = vsel %vm360_vm6, %v5331_v50, %v2227_v8  ;;  %v2225_v11 = vpop.permute.xlu0 %2224  ;;  %v2305_v50 = vstv %s5842_s15 }
 0x47a   : > { %v2285_v20 = vadd.f32 %v2283_v28, %v2279_v24  ;;  %v2230_v4 = vsel %vm360_vm6, %v5324_v31, %v2225_v11  ;;  %v2295_v34 = vmul.f32 %v2293_v56, %v2231_v60  ;;  %v2307_v58 = vmul.f32 %v2305_v50, %v5394_v12 }
 0x47b   : > { %v2284_v17 = vadd.f32 %v2282_v30, %v2278_v18  ;;  %v2294_v36 = vmul.f32 %v2293_v56, %v2230_v4  ;;  %v2306_v13 = vmul.f32 %v2305_v50, %v5383_v57 }
 0x47c   : > { %v2291_v42 = vadd.f32 %v2289_v61, %v2285_v20  ;;  %v2249_v37 = vpop.permute.xlu1 %2248 }
 0x47d   : > { %v2290_v47 = vadd.f32 %v2288_v1, %v2284_v17  ;;  %v2253_v15 = vsel %vm359_vm5, %v5394_v12, %v2249_v37  ;;  %v2247_v35 = vpop.permute.xlu0 %2246 }
 0x47e   : > { %v2297_v63 = vadd.f32 %v2295_v34, %v2291_v42  ;;  %v2301_v33 = vmul.f32 %v2299_v29, %v2253_v15  ;;  %v2252_v53 = vsel %vm359_vm5, %v5383_v57, %v2247_v35 }
 0x47f   : > { %v2296_v22 = vadd.f32 %v2294_v36, %v2290_v47  ;;  %v2300_v31 = vmul.f32 %v2299_v29, %v2252_v53 }
 0x480   : > { %v2303_v52 = vadd.f32 %v2301_v33, %v2297_v63  ;;  %v2257_v45 = vpop.permute.xlu1 %2256 }
 0x481   : > { %v2302_v55 = vadd.f32 %v2300_v31, %v2296_v22  ;;  %v2261_v26 = vsel %vm360_vm6, %v5394_v12, %v2257_v45  ;;  %v2255_v16 = vpop.permute.xlu0 %2254 }
 0x482   : > { %v2309_v27 = vadd.f32 %v2307_v58, %v2303_v52  ;;  %v2313_v5 = vmul.f32 %v2311_v39, %v2261_v26  ;;  %v2260_v3 = vsel %vm360_vm6, %v5383_v57, %v2255_v16 }
 0x483   : > { %v2308_v62 = vadd.f32 %v2306_v13, %v2302_v55  ;;  %v2312_v59 = vmul.f32 %v2311_v39, %v2260_v3 }
 0x484   : > { %v2315_v9 = vadd.f32 %v2313_v5, %v2309_v27 }
 0x485   : > { %v2314_v49 = vadd.f32 %v2312_v59, %v2308_v62 }
 0x486   : > { %2771 = vtanh.f32 %v2315_v9 }
 0x487   : > { %2773 = vtanh.f32 %v2314_v49 }
 0x490   : > { %v2772_v23 = vpop.eup %2771 }
 0x491   : > { %v2774_v57 = vpop.eup %2773  ;;  %2320 = vst.msk [vmem:[%s349_s23 + $0x8] sm:$0xff] %vm2318_vm7, %v2772_v23 }
 0x492   : > { %2319 = vst.msk [vmem:[%s349_s23] sm:$0xff] %vm2318_vm7, %v2774_v57 }
 0x493   : > { %2893 = shalt.err (!%p2890_p0)
}
 0x494   : > { %s2894_s20 = scalar_lea.hbm %s5884_s24, 256  ;;  %s2898_s13 = scalar_lea.hbm %s6733_s27, 512 }
 0x495   : > { %p2895_p1 = scmp.ne.s32.totalorder %s5884_s24, %s2894_s20  ;;  %p2899_p3 = scmp.lt.u32.totalorder %s5884_s24, %s6733_s27 }
 0x496   : > { %p2900_p2 = scmp.lt.u32.totalorder %s2898_s13, %s2894_s20  ;;  %p2902_p6 = scmp.lt.u32.totalorder %s2894_s20, %s5884_s24 }
 0x497   : > { %p2896_p7 = pnand %p2895_p1, %p3112_p9 }
 0x498   : > { %p2901_p4 = por %p2900_p2, %p2899_p3 }
 0x499   : > { %p2897_p11 = pneg %p2896_p7 }
 0x49a   : > { %p2903_p8 = por %p2902_p6, %p2901_p4 }
 0x49c   : > { %p2904_p5 = pnand %p2903_p8, %p2897_p11 }
 0x49e   : > { %2907 = shalt.err (!%p2904_p5)
}
 0x49f   : > { %s2971_s12 = smov 128   ;;  %s2972_s11 = smov 8  }
 0x4a0   : > { %2698 = dma.vmem_to_hbm [thread:$0]  (%p3112_p9), %s5886_s26, 256, %s5884_s24, %s2322_s0, %s2971_s12, %s2971_s12, %s2972_s11  }
 0x4a1 PF: > { %s6734_s19 = sld [smem:[#allocation19_spill]]  ;;  %s6735_s9 = sld [smem:[#allocation24_spill]] }
 0x4a2   : > { %s6736_s1 = sld [smem:[#allocation22_spill]] }
 0x4a7   : > { %s2350_s8 = sand.u32 1, %s6734_s19   ;;  %p6737_p13 = scmp.ne.s32.totalorder %s6735_s9, 0 }
 0x4a8   : > { %p6738_p10 = scmp.ge.s32.totalorder %s6736_s1, 2  ;;  %s2351_s18 = scalar_lea.sflag [#allocation5], %s2350_s8 }
 0x4aa   : > { %p2718_p12 = pnand %p6738_p10, %p6737_p13 }
 0x4ac   : > { %2941 = dma.done.wait (!%p2718_p12), %s2351_s18, 256  }
 0x4ad   : > { %2943 = vsyncadd (!%p2718_p12), %s2351_s18, 4294967040  ;;  %s6739_s26 = sld [smem:[#allocation25_spill]]  ;;  %s6740_s23 = sld [smem:[#allocation20_spill]] }
 0x4ae   : > { %s6741_s24 = sld [smem:[#allocation21_spill]]  ;;  %s6742_s25 = sld [smem:[#allocation26_spill]] }
 0x4b3   : > { %p25_p0 = scmp.ge.s32.totalorder %s6739_s26, 4  }
 0x4b5   :  { %27 = sbr.rel (!%p25_p0) target bundleno = 17 (0x11), region = 121 }
 0x4bc   :  { %2356 = vsyncpa [#allocation4], 1 }
 0x4bd   :  { %2358 = vsyncpa [#allocation4 + $0x1], 1 }
 0x4be   :  { %2359 = vsyncpa [#allocation8], 1 }
 0x4bf   :  { %2361 = vsyncpa [#allocation8 + $0x1], 1 }
 0x4c0   :  { %2362 = vsyncpa [#allocation5], 1 }
 0x4c1   :  { %2364 = vsyncpa [#allocation5 + $0x1], 1 }
 0x4c2   :  { %2365 = vsyncpa [#allocation6], 1 }
 0x4c3   :  { %2367 = vsyncpa [#allocation6 + $0x1], 1 }
 0x4c4   :  { %2368 = vsyncpa [#allocation11], 1 }

</bundles_post_ra>
